<compile_context>
chip_gen: v5e
topology: v5e:2x2
jax: 0.10.0
libtpu: 0.0.40
codegen_flags: <defaults>
</compile_context>

<pallas_src>
import numpy as np
import jax
import jax.numpy as jnp
from jax.experimental import pallas as pl
from jax.experimental.pallas import tpu as pltpu


# ----------------------------------------------------------------------------
# Fully fused forward kernel (single invocation, no grid)
# ----------------------------------------------------------------------------
def _build_fused_kernel(S, Bp, H, V):
    """S: seq len, Bp: padded batch (multiple of 8), H: hidden, V: real vocab."""
    H3 = 3 * H

    def gru_cell(ix_t, h, whh, bn):
        # ix_t already holds W_ih @ x + b_ih (+ b_hr, b_hz folded in).
        hh = jnp.dot(h, whh, preferred_element_type=jnp.float32)       # (Bp, 3H)
        r = jax.nn.sigmoid(ix_t[:, 0:H] + hh[:, 0:H])
        z = jax.nn.sigmoid(ix_t[:, H:2 * H] + hh[:, H:2 * H])
        n = jnp.tanh(ix_t[:, 2 * H:H3] + r * (hh[:, 2 * H:H3] + bn))
        return (1.0 - z) * n + z * h

    def kernel(enc_x_ref, dec_x_ref,
               wih_f_ref, whh_f_ref, bi_f_ref, bn_f_ref,
               wih_b_ref, whh_b_ref, bi_b_ref, bn_b_ref,
               wx0_ref, wf0_ref, wb0_ref, whh0_ref, bi0_ref, bn0_ref,
               wih1_ref, whh1_ref, bi1_ref, bn1_ref,
               outw_ref, outb_ref,
               em_ref, idx_ref,
               hf_ref, hb_ref, d0_ref, d1_ref):
        enc_x = enc_x_ref[...]                                # (S*Bp, E)
        dec_x = dec_x_ref[...]                                # (S*Bp, E)

        # ---- encoder: hoist input-side gate projections (one matmul per dir) ----
        ixf = jnp.dot(enc_x, wih_f_ref[...],
                      preferred_element_type=jnp.float32) + bi_f_ref[...]
        ixb = jnp.dot(enc_x, wih_b_ref[...],
                      preferred_element_type=jnp.float32) + bi_b_ref[...]

        whh_f, bn_f = whh_f_ref[...], bn_f_ref[...]
        whh_b, bn_b = whh_b_ref[...], bn_b_ref[...]
        hf = jnp.zeros((Bp, H), jnp.float32)                  # PyTorch h0 = zeros
        hb = jnp.zeros((Bp, H), jnp.float32)
        # forward & backward recurrences are independent -> interleave for ILP
        for t in range(S):
            tb = S - 1 - t
            hf = gru_cell(ixf[t * Bp:(t + 1) * Bp, :], hf, whh_f, bn_f)
            hb = gru_cell(ixb[tb * Bp:(tb + 1) * Bp, :], hb, whh_b, bn_b)
            hf_ref[t * Bp:(t + 1) * Bp, :] = hf
            hb_ref[tb * Bp:(tb + 1) * Bp, :] = hb

        # ---- decoder layer 0: input = cat([dec_x, enc_fwd, enc_bwd], -1) ----
        # (concat expressed as a sum of three matmuls with the split weight)
        ix0 = (jnp.dot(dec_x, wx0_ref[...], preferred_element_type=jnp.float32)
               + jnp.dot(hf_ref[...], wf0_ref[...], preferred_element_type=jnp.float32)
               + jnp.dot(hb_ref[...], wb0_ref[...], preferred_element_type=jnp.float32)
               + bi0_ref[...])
        whh0, bn0 = whh0_ref[...], bn0_ref[...]
        h = jnp.zeros((Bp, H), jnp.float32)
        for t in range(S):
            h = gru_cell(ix0[t * Bp:(t + 1) * Bp, :], h, whh0, bn0)
            d0_ref[t * Bp:(t + 1) * Bp, :] = h

        # ---- decoder layer 1 (inter-layer dropout: eval -> identity) ----
        ix1 = jnp.dot(d0_ref[...], wih1_ref[...],
                      preferred_element_type=jnp.float32) + bi1_ref[...]
        whh1, bn1 = whh1_ref[...], bn1_ref[...]
        h = jnp.zeros((Bp, H), jnp.float32)
        for t in range(S):
            h = gru_cell(ix1[t * Bp:(t + 1) * Bp, :], h, whh1, bn1)
            d1_ref[t * Bp:(t + 1) * Bp, :] = h

        # ---- output projection (lane-padded to 128) + argmax over real vocab ----
        em = jnp.dot(d1_ref[...], outw_ref[...],
                     preferred_element_type=jnp.float32) + outb_ref[...]   # (S*Bp, VP)
        em_ref[...] = em                                       # lane-dense store

        col = jax.lax.broadcasted_iota(jnp.int32, em.shape, 1)
        em_valid = jnp.where(col < V, em, -jnp.inf)            # mask padded lanes
        m = jnp.max(em_valid, axis=-1, keepdims=True)
        big = jnp.int32(jnp.iinfo(jnp.int32).max)
        idx = jnp.min(jnp.where(em_valid == m, col, big), axis=-1, keepdims=True)
        idx_ref[...] = idx.astype(jnp.int32)

    return kernel


def fused_forward(enc_x2, dec_x2, p, S, Bp, H, V, VP):
    """enc_x2/dec_x2: (S*Bp, E) time-major, batch-padded embeddings."""
    SBp = S * Bp
    kernel = _build_fused_kernel(S, Bp, H, V)

    out_w_pad = jnp.pad(p["out_w"], ((0, 0), (0, VP - V)))
    out_b_pad = jnp.pad(p["out_b"], ((0, 0), (0, VP - V)), constant_values=-1e30)

    em, idx = pl.pallas_call(
        kernel,
        out_shape=(
            jax.ShapeDtypeStruct((SBp, VP), jnp.float32),      # padded emissions
            jax.ShapeDtypeStruct((SBp, 1), jnp.int32),         # argmax indices
        ),
        scratch_shapes=[pltpu.VMEM((SBp, H), jnp.float32) for _ in range(4)],
    )(enc_x2, dec_x2,
      p["enc_fwd"]["wih"], p["enc_fwd"]["whh"], p["enc_fwd"]["bi"], p["enc_fwd"]["bn"],
      p["enc_bwd"]["wih"], p["enc_bwd"]["whh"], p["enc_bwd"]["bi"], p["enc_bwd"]["bn"],
      p["dec_l0"]["wx"], p["dec_l0"]["wf"], p["dec_l0"]["wb"],
      p["dec_l0"]["whh"], p["dec_l0"]["bi"], p["dec_l0"]["bn"],
      p["dec_l1"]["wih"], p["dec_l1"]["whh"], p["dec_l1"]["bi"], p["dec_l1"]["bn"],
      out_w_pad, out_b_pad)
    return em, idx


# ----------------------------------------------------------------------------
# Parameters (deterministic init mimicking the module's effective init:
# nn.GRU keeps default uniform(-1/sqrt(H), 1/sqrt(H)) (weights_init skips nn.GRU),
# embedding keeps N(0,1), output Linear gets xavier_normal weight + normal bias).
# Gate layout along the 3H axis is [r | z | n] like PyTorch.
# ----------------------------------------------------------------------------
def init_params(key, src_vocab, tgt_vocab, emb_dim, H):
    keys = iter(jax.random.split(key, 32))
    bound = 1.0 / float(np.sqrt(H))

    def u(shape):
        return jax.random.uniform(next(keys), shape, jnp.float32, -bound, bound)

    def gru_params(in_dim):
        wih = u((in_dim, 3 * H))
        whh = u((H, 3 * H))
        bih = u((1, 3 * H))
        bhh = u((1, 3 * H))
        # fold r/z hidden biases into the hoisted input-side bias; keep the
        # n-gate hidden bias separate (it must stay inside r * (...)).
        bi = bih.at[:, :2 * H].add(bhh[:, :2 * H])
        bn = bhh[:, 2 * H:]
        return dict(wih=wih, whh=whh, bi=bi, bn=bn)

    def dec0_params(emb_dim):
        g = gru_params(emb_dim + 2 * H)
        wih = g.pop("wih")
        g["wx"] = wih[:emb_dim]                 # decoder-input embedding part
        g["wf"] = wih[emb_dim:emb_dim + H]      # encoder forward hidden part
        g["wb"] = wih[emb_dim + H:]             # encoder backward hidden part
        return g

    return dict(
        embedding=jax.random.normal(next(keys), (src_vocab, emb_dim), jnp.float32),
        enc_fwd=gru_params(emb_dim),
        enc_bwd=gru_params(emb_dim),
        dec_l0=dec0_params(emb_dim),
        dec_l1=gru_params(H),
        out_w=jax.random.normal(next(keys), (H, tgt_vocab), jnp.float32)
        * float(np.sqrt(2.0 / (H + tgt_vocab))),                      # xavier_normal_
        out_b=jax.random.normal(next(keys), (1, tgt_vocab), jnp.float32),  # init.normal_
    )


# ----------------------------------------------------------------------------
# Forward pass (eval mode, units_type='gru', need_atten=False, batch_first=True)
# ----------------------------------------------------------------------------
def proc_inp(inp):
    enc_inp = inp
    dec_inp = inp          # same alias as in the torch module
    for ip in dec_inp:
        try:
            ip.remove(2)
        except ValueError:
            print(ip)
        ip.insert(0, 1)
    return enc_inp, dec_inp


@jax.jit
def _forward_jit(params, enc_tok, dec_tok):
    B, S = enc_tok.shape
    H = params["dec_l1"]["whh"].shape[0]
    V = params["out_b"].shape[1]
    VP = ((V + 127) // 128) * 128          # lane-dense padded vocab (>= 128)
    Bp = ((B + 7) // 8) * 8                # sublane-dense padded batch

    emb = params["embedding"]
    enc_x = jnp.take(emb, enc_tok, axis=0)                 # (B, S, E)
    dec_x = jnp.take(emb, dec_tok, axis=0)

    def to_time_major_padded(x):
        x = jnp.transpose(x, (1, 0, 2))                    # (S, B, E)  batch_first
        x = jnp.pad(x, ((0, 0), (0, Bp - B), (0, 0)))      # (S, Bp, E)
        return x.reshape(S * Bp, x.shape[-1])              # row = t*Bp + b

    enc_x2 = to_time_major_padded(enc_x)
    dec_x2 = to_time_major_padded(dec_x)

    em, idx = fused_forward(enc_x2, dec_x2, params, S, Bp, H, V, VP)

    emissions = em.reshape(S, Bp, VP)[:, :B, :V]           # (S, B, V) like torch
    # eval + GRU branch: torch.argmax(emissions.transpose(0,1), dim=-1) -> (B, S)
    preds = jnp.transpose(idx.reshape(S, Bp)[:, :B], (1, 0))
    return preds, emissions


def model_forward(params, inp):
    enc_inp, dec_inp = proc_inp([list(x) for x in inp])
    enc_tok = jnp.asarray(enc_inp, dtype=jnp.int32)        # (B, S)
    dec_tok = jnp.asarray(dec_inp, dtype=jnp.int32)        # (B, S)  (aliased -> equal)
    return _forward_jit(params, enc_tok, dec_tok)
    # TODO(synk): CRF branch and attention branch (units_type='lstm' / need_atten=True)
    # are never reached with this config and are not implemented.


if __name__ == "__main__":
    SRC_VOCAB, TGT_VOCAB = 20, 12
    EMB, NUM_UNITS = 16, 32

    key = jax.random.PRNGKey(0)
    params = init_params(key, SRC_VOCAB, TGT_VOCAB, EMB, NUM_UNITS)

    # batch=2, seq_len=8 token-id lists; each contains a '2' (removed by proc_inp)
    inp = [[3, 2, 5, 7, 4, 6, 9, 8],
           [2, 10, 11, 3, 5, 4, 7, 6]]

    preds, emissions = model_forward(params, inp)
    jax.block_until_ready(preds)
    jax.block_until_ready(emissions)
    _ = np.asarray(preds).tolist()   # mirrors the .tolist() return of the torch module
    print("KERNEL_OK")
</pallas_src>

<mosaic_0001>
module attributes {stable_mosaic.version = 11 : i64} {
  func.func @kernel(%arg0: memref<64x16xf32, #tpu.memory_space<vmem>>, %arg1: memref<64x16xf32, #tpu.memory_space<vmem>>, %arg2: memref<16x96xf32, #tpu.memory_space<vmem>>, %arg3: memref<32x96xf32, #tpu.memory_space<vmem>>, %arg4: memref<1x96xf32, #tpu.memory_space<vmem>>, %arg5: memref<1x32xf32, #tpu.memory_space<vmem>>, %arg6: memref<16x96xf32, #tpu.memory_space<vmem>>, %arg7: memref<32x96xf32, #tpu.memory_space<vmem>>, %arg8: memref<1x96xf32, #tpu.memory_space<vmem>>, %arg9: memref<1x32xf32, #tpu.memory_space<vmem>>, %arg10: memref<16x96xf32, #tpu.memory_space<vmem>>, %arg11: memref<32x96xf32, #tpu.memory_space<vmem>>, %arg12: memref<32x96xf32, #tpu.memory_space<vmem>>, %arg13: memref<32x96xf32, #tpu.memory_space<vmem>>, %arg14: memref<1x96xf32, #tpu.memory_space<vmem>>, %arg15: memref<1x32xf32, #tpu.memory_space<vmem>>, %arg16: memref<32x96xf32, #tpu.memory_space<vmem>>, %arg17: memref<32x96xf32, #tpu.memory_space<vmem>>, %arg18: memref<1x96xf32, #tpu.memory_space<vmem>>, %arg19: memref<1x32xf32, #tpu.memory_space<vmem>>, %arg20: memref<32x128xf32, #tpu.memory_space<vmem>>, %arg21: memref<1x128xf32, #tpu.memory_space<vmem>>, %arg22: memref<64x128xf32, #tpu.memory_space<vmem>>, %arg23: memref<64x1xi32, #tpu.memory_space<vmem>>, %arg24: memref<64x32xf32, #tpu.memory_space<vmem>>, %arg25: memref<64x32xf32, #tpu.memory_space<vmem>>, %arg26: memref<64x32xf32, #tpu.memory_space<vmem>>, %arg27: memref<64x32xf32, #tpu.memory_space<vmem>>) attributes {dimension_semantics = [], scalar_prefetch = 0 : i64, scratch_operands = 4 : i64, tpu.core_type = #tpu.core_type<tc>} {
    %c0 = arith.constant 0 : index
    %c0_0 = arith.constant 0 : index
    %0 = vector.load %arg0[%c0, %c0_0] : memref<64x16xf32, #tpu.memory_space<vmem>>, vector<64x16xf32>
    %c0_1 = arith.constant 0 : index
    %c0_2 = arith.constant 0 : index
    %1 = vector.load %arg1[%c0_1, %c0_2] : memref<64x16xf32, #tpu.memory_space<vmem>>, vector<64x16xf32>
    %c0_3 = arith.constant 0 : index
    %c0_4 = arith.constant 0 : index
    %2 = vector.load %arg2[%c0_3, %c0_4] : memref<16x96xf32, #tpu.memory_space<vmem>>, vector<16x96xf32>
    %cst = arith.constant dense<0.000000e+00> : vector<64x96xf32>
    %3 = tpu.matmul %0, %2, %cst {dimension_numbers = #tpu.dot_dimension_numbers<[1], [0], [0], [1], [0, 0, 1, 1], [], []>} : vector<64x16xf32>, vector<16x96xf32>, vector<64x96xf32> -> vector<64x96xf32>
    %c0_5 = arith.constant 0 : index
    %c0_6 = arith.constant 0 : index
    %4 = vector.load %arg4[%c0_5, %c0_6] : memref<1x96xf32, #tpu.memory_space<vmem>>, vector<1x96xf32>
    %5 = vector.broadcast %4 : vector<1x96xf32> to vector<64x96xf32>
    %6 = arith.addf %3, %5 : vector<64x96xf32>
    %c0_7 = arith.constant 0 : index
    %c0_8 = arith.constant 0 : index
    %7 = vector.load %arg6[%c0_7, %c0_8] : memref<16x96xf32, #tpu.memory_space<vmem>>, vector<16x96xf32>
    %cst_9 = arith.constant dense<0.000000e+00> : vector<64x96xf32>
    %8 = tpu.matmul %0, %7, %cst_9 {dimension_numbers = #tpu.dot_dimension_numbers<[1], [0], [0], [1], [0, 0, 1, 1], [], []>} : vector<64x16xf32>, vector<16x96xf32>, vector<64x96xf32> -> vector<64x96xf32>
    %c0_10 = arith.constant 0 : index
    %c0_11 = arith.constant 0 : index
    %9 = vector.load %arg8[%c0_10, %c0_11] : memref<1x96xf32, #tpu.memory_space<vmem>>, vector<1x96xf32>
    %10 = vector.broadcast %9 : vector<1x96xf32> to vector<64x96xf32>
    %11 = arith.addf %8, %10 : vector<64x96xf32>
    %c0_12 = arith.constant 0 : index
    %c0_13 = arith.constant 0 : index
    %12 = vector.load %arg3[%c0_12, %c0_13] : memref<32x96xf32, #tpu.memory_space<vmem>>, vector<32x96xf32>
    %c0_14 = arith.constant 0 : index
    %c0_15 = arith.constant 0 : index
    %13 = vector.load %arg5[%c0_14, %c0_15] : memref<1x32xf32, #tpu.memory_space<vmem>>, vector<1x32xf32>
    %c0_16 = arith.constant 0 : index
    %c0_17 = arith.constant 0 : index
    %14 = vector.load %arg7[%c0_16, %c0_17] : memref<32x96xf32, #tpu.memory_space<vmem>>, vector<32x96xf32>
    %c0_18 = arith.constant 0 : index
    %c0_19 = arith.constant 0 : index
    %15 = vector.load %arg9[%c0_18, %c0_19] : memref<1x32xf32, #tpu.memory_space<vmem>>, vector<1x32xf32>
    %cst_20 = arith.constant 0.000000e+00 : f32
    %16 = vector.broadcast %cst_20 : f32 to vector<8x32xf32>
    %cst_21 = arith.constant 0.000000e+00 : f32
    %17 = vector.broadcast %cst_21 : f32 to vector<8x32xf32>
    %18 = vector.extract_strided_slice %6 {offsets = [0, 0], sizes = [8, 96], strides = [1, 1]} : vector<64x96xf32> to vector<8x96xf32>
    %cst_22 = arith.constant dense<0.000000e+00> : vector<8x96xf32>
    %19 = tpu.matmul %16, %12, %cst_22 {dimension_numbers = #tpu.dot_dimension_numbers<[1], [0], [0], [1], [0, 0, 1, 1], [], []>} : vector<8x32xf32>, vector<32x96xf32>, vector<8x96xf32> -> vector<8x96xf32>
    %20 = vector.extract_strided_slice %18 {offsets = [0, 0], sizes = [8, 32], strides = [1, 1]} : vector<8x96xf32> to vector<8x32xf32>
    %21 = vector.extract_strided_slice %19 {offsets = [0, 0], sizes = [8, 32], strides = [1, 1]} : vector<8x96xf32> to vector<8x32xf32>
    %22 = arith.addf %20, %21 : vector<8x32xf32>
    %23 = arith.negf %22 : vector<8x32xf32>
    %24 = math.exp %23 : vector<8x32xf32>
    %cst_23 = arith.constant 1.000000e+00 : f32
    %25 = vector.broadcast %cst_23 : f32 to vector<8x32xf32>
    %26 = arith.addf %25, %24 : vector<8x32xf32>
    %27 = arith.divf %25, %26 : vector<8x32xf32>
    %28 = vector.extract_strided_slice %18 {offsets = [0, 32], sizes = [8, 32], strides = [1, 1]} : vector<8x96xf32> to vector<8x32xf32>
    %29 = vector.extract_strided_slice %19 {offsets = [0, 32], sizes = [8, 32], strides = [1, 1]} : vector<8x96xf32> to vector<8x32xf32>
    %30 = arith.addf %28, %29 : vector<8x32xf32>
    %31 = arith.negf %30 : vector<8x32xf32>
    %32 = math.exp %31 : vector<8x32xf32>
    %cst_24 = arith.constant 1.000000e+00 : f32
    %33 = vector.broadcast %cst_24 : f32 to vector<8x32xf32>
    %34 = arith.addf %33, %32 : vector<8x32xf32>
    %35 = arith.divf %33, %34 : vector<8x32xf32>
    %36 = vector.extract_strided_slice %18 {offsets = [0, 64], sizes = [8, 32], strides = [1, 1]} : vector<8x96xf32> to vector<8x32xf32>
    %37 = vector.extract_strided_slice %19 {offsets = [0, 64], sizes = [8, 32], strides = [1, 1]} : vector<8x96xf32> to vector<8x32xf32>
    %38 = vector.broadcast %13 : vector<1x32xf32> to vector<8x32xf32>
    %39 = arith.addf %37, %38 : vector<8x32xf32>
    %40 = arith.mulf %27, %39 : vector<8x32xf32>
    %41 = arith.addf %36, %40 : vector<8x32xf32>
    %42 = math.tanh %41 : vector<8x32xf32>
    %cst_25 = arith.constant 1.000000e+00 : f32
    %43 = vector.broadcast %cst_25 : f32 to vector<8x32xf32>
    %44 = arith.subf %43, %35 : vector<8x32xf32>
    %45 = arith.mulf %44, %42 : vector<8x32xf32>
    %46 = arith.mulf %35, %16 : vector<8x32xf32>
    %47 = arith.addf %45, %46 : vector<8x32xf32>
    %48 = vector.extract_strided_slice %11 {offsets = [56, 0], sizes = [8, 96], strides = [1, 1]} : vector<64x96xf32> to vector<8x96xf32>
    %cst_26 = arith.constant dense<0.000000e+00> : vector<8x96xf32>
    %49 = tpu.matmul %17, %14, %cst_26 {dimension_numbers = #tpu.dot_dimension_numbers<[1], [0], [0], [1], [0, 0, 1, 1], [], []>} : vector<8x32xf32>, vector<32x96xf32>, vector<8x96xf32> -> vector<8x96xf32>
    %50 = vector.extract_strided_slice %48 {offsets = [0, 0], sizes = [8, 32], strides = [1, 1]} : vector<8x96xf32> to vector<8x32xf32>
    %51 = vector.extract_strided_slice %49 {offsets = [0, 0], sizes = [8, 32], strides = [1, 1]} : vector<8x96xf32> to vector<8x32xf32>
    %52 = arith.addf %50, %51 : vector<8x32xf32>
    %53 = arith.negf %52 : vector<8x32xf32>
    %54 = math.exp %53 : vector<8x32xf32>
    %cst_27 = arith.constant 1.000000e+00 : f32
    %55 = vector.broadcast %cst_27 : f32 to vector<8x32xf32>
    %56 = arith.addf %55, %54 : vector<8x32xf32>
    %57 = arith.divf %55, %56 : vector<8x32xf32>
    %58 = vector.extract_strided_slice %48 {offsets = [0, 32], sizes = [8, 32], strides = [1, 1]} : vector<8x96xf32> to vector<8x32xf32>
    %59 = vector.extract_strided_slice %49 {offsets = [0, 32], sizes = [8, 32], strides = [1, 1]} : vector<8x96xf32> to vector<8x32xf32>
    %60 = arith.addf %58, %59 : vector<8x32xf32>
    %61 = arith.negf %60 : vector<8x32xf32>
    %62 = math.exp %61 : vector<8x32xf32>
    %cst_28 = arith.constant 1.000000e+00 : f32
    %63 = vector.broadcast %cst_28 : f32 to vector<8x32xf32>
    %64 = arith.addf %63, %62 : vector<8x32xf32>
    %65 = arith.divf %63, %64 : vector<8x32xf32>
    %66 = vector.extract_strided_slice %48 {offsets = [0, 64], sizes = [8, 32], strides = [1, 1]} : vector<8x96xf32> to vector<8x32xf32>
    %67 = vector.extract_strided_slice %49 {offsets = [0, 64], sizes = [8, 32], strides = [1, 1]} : vector<8x96xf32> to vector<8x32xf32>
    %68 = vector.broadcast %15 : vector<1x32xf32> to vector<8x32xf32>
    %69 = arith.addf %67, %68 : vector<8x32xf32>
    %70 = arith.mulf %57, %69 : vector<8x32xf32>
    %71 = arith.addf %66, %70 : vector<8x32xf32>
    %72 = math.tanh %71 : vector<8x32xf32>
    %cst_29 = arith.constant 1.000000e+00 : f32
    %73 = vector.broadcast %cst_29 : f32 to vector<8x32xf32>
    %74 = arith.subf %73, %65 : vector<8x32xf32>
    %75 = arith.mulf %74, %72 : vector<8x32xf32>
    %76 = arith.mulf %65, %17 : vector<8x32xf32>
    %77 = arith.addf %75, %76 : vector<8x32xf32>
    %c0_30 = arith.constant 0 : index
    %c0_31 = arith.constant 0 : index
    %78 = vector.load %arg24[%c0_30, %c0_31] : memref<64x32xf32, #tpu.memory_space<vmem>>, vector<8x32xf32>
    tpu.vector_store %arg24[%c0_30, %c0_31], %47 {strides = array<i32>} : memref<64x32xf32, #tpu.memory_space<vmem>>, vector<8x32xf32>,
    %c56 = arith.constant 56 : index
    %c0_32 = arith.constant 0 : index
    %79 = vector.load %arg25[%c56, %c0_32] : memref<64x32xf32, #tpu.memory_space<vmem>>, vector<8x32xf32>
    tpu.vector_store %arg25[%c56, %c0_32], %77 {strides = array<i32>} : memref<64x32xf32, #tpu.memory_space<vmem>>, vector<8x32xf32>,
    %80 = vector.extract_strided_slice %6 {offsets = [8, 0], sizes = [8, 96], strides = [1, 1]} : vector<64x96xf32> to vector<8x96xf32>
    %cst_33 = arith.constant dense<0.000000e+00> : vector<8x96xf32>
    %81 = tpu.matmul %47, %12, %cst_33 {dimension_numbers = #tpu.dot_dimension_numbers<[1], [0], [0], [1], [0, 0, 1, 1], [], []>} : vector<8x32xf32>, vector<32x96xf32>, vector<8x96xf32> -> vector<8x96xf32>
    %82 = vector.extract_strided_slice %80 {offsets = [0, 0], sizes = [8, 32], strides = [1, 1]} : vector<8x96xf32> to vector<8x32xf32>
    %83 = vector.extract_strided_slice %81 {offsets = [0, 0], sizes = [8, 32], strides = [1, 1]} : vector<8x96xf32> to vector<8x32xf32>
    %84 = arith.addf %82, %83 : vector<8x32xf32>
    %85 = arith.negf %84 : vector<8x32xf32>
    %86 = math.exp %85 : vector<8x32xf32>
    %cst_34 = arith.constant 1.000000e+00 : f32
    %87 = vector.broadcast %cst_34 : f32 to vector<8x32xf32>
    %88 = arith.addf %87, %86 : vector<8x32xf32>
    %89 = arith.divf %87, %88 : vector<8x32xf32>
    %90 = vector.extract_strided_slice %80 {offsets = [0, 32], sizes = [8, 32], strides = [1, 1]} : vector<8x96xf32> to vector<8x32xf32>
    %91 = vector.extract_strided_slice %81 {offsets = [0, 32], sizes = [8, 32], strides = [1, 1]} : vector<8x96xf32> to vector<8x32xf32>
    %92 = arith.addf %90, %91 : vector<8x32xf32>
    %93 = arith.negf %92 : vector<8x32xf32>
    %94 = math.exp %93 : vector<8x32xf32>
    %cst_35 = arith.constant 1.000000e+00 : f32
    %95 = vector.broadcast %cst_35 : f32 to vector<8x32xf32>
    %96 = arith.addf %95, %94 : vector<8x32xf32>
    %97 = arith.divf %95, %96 : vector<8x32xf32>
    %98 = vector.extract_strided_slice %80 {offsets = [0, 64], sizes = [8, 32], strides = [1, 1]} : vector<8x96xf32> to vector<8x32xf32>
    %99 = vector.extract_strided_slice %81 {offsets = [0, 64], sizes = [8, 32], strides = [1, 1]} : vector<8x96xf32> to vector<8x32xf32>
    %100 = vector.broadcast %13 : vector<1x32xf32> to vector<8x32xf32>
    %101 = arith.addf %99, %100 : vector<8x32xf32>
    %102 = arith.mulf %89, %101 : vector<8x32xf32>
    %103 = arith.addf %98, %102 : vector<8x32xf32>
    %104 = math.tanh %103 : vector<8x32xf32>
    %cst_36 = arith.constant 1.000000e+00 : f32
    %105 = vector.broadcast %cst_36 : f32 to vector<8x32xf32>
    %106 = arith.subf %105, %97 : vector<8x32xf32>
    %107 = arith.mulf %106, %104 : vector<8x32xf32>
    %108 = arith.mulf %97, %47 : vector<8x32xf32>
    %109 = arith.addf %107, %108 : vector<8x32xf32>
    %110 = vector.extract_strided_slice %11 {offsets = [48, 0], sizes = [8, 96], strides = [1, 1]} : vector<64x96xf32> to vector<8x96xf32>
    %cst_37 = arith.constant dense<0.000000e+00> : vector<8x96xf32>
    %111 = tpu.matmul %77, %14, %cst_37 {dimension_numbers = #tpu.dot_dimension_numbers<[1], [0], [0], [1], [0, 0, 1, 1], [], []>} : vector<8x32xf32>, vector<32x96xf32>, vector<8x96xf32> -> vector<8x96xf32>
    %112 = vector.extract_strided_slice %110 {offsets = [0, 0], sizes = [8, 32], strides = [1, 1]} : vector<8x96xf32> to vector<8x32xf32>
    %113 = vector.extract_strided_slice %111 {offsets = [0, 0], sizes = [8, 32], strides = [1, 1]} : vector<8x96xf32> to vector<8x32xf32>
    %114 = arith.addf %112, %113 : vector<8x32xf32>
    %115 = arith.negf %114 : vector<8x32xf32>
    %116 = math.exp %115 : vector<8x32xf32>
    %cst_38 = arith.constant 1.000000e+00 : f32
    %117 = vector.broadcast %cst_38 : f32 to vector<8x32xf32>
    %118 = arith.addf %117, %116 : vector<8x32xf32>
    %119 = arith.divf %117, %118 : vector<8x32xf32>
    %120 = vector.extract_strided_slice %110 {offsets = [0, 32], sizes = [8, 32], strides = [1, 1]} : vector<8x96xf32> to vector<8x32xf32>
    %121 = vector.extract_strided_slice %111 {offsets = [0, 32], sizes = [8, 32], strides = [1, 1]} : vector<8x96xf32> to vector<8x32xf32>
    %122 = arith.addf %120, %121 : vector<8x32xf32>
    %123 = arith.negf %122 : vector<8x32xf32>
    %124 = math.exp %123 : vector<8x32xf32>
    %cst_39 = arith.constant 1.000000e+00 : f32
    %125 = vector.broadcast %cst_39 : f32 to vector<8x32xf32>
    %126 = arith.addf %125, %124 : vector<8x32xf32>
    %127 = arith.divf %125, %126 : vector<8x32xf32>
    %128 = vector.extract_strided_slice %110 {offsets = [0, 64], sizes = [8, 32], strides = [1, 1]} : vector<8x96xf32> to vector<8x32xf32>
    %129 = vector.extract_strided_slice %111 {offsets = [0, 64], sizes = [8, 32], strides = [1, 1]} : vector<8x96xf32> to vector<8x32xf32>
    %130 = vector.broadcast %15 : vector<1x32xf32> to vector<8x32xf32>
    %131 = arith.addf %129, %130 : vector<8x32xf32>
    %132 = arith.mulf %119, %131 : vector<8x32xf32>
    %133 = arith.addf %128, %132 : vector<8x32xf32>
    %134 = math.tanh %133 : vector<8x32xf32>
    %cst_40 = arith.constant 1.000000e+00 : f32
    %135 = vector.broadcast %cst_40 : f32 to vector<8x32xf32>
    %136 = arith.subf %135, %127 : vector<8x32xf32>
    %137 = arith.mulf %136, %134 : vector<8x32xf32>
    %138 = arith.mulf %127, %77 : vector<8x32xf32>
    %139 = arith.addf %137, %138 : vector<8x32xf32>
    %c8 = arith.constant 8 : index
    %c0_41 = arith.constant 0 : index
    %140 = vector.load %arg24[%c8, %c0_41] : memref<64x32xf32, #tpu.memory_space<vmem>>, vector<8x32xf32>
    tpu.vector_store %arg24[%c8, %c0_41], %109 {strides = array<i32>} : memref<64x32xf32, #tpu.memory_space<vmem>>, vector<8x32xf32>,
    %c48 = arith.constant 48 : index
    %c0_42 = arith.constant 0 : index
    %141 = vector.load %arg25[%c48, %c0_42] : memref<64x32xf32, #tpu.memory_space<vmem>>, vector<8x32xf32>
    tpu.vector_store %arg25[%c48, %c0_42], %139 {strides = array<i32>} : memref<64x32xf32, #tpu.memory_space<vmem>>, vector<8x32xf32>,
    %142 = vector.extract_strided_slice %6 {offsets = [16, 0], sizes = [8, 96], strides = [1, 1]} : vector<64x96xf32> to vector<8x96xf32>
    %cst_43 = arith.constant dense<0.000000e+00> : vector<8x96xf32>
    %143 = tpu.matmul %109, %12, %cst_43 {dimension_numbers = #tpu.dot_dimension_numbers<[1], [0], [0], [1], [0, 0, 1, 1], [], []>} : vector<8x32xf32>, vector<32x96xf32>, vector<8x96xf32> -> vector<8x96xf32>
    %144 = vector.extract_strided_slice %142 {offsets = [0, 0], sizes = [8, 32], strides = [1, 1]} : vector<8x96xf32> to vector<8x32xf32>
    %145 = vector.extract_strided_slice %143 {offsets = [0, 0], sizes = [8, 32], strides = [1, 1]} : vector<8x96xf32> to vector<8x32xf32>
    %146 = arith.addf %144, %145 : vector<8x32xf32>
    %147 = arith.negf %146 : vector<8x32xf32>
    %148 = math.exp %147 : vector<8x32xf32>
    %cst_44 = arith.constant 1.000000e+00 : f32
    %149 = vector.broadcast %cst_44 : f32 to vector<8x32xf32>
    %150 = arith.addf %149, %148 : vector<8x32xf32>
    %151 = arith.divf %149, %150 : vector<8x32xf32>
    %152 = vector.extract_strided_slice %142 {offsets = [0, 32], sizes = [8, 32], strides = [1, 1]} : vector<8x96xf32> to vector<8x32xf32>
    %153 = vector.extract_strided_slice %143 {offsets = [0, 32], sizes = [8, 32], strides = [1, 1]} : vector<8x96xf32> to vector<8x32xf32>
    %154 = arith.addf %152, %153 : vector<8x32xf32>
    %155 = arith.negf %154 : vector<8x32xf32>
    %156 = math.exp %155 : vector<8x32xf32>
    %cst_45 = arith.constant 1.000000e+00 : f32
    %157 = vector.broadcast %cst_45 : f32 to vector<8x32xf32>
    %158 = arith.addf %157, %156 : vector<8x32xf32>
    %159 = arith.divf %157, %158 : vector<8x32xf32>
    %160 = vector.extract_strided_slice %142 {offsets = [0, 64], sizes = [8, 32], strides = [1, 1]} : vector<8x96xf32> to vector<8x32xf32>
    %161 = vector.extract_strided_slice %143 {offsets = [0, 64], sizes = [8, 32], strides = [1, 1]} : vector<8x96xf32> to vector<8x32xf32>
    %162 = vector.broadcast %13 : vector<1x32xf32> to vector<8x32xf32>
    %163 = arith.addf %161, %162 : vector<8x32xf32>
    %164 = arith.mulf %151, %163 : vector<8x32xf32>
    %165 = arith.addf %160, %164 : vector<8x32xf32>
    %166 = math.tanh %165 : vector<8x32xf32>
    %cst_46 = arith.constant 1.000000e+00 : f32
    %167 = vector.broadcast %cst_46 : f32 to vector<8x32xf32>
    %168 = arith.subf %167, %159 : vector<8x32xf32>
    %169 = arith.mulf %168, %166 : vector<8x32xf32>
    %170 = arith.mulf %159, %109 : vector<8x32xf32>
    %171 = arith.addf %169, %170 : vector<8x32xf32>
    %172 = vector.extract_strided_slice %11 {offsets = [40, 0], sizes = [8, 96], strides = [1, 1]} : vector<64x96xf32> to vector<8x96xf32>
    %cst_47 = arith.constant dense<0.000000e+00> : vector<8x96xf32>
    %173 = tpu.matmul %139, %14, %cst_47 {dimension_numbers = #tpu.dot_dimension_numbers<[1], [0], [0], [1], [0, 0, 1, 1], [], []>} : vector<8x32xf32>, vector<32x96xf32>, vector<8x96xf32> -> vector<8x96xf32>
    %174 = vector.extract_strided_slice %172 {offsets = [0, 0], sizes = [8, 32], strides = [1, 1]} : vector<8x96xf32> to vector<8x32xf32>
    %175 = vector.extract_strided_slice %173 {offsets = [0, 0], sizes = [8, 32], strides = [1, 1]} : vector<8x96xf32> to vector<8x32xf32>
    %176 = arith.addf %174, %175 : vector<8x32xf32>
    %177 = arith.negf %176 : vector<8x32xf32>
    %178 = math.exp %177 : vector<8x32xf32>
    %cst_48 = arith.constant 1.000000e+00 : f32
    %179 = vector.broadcast %cst_48 : f32 to vector<8x32xf32>
    %180 = arith.addf %179, %178 : vector<8x32xf32>
    %181 = arith.divf %179, %180 : vector<8x32xf32>
    %182 = vector.extract_strided_slice %172 {offsets = [0, 32], sizes = [8, 32], strides = [1, 1]} : vector<8x96xf32> to vector<8x32xf32>
    %183 = vector.extract_strided_slice %173 {offsets = [0, 32], sizes = [8, 32], strides = [1, 1]} : vector<8x96xf32> to vector<8x32xf32>
    %184 = arith.addf %182, %183 : vector<8x32xf32>
    %185 = arith.negf %184 : vector<8x32xf32>
    %186 = math.exp %185 : vector<8x32xf32>
    %cst_49 = arith.constant 1.000000e+00 : f32
    %187 = vector.broadcast %cst_49 : f32 to vector<8x32xf32>
    %188 = arith.addf %187, %186 : vector<8x32xf32>
    %189 = arith.divf %187, %188 : vector<8x32xf32>
    %190 = vector.extract_strided_slice %172 {offsets = [0, 64], sizes = [8, 32], strides = [1, 1]} : vector<8x96xf32> to vector<8x32xf32>
    %191 = vector.extract_strided_slice %173 {offsets = [0, 64], sizes = [8, 32], strides = [1, 1]} : vector<8x96xf32> to vector<8x32xf32>
    %192 = vector.broadcast %15 : vector<1x32xf32> to vector<8x32xf32>
    %193 = arith.addf %191, %192 : vector<8x32xf32>
    %194 = arith.mulf %181, %193 : vector<8x32xf32>
    %195 = arith.addf %190, %194 : vector<8x32xf32>
    %196 = math.tanh %195 : vector<8x32xf32>
    %cst_50 = arith.constant 1.000000e+00 : f32
    %197 = vector.broadcast %cst_50 : f32 to vector<8x32xf32>
    %198 = arith.subf %197, %189 : vector<8x32xf32>
    %199 = arith.mulf %198, %196 : vector<8x32xf32>
    %200 = arith.mulf %189, %139 : vector<8x32xf32>
    %201 = arith.addf %199, %200 : vector<8x32xf32>
    %c16 = arith.constant 16 : index
    %c0_51 = arith.constant 0 : index
    %202 = vector.load %arg24[%c16, %c0_51] : memref<64x32xf32, #tpu.memory_space<vmem>>, vector<8x32xf32>
    tpu.vector_store %arg24[%c16, %c0_51], %171 {strides = array<i32>} : memref<64x32xf32, #tpu.memory_space<vmem>>, vector<8x32xf32>,
    %c40 = arith.constant 40 : index
    %c0_52 = arith.constant 0 : index
    %203 = vector.load %arg25[%c40, %c0_52] : memref<64x32xf32, #tpu.memory_space<vmem>>, vector<8x32xf32>
    tpu.vector_store %arg25[%c40, %c0_52], %201 {strides = array<i32>} : memref<64x32xf32, #tpu.memory_space<vmem>>, vector<8x32xf32>,
    %204 = vector.extract_strided_slice %6 {offsets = [24, 0], sizes = [8, 96], strides = [1, 1]} : vector<64x96xf32> to vector<8x96xf32>
    %cst_53 = arith.constant dense<0.000000e+00> : vector<8x96xf32>
    %205 = tpu.matmul %171, %12, %cst_53 {dimension_numbers = #tpu.dot_dimension_numbers<[1], [0], [0], [1], [0, 0, 1, 1], [], []>} : vector<8x32xf32>, vector<32x96xf32>, vector<8x96xf32> -> vector<8x96xf32>
    %206 = vector.extract_strided_slice %204 {offsets = [0, 0], sizes = [8, 32], strides = [1, 1]} : vector<8x96xf32> to vector<8x32xf32>
    %207 = vector.extract_strided_slice %205 {offsets = [0, 0], sizes = [8, 32], strides = [1, 1]} : vector<8x96xf32> to vector<8x32xf32>
    %208 = arith.addf %206, %207 : vector<8x32xf32>
    %209 = arith.negf %208 : vector<8x32xf32>
    %210 = math.exp %209 : vector<8x32xf32>
    %cst_54 = arith.constant 1.000000e+00 : f32
    %211 = vector.broadcast %cst_54 : f32 to vector<8x32xf32>
    %212 = arith.addf %211, %210 : vector<8x32xf32>
    %213 = arith.divf %211, %212 : vector<8x32xf32>
    %214 = vector.extract_strided_slice %204 {offsets = [0, 32], sizes = [8, 32], strides = [1, 1]} : vector<8x96xf32> to vector<8x32xf32>
    %215 = vector.extract_strided_slice %205 {offsets = [0, 32], sizes = [8, 32], strides = [1, 1]} : vector<8x96xf32> to vector<8x32xf32>
    %216 = arith.addf %214, %215 : vector<8x32xf32>
    %217 = arith.negf %216 : vector<8x32xf32>
    %218 = math.exp %217 : vector<8x32xf32>
    %cst_55 = arith.constant 1.000000e+00 : f32
    %219 = vector.broadcast %cst_55 : f32 to vector<8x32xf32>
    %220 = arith.addf %219, %218 : vector<8x32xf32>
    %221 = arith.divf %219, %220 : vector<8x32xf32>
    %222 = vector.extract_strided_slice %204 {offsets = [0, 64], sizes = [8, 32], strides = [1, 1]} : vector<8x96xf32> to vector<8x32xf32>
    %223 = vector.extract_strided_slice %205 {offsets = [0, 64], sizes = [8, 32], strides = [1, 1]} : vector<8x96xf32> to vector<8x32xf32>
    %224 = vector.broadcast %13 : vector<1x32xf32> to vector<8x32xf32>
    %225 = arith.addf %223, %224 : vector<8x32xf32>
    %226 = arith.mulf %213, %225 : vector<8x32xf32>
    %227 = arith.addf %222, %226 : vector<8x32xf32>
    %228 = math.tanh %227 : vector<8x32xf32>
    %cst_56 = arith.constant 1.000000e+00 : f32
    %229 = vector.broadcast %cst_56 : f32 to vector<8x32xf32>
    %230 = arith.subf %229, %221 : vector<8x32xf32>
    %231 = arith.mulf %230, %228 : vector<8x32xf32>
    %232 = arith.mulf %221, %171 : vector<8x32xf32>
    %233 = arith.addf %231, %232 : vector<8x32xf32>
    %234 = vector.extract_strided_slice %11 {offsets = [32, 0], sizes = [8, 96], strides = [1, 1]} : vector<64x96xf32> to vector<8x96xf32>
    %cst_57 = arith.constant dense<0.000000e+00> : vector<8x96xf32>
    %235 = tpu.matmul %201, %14, %cst_57 {dimension_numbers = #tpu.dot_dimension_numbers<[1], [0], [0], [1], [0, 0, 1, 1], [], []>} : vector<8x32xf32>, vector<32x96xf32>, vector<8x96xf32> -> vector<8x96xf32>
    %236 = vector.extract_strided_slice %234 {offsets = [0, 0], sizes = [8, 32], strides = [1, 1]} : vector<8x96xf32> to vector<8x32xf32>
    %237 = vector.extract_strided_slice %235 {offsets = [0, 0], sizes = [8, 32], strides = [1, 1]} : vector<8x96xf32> to vector<8x32xf32>
    %238 = arith.addf %236, %237 : vector<8x32xf32>
    %239 = arith.negf %238 : vector<8x32xf32>
    %240 = math.exp %239 : vector<8x32xf32>
    %cst_58 = arith.constant 1.000000e+00 : f32
    %241 = vector.broadcast %cst_58 : f32 to vector<8x32xf32>
    %242 = arith.addf %241, %240 : vector<8x32xf32>
    %243 = arith.divf %241, %242 : vector<8x32xf32>
    %244 = vector.extract_strided_slice %234 {offsets = [0, 32], sizes = [8, 32], strides = [1, 1]} : vector<8x96xf32> to vector<8x32xf32>
    %245 = vector.extract_strided_slice %235 {offsets = [0, 32], sizes = [8, 32], strides = [1, 1]} : vector<8x96xf32> to vector<8x32xf32>
    %246 = arith.addf %244, %245 : vector<8x32xf32>
    %247 = arith.negf %246 : vector<8x32xf32>
    %248 = math.exp %247 : vector<8x32xf32>
    %cst_59 = arith.constant 1.000000e+00 : f32
    %249 = vector.broadcast %cst_59 : f32 to vector<8x32xf32>
    %250 = arith.addf %249, %248 : vector<8x32xf32>
    %251 = arith.divf %249, %250 : vector<8x32xf32>
    %252 = vector.extract_strided_slice %234 {offsets = [0, 64], sizes = [8, 32], strides = [1, 1]} : vector<8x96xf32> to vector<8x32xf32>
    %253 = vector.extract_strided_slice %235 {offsets = [0, 64], sizes = [8, 32], strides = [1, 1]} : vector<8x96xf32> to vector<8x32xf32>
    %254 = vector.broadcast %15 : vector<1x32xf32> to vector<8x32xf32>
    %255 = arith.addf %253, %254 : vector<8x32xf32>
    %256 = arith.mulf %243, %255 : vector<8x32xf32>
    %257 = arith.addf %252, %256 : vector<8x32xf32>
    %258 = math.tanh %257 : vector<8x32xf32>
    %cst_60 = arith.constant 1.000000e+00 : f32
    %259 = vector.broadcast %cst_60 : f32 to vector<8x32xf32>
    %260 = arith.subf %259, %251 : vector<8x32xf32>
    %261 = arith.mulf %260, %258 : vector<8x32xf32>
    %262 = arith.mulf %251, %201 : vector<8x32xf32>
    %263 = arith.addf %261, %262 : vector<8x32xf32>
    %c24 = arith.constant 24 : index
    %c0_61 = arith.constant 0 : index
    %264 = vector.load %arg24[%c24, %c0_61] : memref<64x32xf32, #tpu.memory_space<vmem>>, vector<8x32xf32>
    tpu.vector_store %arg24[%c24, %c0_61], %233 {strides = array<i32>} : memref<64x32xf32, #tpu.memory_space<vmem>>, vector<8x32xf32>,
    %c32 = arith.constant 32 : index
    %c0_62 = arith.constant 0 : index
    %265 = vector.load %arg25[%c32, %c0_62] : memref<64x32xf32, #tpu.memory_space<vmem>>, vector<8x32xf32>
    tpu.vector_store %arg25[%c32, %c0_62], %263 {strides = array<i32>} : memref<64x32xf32, #tpu.memory_space<vmem>>, vector<8x32xf32>,
    %266 = vector.extract_strided_slice %6 {offsets = [32, 0], sizes = [8, 96], strides = [1, 1]} : vector<64x96xf32> to vector<8x96xf32>
    %cst_63 = arith.constant dense<0.000000e+00> : vector<8x96xf32>
    %267 = tpu.matmul %233, %12, %cst_63 {dimension_numbers = #tpu.dot_dimension_numbers<[1], [0], [0], [1], [0, 0, 1, 1], [], []>} : vector<8x32xf32>, vector<32x96xf32>, vector<8x96xf32> -> vector<8x96xf32>
    %268 = vector.extract_strided_slice %266 {offsets = [0, 0], sizes = [8, 32], strides = [1, 1]} : vector<8x96xf32> to vector<8x32xf32>
    %269 = vector.extract_strided_slice %267 {offsets = [0, 0], sizes = [8, 32], strides = [1, 1]} : vector<8x96xf32> to vector<8x32xf32>
    %270 = arith.addf %268, %269 : vector<8x32xf32>
    %271 = arith.negf %270 : vector<8x32xf32>
    %272 = math.exp %271 : vector<8x32xf32>
    %cst_64 = arith.constant 1.000000e+00 : f32
    %273 = vector.broadcast %cst_64 : f32 to vector<8x32xf32>
    %274 = arith.addf %273, %272 : vector<8x32xf32>
    %275 = arith.divf %273, %274 : vector<8x32xf32>
    %276 = vector.extract_strided_slice %266 {offsets = [0, 32], sizes = [8, 32], strides = [1, 1]} : vector<8x96xf32> to vector<8x32xf32>
    %277 = vector.extract_strided_slice %267 {offsets = [0, 32], sizes = [8, 32], strides = [1, 1]} : vector<8x96xf32> to vector<8x32xf32>
    %278 = arith.addf %276, %277 : vector<8x32xf32>
    %279 = arith.negf %278 : vector<8x32xf32>
    %280 = math.exp %279 : vector<8x32xf32>
    %cst_65 = arith.constant 1.000000e+00 : f32
    %281 = vector.broadcast %cst_65 : f32 to vector<8x32xf32>
    %282 = arith.addf %281, %280 : vector<8x32xf32>
    %283 = arith.divf %281, %282 : vector<8x32xf32>
    %284 = vector.extract_strided_slice %266 {offsets = [0, 64], sizes = [8, 32], strides = [1, 1]} : vector<8x96xf32> to vector<8x32xf32>
    %285 = vector.extract_strided_slice %267 {offsets = [0, 64], sizes = [8, 32], strides = [1, 1]} : vector<8x96xf32> to vector<8x32xf32>
    %286 = vector.broadcast %13 : vector<1x32xf32> to vector<8x32xf32>
    %287 = arith.addf %285, %286 : vector<8x32xf32>
    %288 = arith.mulf %275, %287 : vector<8x32xf32>
    %289 = arith.addf %284, %288 : vector<8x32xf32>
    %290 = math.tanh %289 : vector<8x32xf32>
    %cst_66 = arith.constant 1.000000e+00 : f32
    %291 = vector.broadcast %cst_66 : f32 to vector<8x32xf32>
    %292 = arith.subf %291, %283 : vector<8x32xf32>
    %293 = arith.mulf %292, %290 : vector<8x32xf32>
    %294 = arith.mulf %283, %233 : vector<8x32xf32>
    %295 = arith.addf %293, %294 : vector<8x32xf32>
    %296 = vector.extract_strided_slice %11 {offsets = [24, 0], sizes = [8, 96], strides = [1, 1]} : vector<64x96xf32> to vector<8x96xf32>
    %cst_67 = arith.constant dense<0.000000e+00> : vector<8x96xf32>
    %297 = tpu.matmul %263, %14, %cst_67 {dimension_numbers = #tpu.dot_dimension_numbers<[1], [0], [0], [1], [0, 0, 1, 1], [], []>} : vector<8x32xf32>, vector<32x96xf32>, vector<8x96xf32> -> vector<8x96xf32>
    %298 = vector.extract_strided_slice %296 {offsets = [0, 0], sizes = [8, 32], strides = [1, 1]} : vector<8x96xf32> to vector<8x32xf32>
    %299 = vector.extract_strided_slice %297 {offsets = [0, 0], sizes = [8, 32], strides = [1, 1]} : vector<8x96xf32> to vector<8x32xf32>
    %300 = arith.addf %298, %299 : vector<8x32xf32>
    %301 = arith.negf %300 : vector<8x32xf32>
    %302 = math.exp %301 : vector<8x32xf32>
    %cst_68 = arith.constant 1.000000e+00 : f32
    %303 = vector.broadcast %cst_68 : f32 to vector<8x32xf32>
    %304 = arith.addf %303, %302 : vector<8x32xf32>
    %305 = arith.divf %303, %304 : vector<8x32xf32>
    %306 = vector.extract_strided_slice %296 {offsets = [0, 32], sizes = [8, 32], strides = [1, 1]} : vector<8x96xf32> to vector<8x32xf32>
    %307 = vector.extract_strided_slice %297 {offsets = [0, 32], sizes = [8, 32], strides = [1, 1]} : vector<8x96xf32> to vector<8x32xf32>
    %308 = arith.addf %306, %307 : vector<8x32xf32>
    %309 = arith.negf %308 : vector<8x32xf32>
    %310 = math.exp %309 : vector<8x32xf32>
    %cst_69 = arith.constant 1.000000e+00 : f32
    %311 = vector.broadcast %cst_69 : f32 to vector<8x32xf32>
    %312 = arith.addf %311, %310 : vector<8x32xf32>
    %313 = arith.divf %311, %312 : vector<8x32xf32>
    %314 = vector.extract_strided_slice %296 {offsets = [0, 64], sizes = [8, 32], strides = [1, 1]} : vector<8x96xf32> to vector<8x32xf32>
    %315 = vector.extract_strided_slice %297 {offsets = [0, 64], sizes = [8, 32], strides = [1, 1]} : vector<8x96xf32> to vector<8x32xf32>
    %316 = vector.broadcast %15 : vector<1x32xf32> to vector<8x32xf32>
    %317 = arith.addf %315, %316 : vector<8x32xf32>
    %318 = arith.mulf %305, %317 : vector<8x32xf32>
    %319 = arith.addf %314, %318 : vector<8x32xf32>
    %320 = math.tanh %319 : vector<8x32xf32>
    %cst_70 = arith.constant 1.000000e+00 : f32
    %321 = vector.broadcast %cst_70 : f32 to vector<8x32xf32>
    %322 = arith.subf %321, %313 : vector<8x32xf32>
    %323 = arith.mulf %322, %320 : vector<8x32xf32>
    %324 = arith.mulf %313, %263 : vector<8x32xf32>
    %325 = arith.addf %323, %324 : vector<8x32xf32>
    %c32_71 = arith.constant 32 : index
    %c0_72 = arith.constant 0 : index
    %326 = vector.load %arg24[%c32_71, %c0_72] : memref<64x32xf32, #tpu.memory_space<vmem>>, vector<8x32xf32>
    tpu.vector_store %arg24[%c32_71, %c0_72], %295 {strides = array<i32>} : memref<64x32xf32, #tpu.memory_space<vmem>>, vector<8x32xf32>,
    %c24_73 = arith.constant 24 : index
    %c0_74 = arith.constant 0 : index
    %327 = vector.load %arg25[%c24_73, %c0_74] : memref<64x32xf32, #tpu.memory_space<vmem>>, vector<8x32xf32>
    tpu.vector_store %arg25[%c24_73, %c0_74], %325 {strides = array<i32>} : memref<64x32xf32, #tpu.memory_space<vmem>>, vector<8x32xf32>,
    %328 = vector.extract_strided_slice %6 {offsets = [40, 0], sizes = [8, 96], strides = [1, 1]} : vector<64x96xf32> to vector<8x96xf32>
    %cst_75 = arith.constant dense<0.000000e+00> : vector<8x96xf32>
    %329 = tpu.matmul %295, %12, %cst_75 {dimension_numbers = #tpu.dot_dimension_numbers<[1], [0], [0], [1], [0, 0, 1, 1], [], []>} : vector<8x32xf32>, vector<32x96xf32>, vector<8x96xf32> -> vector<8x96xf32>
    %330 = vector.extract_strided_slice %328 {offsets = [0, 0], sizes = [8, 32], strides = [1, 1]} : vector<8x96xf32> to vector<8x32xf32>
    %331 = vector.extract_strided_slice %329 {offsets = [0, 0], sizes = [8, 32], strides = [1, 1]} : vector<8x96xf32> to vector<8x32xf32>
    %332 = arith.addf %330, %331 : vector<8x32xf32>
    %333 = arith.negf %332 : vector<8x32xf32>
    %334 = math.exp %333 : vector<8x32xf32>
    %cst_76 = arith.constant 1.000000e+00 : f32
    %335 = vector.broadcast %cst_76 : f32 to vector<8x32xf32>
    %336 = arith.addf %335, %334 : vector<8x32xf32>
    %337 = arith.divf %335, %336 : vector<8x32xf32>
    %338 = vector.extract_strided_slice %328 {offsets = [0, 32], sizes = [8, 32], strides = [1, 1]} : vector<8x96xf32> to vector<8x32xf32>
    %339 = vector.extract_strided_slice %329 {offsets = [0, 32], sizes = [8, 32], strides = [1, 1]} : vector<8x96xf32> to vector<8x32xf32>
    %340 = arith.addf %338, %339 : vector<8x32xf32>
    %341 = arith.negf %340 : vector<8x32xf32>
    %342 = math.exp %341 : vector<8x32xf32>
    %cst_77 = arith.constant 1.000000e+00 : f32
    %343 = vector.broadcast %cst_77 : f32 to vector<8x32xf32>
    %344 = arith.addf %343, %342 : vector<8x32xf32>
    %345 = arith.divf %343, %344 : vector<8x32xf32>
    %346 = vector.extract_strided_slice %328 {offsets = [0, 64], sizes = [8, 32], strides = [1, 1]} : vector<8x96xf32> to vector<8x32xf32>
    %347 = vector.extract_strided_slice %329 {offsets = [0, 64], sizes = [8, 32], strides = [1, 1]} : vector<8x96xf32> to vector<8x32xf32>
    %348 = vector.broadcast %13 : vector<1x32xf32> to vector<8x32xf32>
    %349 = arith.addf %347, %348 : vector<8x32xf32>
    %350 = arith.mulf %337, %349 : vector<8x32xf32>
    %351 = arith.addf %346, %350 : vector<8x32xf32>
    %352 = math.tanh %351 : vector<8x32xf32>
    %cst_78 = arith.constant 1.000000e+00 : f32
    %353 = vector.broadcast %cst_78 : f32 to vector<8x32xf32>
    %354 = arith.subf %353, %345 : vector<8x32xf32>
    %355 = arith.mulf %354, %352 : vector<8x32xf32>
    %356 = arith.mulf %345, %295 : vector<8x32xf32>
    %357 = arith.addf %355, %356 : vector<8x32xf32>
    %358 = vector.extract_strided_slice %11 {offsets = [16, 0], sizes = [8, 96], strides = [1, 1]} : vector<64x96xf32> to vector<8x96xf32>
    %cst_79 = arith.constant dense<0.000000e+00> : vector<8x96xf32>
    %359 = tpu.matmul %325, %14, %cst_79 {dimension_numbers = #tpu.dot_dimension_numbers<[1], [0], [0], [1], [0, 0, 1, 1], [], []>} : vector<8x32xf32>, vector<32x96xf32>, vector<8x96xf32> -> vector<8x96xf32>
    %360 = vector.extract_strided_slice %358 {offsets = [0, 0], sizes = [8, 32], strides = [1, 1]} : vector<8x96xf32> to vector<8x32xf32>
    %361 = vector.extract_strided_slice %359 {offsets = [0, 0], sizes = [8, 32], strides = [1, 1]} : vector<8x96xf32> to vector<8x32xf32>
    %362 = arith.addf %360, %361 : vector<8x32xf32>
    %363 = arith.negf %362 : vector<8x32xf32>
    %364 = math.exp %363 : vector<8x32xf32>
    %cst_80 = arith.constant 1.000000e+00 : f32
    %365 = vector.broadcast %cst_80 : f32 to vector<8x32xf32>
    %366 = arith.addf %365, %364 : vector<8x32xf32>
    %367 = arith.divf %365, %366 : vector<8x32xf32>
    %368 = vector.extract_strided_slice %358 {offsets = [0, 32], sizes = [8, 32], strides = [1, 1]} : vector<8x96xf32> to vector<8x32xf32>
    %369 = vector.extract_strided_slice %359 {offsets = [0, 32], sizes = [8, 32], strides = [1, 1]} : vector<8x96xf32> to vector<8x32xf32>
    %370 = arith.addf %368, %369 : vector<8x32xf32>
    %371 = arith.negf %370 : vector<8x32xf32>
    %372 = math.exp %371 : vector<8x32xf32>
    %cst_81 = arith.constant 1.000000e+00 : f32
    %373 = vector.broadcast %cst_81 : f32 to vector<8x32xf32>
    %374 = arith.addf %373, %372 : vector<8x32xf32>
    %375 = arith.divf %373, %374 : vector<8x32xf32>
    %376 = vector.extract_strided_slice %358 {offsets = [0, 64], sizes = [8, 32], strides = [1, 1]} : vector<8x96xf32> to vector<8x32xf32>
    %377 = vector.extract_strided_slice %359 {offsets = [0, 64], sizes = [8, 32], strides = [1, 1]} : vector<8x96xf32> to vector<8x32xf32>
    %378 = vector.broadcast %15 : vector<1x32xf32> to vector<8x32xf32>
    %379 = arith.addf %377, %378 : vector<8x32xf32>
    %380 = arith.mulf %367, %379 : vector<8x32xf32>
    %381 = arith.addf %376, %380 : vector<8x32xf32>
    %382 = math.tanh %381 : vector<8x32xf32>
    %cst_82 = arith.constant 1.000000e+00 : f32
    %383 = vector.broadcast %cst_82 : f32 to vector<8x32xf32>
    %384 = arith.subf %383, %375 : vector<8x32xf32>
    %385 = arith.mulf %384, %382 : vector<8x32xf32>
    %386 = arith.mulf %375, %325 : vector<8x32xf32>
    %387 = arith.addf %385, %386 : vector<8x32xf32>
    %c40_83 = arith.constant 40 : index
    %c0_84 = arith.constant 0 : index
    %388 = vector.load %arg24[%c40_83, %c0_84] : memref<64x32xf32, #tpu.memory_space<vmem>>, vector<8x32xf32>
    tpu.vector_store %arg24[%c40_83, %c0_84], %357 {strides = array<i32>} : memref<64x32xf32, #tpu.memory_space<vmem>>, vector<8x32xf32>,
    %c16_85 = arith.constant 16 : index
    %c0_86 = arith.constant 0 : index
    %389 = vector.load %arg25[%c16_85, %c0_86] : memref<64x32xf32, #tpu.memory_space<vmem>>, vector<8x32xf32>
    tpu.vector_store %arg25[%c16_85, %c0_86], %387 {strides = array<i32>} : memref<64x32xf32, #tpu.memory_space<vmem>>, vector<8x32xf32>,
    %390 = vector.extract_strided_slice %6 {offsets = [48, 0], sizes = [8, 96], strides = [1, 1]} : vector<64x96xf32> to vector<8x96xf32>
    %cst_87 = arith.constant dense<0.000000e+00> : vector<8x96xf32>
    %391 = tpu.matmul %357, %12, %cst_87 {dimension_numbers = #tpu.dot_dimension_numbers<[1], [0], [0], [1], [0, 0, 1, 1], [], []>} : vector<8x32xf32>, vector<32x96xf32>, vector<8x96xf32> -> vector<8x96xf32>
    %392 = vector.extract_strided_slice %390 {offsets = [0, 0], sizes = [8, 32], strides = [1, 1]} : vector<8x96xf32> to vector<8x32xf32>
    %393 = vector.extract_strided_slice %391 {offsets = [0, 0], sizes = [8, 32], strides = [1, 1]} : vector<8x96xf32> to vector<8x32xf32>
    %394 = arith.addf %392, %393 : vector<8x32xf32>
    %395 = arith.negf %394 : vector<8x32xf32>
    %396 = math.exp %395 : vector<8x32xf32>
    %cst_88 = arith.constant 1.000000e+00 : f32
    %397 = vector.broadcast %cst_88 : f32 to vector<8x32xf32>
    %398 = arith.addf %397, %396 : vector<8x32xf32>
    %399 = arith.divf %397, %398 : vector<8x32xf32>
    %400 = vector.extract_strided_slice %390 {offsets = [0, 32], sizes = [8, 32], strides = [1, 1]} : vector<8x96xf32> to vector<8x32xf32>
    %401 = vector.extract_strided_slice %391 {offsets = [0, 32], sizes = [8, 32], strides = [1, 1]} : vector<8x96xf32> to vector<8x32xf32>
    %402 = arith.addf %400, %401 : vector<8x32xf32>
    %403 = arith.negf %402 : vector<8x32xf32>
    %404 = math.exp %403 : vector<8x32xf32>
    %cst_89 = arith.constant 1.000000e+00 : f32
    %405 = vector.broadcast %cst_89 : f32 to vector<8x32xf32>
    %406 = arith.addf %405, %404 : vector<8x32xf32>
    %407 = arith.divf %405, %406 : vector<8x32xf32>
    %408 = vector.extract_strided_slice %390 {offsets = [0, 64], sizes = [8, 32], strides = [1, 1]} : vector<8x96xf32> to vector<8x32xf32>
    %409 = vector.extract_strided_slice %391 {offsets = [0, 64], sizes = [8, 32], strides = [1, 1]} : vector<8x96xf32> to vector<8x32xf32>
    %410 = vector.broadcast %13 : vector<1x32xf32> to vector<8x32xf32>
    %411 = arith.addf %409, %410 : vector<8x32xf32>
    %412 = arith.mulf %399, %411 : vector<8x32xf32>
    %413 = arith.addf %408, %412 : vector<8x32xf32>
    %414 = math.tanh %413 : vector<8x32xf32>
    %cst_90 = arith.constant 1.000000e+00 : f32
    %415 = vector.broadcast %cst_90 : f32 to vector<8x32xf32>
    %416 = arith.subf %415, %407 : vector<8x32xf32>
    %417 = arith.mulf %416, %414 : vector<8x32xf32>
    %418 = arith.mulf %407, %357 : vector<8x32xf32>
    %419 = arith.addf %417, %418 : vector<8x32xf32>
    %420 = vector.extract_strided_slice %11 {offsets = [8, 0], sizes = [8, 96], strides = [1, 1]} : vector<64x96xf32> to vector<8x96xf32>
    %cst_91 = arith.constant dense<0.000000e+00> : vector<8x96xf32>
    %421 = tpu.matmul %387, %14, %cst_91 {dimension_numbers = #tpu.dot_dimension_numbers<[1], [0], [0], [1], [0, 0, 1, 1], [], []>} : vector<8x32xf32>, vector<32x96xf32>, vector<8x96xf32> -> vector<8x96xf32>
    %422 = vector.extract_strided_slice %420 {offsets = [0, 0], sizes = [8, 32], strides = [1, 1]} : vector<8x96xf32> to vector<8x32xf32>
    %423 = vector.extract_strided_slice %421 {offsets = [0, 0], sizes = [8, 32], strides = [1, 1]} : vector<8x96xf32> to vector<8x32xf32>
    %424 = arith.addf %422, %423 : vector<8x32xf32>
    %425 = arith.negf %424 : vector<8x32xf32>
    %426 = math.exp %425 : vector<8x32xf32>
    %cst_92 = arith.constant 1.000000e+00 : f32
    %427 = vector.broadcast %cst_92 : f32 to vector<8x32xf32>
    %428 = arith.addf %427, %426 : vector<8x32xf32>
    %429 = arith.divf %427, %428 : vector<8x32xf32>
    %430 = vector.extract_strided_slice %420 {offsets = [0, 32], sizes = [8, 32], strides = [1, 1]} : vector<8x96xf32> to vector<8x32xf32>
    %431 = vector.extract_strided_slice %421 {offsets = [0, 32], sizes = [8, 32], strides = [1, 1]} : vector<8x96xf32> to vector<8x32xf32>
    %432 = arith.addf %430, %431 : vector<8x32xf32>
    %433 = arith.negf %432 : vector<8x32xf32>
    %434 = math.exp %433 : vector<8x32xf32>
    %cst_93 = arith.constant 1.000000e+00 : f32
    %435 = vector.broadcast %cst_93 : f32 to vector<8x32xf32>
    %436 = arith.addf %435, %434 : vector<8x32xf32>
    %437 = arith.divf %435, %436 : vector<8x32xf32>
    %438 = vector.extract_strided_slice %420 {offsets = [0, 64], sizes = [8, 32], strides = [1, 1]} : vector<8x96xf32> to vector<8x32xf32>
    %439 = vector.extract_strided_slice %421 {offsets = [0, 64], sizes = [8, 32], strides = [1, 1]} : vector<8x96xf32> to vector<8x32xf32>
    %440 = vector.broadcast %15 : vector<1x32xf32> to vector<8x32xf32>
    %441 = arith.addf %439, %440 : vector<8x32xf32>
    %442 = arith.mulf %429, %441 : vector<8x32xf32>
    %443 = arith.addf %438, %442 : vector<8x32xf32>
    %444 = math.tanh %443 : vector<8x32xf32>
    %cst_94 = arith.constant 1.000000e+00 : f32
    %445 = vector.broadcast %cst_94 : f32 to vector<8x32xf32>
    %446 = arith.subf %445, %437 : vector<8x32xf32>
    %447 = arith.mulf %446, %444 : vector<8x32xf32>
    %448 = arith.mulf %437, %387 : vector<8x32xf32>
    %449 = arith.addf %447, %448 : vector<8x32xf32>
    %c48_95 = arith.constant 48 : index
    %c0_96 = arith.constant 0 : index
    %450 = vector.load %arg24[%c48_95, %c0_96] : memref<64x32xf32, #tpu.memory_space<vmem>>, vector<8x32xf32>
    tpu.vector_store %arg24[%c48_95, %c0_96], %419 {strides = array<i32>} : memref<64x32xf32, #tpu.memory_space<vmem>>, vector<8x32xf32>,
    %c8_97 = arith.constant 8 : index
    %c0_98 = arith.constant 0 : index
    %451 = vector.load %arg25[%c8_97, %c0_98] : memref<64x32xf32, #tpu.memory_space<vmem>>, vector<8x32xf32>
    tpu.vector_store %arg25[%c8_97, %c0_98], %449 {strides = array<i32>} : memref<64x32xf32, #tpu.memory_space<vmem>>, vector<8x32xf32>,
    %452 = vector.extract_strided_slice %6 {offsets = [56, 0], sizes = [8, 96], strides = [1, 1]} : vector<64x96xf32> to vector<8x96xf32>
    %cst_99 = arith.constant dense<0.000000e+00> : vector<8x96xf32>
    %453 = tpu.matmul %419, %12, %cst_99 {dimension_numbers = #tpu.dot_dimension_numbers<[1], [0], [0], [1], [0, 0, 1, 1], [], []>} : vector<8x32xf32>, vector<32x96xf32>, vector<8x96xf32> -> vector<8x96xf32>
    %454 = vector.extract_strided_slice %452 {offsets = [0, 0], sizes = [8, 32], strides = [1, 1]} : vector<8x96xf32> to vector<8x32xf32>
    %455 = vector.extract_strided_slice %453 {offsets = [0, 0], sizes = [8, 32], strides = [1, 1]} : vector<8x96xf32> to vector<8x32xf32>
    %456 = arith.addf %454, %455 : vector<8x32xf32>
    %457 = arith.negf %456 : vector<8x32xf32>
    %458 = math.exp %457 : vector<8x32xf32>
    %cst_100 = arith.constant 1.000000e+00 : f32
    %459 = vector.broadcast %cst_100 : f32 to vector<8x32xf32>
    %460 = arith.addf %459, %458 : vector<8x32xf32>
    %461 = arith.divf %459, %460 : vector<8x32xf32>
    %462 = vector.extract_strided_slice %452 {offsets = [0, 32], sizes = [8, 32], strides = [1, 1]} : vector<8x96xf32> to vector<8x32xf32>
    %463 = vector.extract_strided_slice %453 {offsets = [0, 32], sizes = [8, 32], strides = [1, 1]} : vector<8x96xf32> to vector<8x32xf32>
    %464 = arith.addf %462, %463 : vector<8x32xf32>
    %465 = arith.negf %464 : vector<8x32xf32>
    %466 = math.exp %465 : vector<8x32xf32>
    %cst_101 = arith.constant 1.000000e+00 : f32
    %467 = vector.broadcast %cst_101 : f32 to vector<8x32xf32>
    %468 = arith.addf %467, %466 : vector<8x32xf32>
    %469 = arith.divf %467, %468 : vector<8x32xf32>
    %470 = vector.extract_strided_slice %452 {offsets = [0, 64], sizes = [8, 32], strides = [1, 1]} : vector<8x96xf32> to vector<8x32xf32>
    %471 = vector.extract_strided_slice %453 {offsets = [0, 64], sizes = [8, 32], strides = [1, 1]} : vector<8x96xf32> to vector<8x32xf32>
    %472 = vector.broadcast %13 : vector<1x32xf32> to vector<8x32xf32>
    %473 = arith.addf %471, %472 : vector<8x32xf32>
    %474 = arith.mulf %461, %473 : vector<8x32xf32>
    %475 = arith.addf %470, %474 : vector<8x32xf32>
    %476 = math.tanh %475 : vector<8x32xf32>
    %cst_102 = arith.constant 1.000000e+00 : f32
    %477 = vector.broadcast %cst_102 : f32 to vector<8x32xf32>
    %478 = arith.subf %477, %469 : vector<8x32xf32>
    %479 = arith.mulf %478, %476 : vector<8x32xf32>
    %480 = arith.mulf %469, %419 : vector<8x32xf32>
    %481 = arith.addf %479, %480 : vector<8x32xf32>
    %482 = vector.extract_strided_slice %11 {offsets = [0, 0], sizes = [8, 96], strides = [1, 1]} : vector<64x96xf32> to vector<8x96xf32>
    %cst_103 = arith.constant dense<0.000000e+00> : vector<8x96xf32>
    %483 = tpu.matmul %449, %14, %cst_103 {dimension_numbers = #tpu.dot_dimension_numbers<[1], [0], [0], [1], [0, 0, 1, 1], [], []>} : vector<8x32xf32>, vector<32x96xf32>, vector<8x96xf32> -> vector<8x96xf32>
    %484 = vector.extract_strided_slice %482 {offsets = [0, 0], sizes = [8, 32], strides = [1, 1]} : vector<8x96xf32> to vector<8x32xf32>
    %485 = vector.extract_strided_slice %483 {offsets = [0, 0], sizes = [8, 32], strides = [1, 1]} : vector<8x96xf32> to vector<8x32xf32>
    %486 = arith.addf %484, %485 : vector<8x32xf32>
    %487 = arith.negf %486 : vector<8x32xf32>
    %488 = math.exp %487 : vector<8x32xf32>
    %cst_104 = arith.constant 1.000000e+00 : f32
    %489 = vector.broadcast %cst_104 : f32 to vector<8x32xf32>
    %490 = arith.addf %489, %488 : vector<8x32xf32>
    %491 = arith.divf %489, %490 : vector<8x32xf32>
    %492 = vector.extract_strided_slice %482 {offsets = [0, 32], sizes = [8, 32], strides = [1, 1]} : vector<8x96xf32> to vector<8x32xf32>
    %493 = vector.extract_strided_slice %483 {offsets = [0, 32], sizes = [8, 32], strides = [1, 1]} : vector<8x96xf32> to vector<8x32xf32>
    %494 = arith.addf %492, %493 : vector<8x32xf32>
    %495 = arith.negf %494 : vector<8x32xf32>
    %496 = math.exp %495 : vector<8x32xf32>
    %cst_105 = arith.constant 1.000000e+00 : f32
    %497 = vector.broadcast %cst_105 : f32 to vector<8x32xf32>
    %498 = arith.addf %497, %496 : vector<8x32xf32>
    %499 = arith.divf %497, %498 : vector<8x32xf32>
    %500 = vector.extract_strided_slice %482 {offsets = [0, 64], sizes = [8, 32], strides = [1, 1]} : vector<8x96xf32> to vector<8x32xf32>
    %501 = vector.extract_strided_slice %483 {offsets = [0, 64], sizes = [8, 32], strides = [1, 1]} : vector<8x96xf32> to vector<8x32xf32>
    %502 = vector.broadcast %15 : vector<1x32xf32> to vector<8x32xf32>
    %503 = arith.addf %501, %502 : vector<8x32xf32>
    %504 = arith.mulf %491, %503 : vector<8x32xf32>
    %505 = arith.addf %500, %504 : vector<8x32xf32>
    %506 = math.tanh %505 : vector<8x32xf32>
    %cst_106 = arith.constant 1.000000e+00 : f32
    %507 = vector.broadcast %cst_106 : f32 to vector<8x32xf32>
    %508 = arith.subf %507, %499 : vector<8x32xf32>
    %509 = arith.mulf %508, %506 : vector<8x32xf32>
    %510 = arith.mulf %499, %449 : vector<8x32xf32>
    %511 = arith.addf %509, %510 : vector<8x32xf32>
    %c56_107 = arith.constant 56 : index
    %c0_108 = arith.constant 0 : index
    %512 = vector.load %arg24[%c56_107, %c0_108] : memref<64x32xf32, #tpu.memory_space<vmem>>, vector<8x32xf32>
    tpu.vector_store %arg24[%c56_107, %c0_108], %481 {strides = array<i32>} : memref<64x32xf32, #tpu.memory_space<vmem>>, vector<8x32xf32>,
    %c0_109 = arith.constant 0 : index
    %c0_110 = arith.constant 0 : index
    %513 = vector.load %arg25[%c0_109, %c0_110] : memref<64x32xf32, #tpu.memory_space<vmem>>, vector<8x32xf32>
    tpu.vector_store %arg25[%c0_109, %c0_110], %511 {strides = array<i32>} : memref<64x32xf32, #tpu.memory_space<vmem>>, vector<8x32xf32>,
    %c0_111 = arith.constant 0 : index
    %c0_112 = arith.constant 0 : index
    %514 = vector.load %arg10[%c0_111, %c0_112] : memref<16x96xf32, #tpu.memory_space<vmem>>, vector<16x96xf32>
    %cst_113 = arith.constant dense<0.000000e+00> : vector<64x96xf32>
    %515 = tpu.matmul %1, %514, %cst_113 {dimension_numbers = #tpu.dot_dimension_numbers<[1], [0], [0], [1], [0, 0, 1, 1], [], []>} : vector<64x16xf32>, vector<16x96xf32>, vector<64x96xf32> -> vector<64x96xf32>
    %c0_114 = arith.constant 0 : index
    %c0_115 = arith.constant 0 : index
    %516 = vector.load %arg24[%c0_114, %c0_115] : memref<64x32xf32, #tpu.memory_space<vmem>>, vector<64x32xf32>
    %c0_116 = arith.constant 0 : index
    %c0_117 = arith.constant 0 : index
    %517 = vector.load %arg11[%c0_116, %c0_117] : memref<32x96xf32, #tpu.memory_space<vmem>>, vector<32x96xf32>
    %cst_118 = arith.constant dense<0.000000e+00> : vector<64x96xf32>
    %518 = tpu.matmul %516, %517, %cst_118 {dimension_numbers = #tpu.dot_dimension_numbers<[1], [0], [0], [1], [0, 0, 1, 1], [], []>} : vector<64x32xf32>, vector<32x96xf32>, vector<64x96xf32> -> vector<64x96xf32>
    %519 = arith.addf %515, %518 : vector<64x96xf32>
    %c0_119 = arith.constant 0 : index
    %c0_120 = arith.constant 0 : index
    %520 = vector.load %arg25[%c0_119, %c0_120] : memref<64x32xf32, #tpu.memory_space<vmem>>, vector<64x32xf32>
    %c0_121 = arith.constant 0 : index
    %c0_122 = arith.constant 0 : index
    %521 = vector.load %arg12[%c0_121, %c0_122] : memref<32x96xf32, #tpu.memory_space<vmem>>, vector<32x96xf32>
    %cst_123 = arith.constant dense<0.000000e+00> : vector<64x96xf32>
    %522 = tpu.matmul %520, %521, %cst_123 {dimension_numbers = #tpu.dot_dimension_numbers<[1], [0], [0], [1], [0, 0, 1, 1], [], []>} : vector<64x32xf32>, vector<32x96xf32>, vector<64x96xf32> -> vector<64x96xf32>
    %523 = arith.addf %519, %522 : vector<64x96xf32>
    %c0_124 = arith.constant 0 : index
    %c0_125 = arith.constant 0 : index
    %524 = vector.load %arg14[%c0_124, %c0_125] : memref<1x96xf32, #tpu.memory_space<vmem>>, vector<1x96xf32>
    %525 = vector.broadcast %524 : vector<1x96xf32> to vector<64x96xf32>
    %526 = arith.addf %523, %525 : vector<64x96xf32>
    %c0_126 = arith.constant 0 : index
    %c0_127 = arith.constant 0 : index
    %527 = vector.load %arg13[%c0_126, %c0_127] : memref<32x96xf32, #tpu.memory_space<vmem>>, vector<32x96xf32>
    %c0_128 = arith.constant 0 : index
    %c0_129 = arith.constant 0 : index
    %528 = vector.load %arg15[%c0_128, %c0_129] : memref<1x32xf32, #tpu.memory_space<vmem>>, vector<1x32xf32>
    %cst_130 = arith.constant 0.000000e+00 : f32
    %529 = vector.broadcast %cst_130 : f32 to vector<8x32xf32>
    %530 = vector.extract_strided_slice %526 {offsets = [0, 0], sizes = [8, 96], strides = [1, 1]} : vector<64x96xf32> to vector<8x96xf32>
    %cst_131 = arith.constant dense<0.000000e+00> : vector<8x96xf32>
    %531 = tpu.matmul %529, %527, %cst_131 {dimension_numbers = #tpu.dot_dimension_numbers<[1], [0], [0], [1], [0, 0, 1, 1], [], []>} : vector<8x32xf32>, vector<32x96xf32>, vector<8x96xf32> -> vector<8x96xf32>
    %532 = vector.extract_strided_slice %530 {offsets = [0, 0], sizes = [8, 32], strides = [1, 1]} : vector<8x96xf32> to vector<8x32xf32>
    %533 = vector.extract_strided_slice %531 {offsets = [0, 0], sizes = [8, 32], strides = [1, 1]} : vector<8x96xf32> to vector<8x32xf32>
    %534 = arith.addf %532, %533 : vector<8x32xf32>
    %535 = arith.negf %534 : vector<8x32xf32>
    %536 = math.exp %535 : vector<8x32xf32>
    %cst_132 = arith.constant 1.000000e+00 : f32
    %537 = vector.broadcast %cst_132 : f32 to vector<8x32xf32>
    %538 = arith.addf %537, %536 : vector<8x32xf32>
    %539 = arith.divf %537, %538 : vector<8x32xf32>
    %540 = vector.extract_strided_slice %530 {offsets = [0, 32], sizes = [8, 32], strides = [1, 1]} : vector<8x96xf32> to vector<8x32xf32>
    %541 = vector.extract_strided_slice %531 {offsets = [0, 32], sizes = [8, 32], strides = [1, 1]} : vector<8x96xf32> to vector<8x32xf32>
    %542 = arith.addf %540, %541 : vector<8x32xf32>
    %543 = arith.negf %542 : vector<8x32xf32>
    %544 = math.exp %543 : vector<8x32xf32>
    %cst_133 = arith.constant 1.000000e+00 : f32
    %545 = vector.broadcast %cst_133 : f32 to vector<8x32xf32>
    %546 = arith.addf %545, %544 : vector<8x32xf32>
    %547 = arith.divf %545, %546 : vector<8x32xf32>
    %548 = vector.extract_strided_slice %530 {offsets = [0, 64], sizes = [8, 32], strides = [1, 1]} : vector<8x96xf32> to vector<8x32xf32>
    %549 = vector.extract_strided_slice %531 {offsets = [0, 64], sizes = [8, 32], strides = [1, 1]} : vector<8x96xf32> to vector<8x32xf32>
    %550 = vector.broadcast %528 : vector<1x32xf32> to vector<8x32xf32>
    %551 = arith.addf %549, %550 : vector<8x32xf32>
    %552 = arith.mulf %539, %551 : vector<8x32xf32>
    %553 = arith.addf %548, %552 : vector<8x32xf32>
    %554 = math.tanh %553 : vector<8x32xf32>
    %cst_134 = arith.constant 1.000000e+00 : f32
    %555 = vector.broadcast %cst_134 : f32 to vector<8x32xf32>
    %556 = arith.subf %555, %547 : vector<8x32xf32>
    %557 = arith.mulf %556, %554 : vector<8x32xf32>
    %558 = arith.mulf %547, %529 : vector<8x32xf32>
    %559 = arith.addf %557, %558 : vector<8x32xf32>
    %c0_135 = arith.constant 0 : index
    %c0_136 = arith.constant 0 : index
    %560 = vector.load %arg26[%c0_135, %c0_136] : memref<64x32xf32, #tpu.memory_space<vmem>>, vector<8x32xf32>
    tpu.vector_store %arg26[%c0_135, %c0_136], %559 {strides = array<i32>} : memref<64x32xf32, #tpu.memory_space<vmem>>, vector<8x32xf32>,
    %561 = vector.extract_strided_slice %526 {offsets = [8, 0], sizes = [8, 96], strides = [1, 1]} : vector<64x96xf32> to vector<8x96xf32>
    %cst_137 = arith.constant dense<0.000000e+00> : vector<8x96xf32>
    %562 = tpu.matmul %559, %527, %cst_137 {dimension_numbers = #tpu.dot_dimension_numbers<[1], [0], [0], [1], [0, 0, 1, 1], [], []>} : vector<8x32xf32>, vector<32x96xf32>, vector<8x96xf32> -> vector<8x96xf32>
    %563 = vector.extract_strided_slice %561 {offsets = [0, 0], sizes = [8, 32], strides = [1, 1]} : vector<8x96xf32> to vector<8x32xf32>
    %564 = vector.extract_strided_slice %562 {offsets = [0, 0], sizes = [8, 32], strides = [1, 1]} : vector<8x96xf32> to vector<8x32xf32>
    %565 = arith.addf %563, %564 : vector<8x32xf32>
    %566 = arith.negf %565 : vector<8x32xf32>
    %567 = math.exp %566 : vector<8x32xf32>
    %cst_138 = arith.constant 1.000000e+00 : f32
    %568 = vector.broadcast %cst_138 : f32 to vector<8x32xf32>
    %569 = arith.addf %568, %567 : vector<8x32xf32>
    %570 = arith.divf %568, %569 : vector<8x32xf32>
    %571 = vector.extract_strided_slice %561 {offsets = [0, 32], sizes = [8, 32], strides = [1, 1]} : vector<8x96xf32> to vector<8x32xf32>
    %572 = vector.extract_strided_slice %562 {offsets = [0, 32], sizes = [8, 32], strides = [1, 1]} : vector<8x96xf32> to vector<8x32xf32>
    %573 = arith.addf %571, %572 : vector<8x32xf32>
    %574 = arith.negf %573 : vector<8x32xf32>
    %575 = math.exp %574 : vector<8x32xf32>
    %cst_139 = arith.constant 1.000000e+00 : f32
    %576 = vector.broadcast %cst_139 : f32 to vector<8x32xf32>
    %577 = arith.addf %576, %575 : vector<8x32xf32>
    %578 = arith.divf %576, %577 : vector<8x32xf32>
    %579 = vector.extract_strided_slice %561 {offsets = [0, 64], sizes = [8, 32], strides = [1, 1]} : vector<8x96xf32> to vector<8x32xf32>
    %580 = vector.extract_strided_slice %562 {offsets = [0, 64], sizes = [8, 32], strides = [1, 1]} : vector<8x96xf32> to vector<8x32xf32>
    %581 = vector.broadcast %528 : vector<1x32xf32> to vector<8x32xf32>
    %582 = arith.addf %580, %581 : vector<8x32xf32>
    %583 = arith.mulf %570, %582 : vector<8x32xf32>
    %584 = arith.addf %579, %583 : vector<8x32xf32>
    %585 = math.tanh %584 : vector<8x32xf32>
    %cst_140 = arith.constant 1.000000e+00 : f32
    %586 = vector.broadcast %cst_140 : f32 to vector<8x32xf32>
    %587 = arith.subf %586, %578 : vector<8x32xf32>
    %588 = arith.mulf %587, %585 : vector<8x32xf32>
    %589 = arith.mulf %578, %559 : vector<8x32xf32>
    %590 = arith.addf %588, %589 : vector<8x32xf32>
    %c8_141 = arith.constant 8 : index
    %c0_142 = arith.constant 0 : index
    %591 = vector.load %arg26[%c8_141, %c0_142] : memref<64x32xf32, #tpu.memory_space<vmem>>, vector<8x32xf32>
    tpu.vector_store %arg26[%c8_141, %c0_142], %590 {strides = array<i32>} : memref<64x32xf32, #tpu.memory_space<vmem>>, vector<8x32xf32>,
    %592 = vector.extract_strided_slice %526 {offsets = [16, 0], sizes = [8, 96], strides = [1, 1]} : vector<64x96xf32> to vector<8x96xf32>
    %cst_143 = arith.constant dense<0.000000e+00> : vector<8x96xf32>
    %593 = tpu.matmul %590, %527, %cst_143 {dimension_numbers = #tpu.dot_dimension_numbers<[1], [0], [0], [1], [0, 0, 1, 1], [], []>} : vector<8x32xf32>, vector<32x96xf32>, vector<8x96xf32> -> vector<8x96xf32>
    %594 = vector.extract_strided_slice %592 {offsets = [0, 0], sizes = [8, 32], strides = [1, 1]} : vector<8x96xf32> to vector<8x32xf32>
    %595 = vector.extract_strided_slice %593 {offsets = [0, 0], sizes = [8, 32], strides = [1, 1]} : vector<8x96xf32> to vector<8x32xf32>
    %596 = arith.addf %594, %595 : vector<8x32xf32>
    %597 = arith.negf %596 : vector<8x32xf32>
    %598 = math.exp %597 : vector<8x32xf32>
    %cst_144 = arith.constant 1.000000e+00 : f32
    %599 = vector.broadcast %cst_144 : f32 to vector<8x32xf32>
    %600 = arith.addf %599, %598 : vector<8x32xf32>
    %601 = arith.divf %599, %600 : vector<8x32xf32>
    %602 = vector.extract_strided_slice %592 {offsets = [0, 32], sizes = [8, 32], strides = [1, 1]} : vector<8x96xf32> to vector<8x32xf32>
    %603 = vector.extract_strided_slice %593 {offsets = [0, 32], sizes = [8, 32], strides = [1, 1]} : vector<8x96xf32> to vector<8x32xf32>
    %604 = arith.addf %602, %603 : vector<8x32xf32>
    %605 = arith.negf %604 : vector<8x32xf32>
    %606 = math.exp %605 : vector<8x32xf32>
    %cst_145 = arith.constant 1.000000e+00 : f32
    %607 = vector.broadcast %cst_145 : f32 to vector<8x32xf32>
    %608 = arith.addf %607, %606 : vector<8x32xf32>
    %609 = arith.divf %607, %608 : vector<8x32xf32>
    %610 = vector.extract_strided_slice %592 {offsets = [0, 64], sizes = [8, 32], strides = [1, 1]} : vector<8x96xf32> to vector<8x32xf32>
    %611 = vector.extract_strided_slice %593 {offsets = [0, 64], sizes = [8, 32], strides = [1, 1]} : vector<8x96xf32> to vector<8x32xf32>
    %612 = vector.broadcast %528 : vector<1x32xf32> to vector<8x32xf32>
    %613 = arith.addf %611, %612 : vector<8x32xf32>
    %614 = arith.mulf %601, %613 : vector<8x32xf32>
    %615 = arith.addf %610, %614 : vector<8x32xf32>
    %616 = math.tanh %615 : vector<8x32xf32>
    %cst_146 = arith.constant 1.000000e+00 : f32
    %617 = vector.broadcast %cst_146 : f32 to vector<8x32xf32>
    %618 = arith.subf %617, %609 : vector<8x32xf32>
    %619 = arith.mulf %618, %616 : vector<8x32xf32>
    %620 = arith.mulf %609, %590 : vector<8x32xf32>
    %621 = arith.addf %619, %620 : vector<8x32xf32>
    %c16_147 = arith.constant 16 : index
    %c0_148 = arith.constant 0 : index
    %622 = vector.load %arg26[%c16_147, %c0_148] : memref<64x32xf32, #tpu.memory_space<vmem>>, vector<8x32xf32>
    tpu.vector_store %arg26[%c16_147, %c0_148], %621 {strides = array<i32>} : memref<64x32xf32, #tpu.memory_space<vmem>>, vector<8x32xf32>,
    %623 = vector.extract_strided_slice %526 {offsets = [24, 0], sizes = [8, 96], strides = [1, 1]} : vector<64x96xf32> to vector<8x96xf32>
    %cst_149 = arith.constant dense<0.000000e+00> : vector<8x96xf32>
    %624 = tpu.matmul %621, %527, %cst_149 {dimension_numbers = #tpu.dot_dimension_numbers<[1], [0], [0], [1], [0, 0, 1, 1], [], []>} : vector<8x32xf32>, vector<32x96xf32>, vector<8x96xf32> -> vector<8x96xf32>
    %625 = vector.extract_strided_slice %623 {offsets = [0, 0], sizes = [8, 32], strides = [1, 1]} : vector<8x96xf32> to vector<8x32xf32>
    %626 = vector.extract_strided_slice %624 {offsets = [0, 0], sizes = [8, 32], strides = [1, 1]} : vector<8x96xf32> to vector<8x32xf32>
    %627 = arith.addf %625, %626 : vector<8x32xf32>
    %628 = arith.negf %627 : vector<8x32xf32>
    %629 = math.exp %628 : vector<8x32xf32>
    %cst_150 = arith.constant 1.000000e+00 : f32
    %630 = vector.broadcast %cst_150 : f32 to vector<8x32xf32>
    %631 = arith.addf %630, %629 : vector<8x32xf32>
    %632 = arith.divf %630, %631 : vector<8x32xf32>
    %633 = vector.extract_strided_slice %623 {offsets = [0, 32], sizes = [8, 32], strides = [1, 1]} : vector<8x96xf32> to vector<8x32xf32>
    %634 = vector.extract_strided_slice %624 {offsets = [0, 32], sizes = [8, 32], strides = [1, 1]} : vector<8x96xf32> to vector<8x32xf32>
    %635 = arith.addf %633, %634 : vector<8x32xf32>
    %636 = arith.negf %635 : vector<8x32xf32>
    %637 = math.exp %636 : vector<8x32xf32>
    %cst_151 = arith.constant 1.000000e+00 : f32
    %638 = vector.broadcast %cst_151 : f32 to vector<8x32xf32>
    %639 = arith.addf %638, %637 : vector<8x32xf32>
    %640 = arith.divf %638, %639 : vector<8x32xf32>
    %641 = vector.extract_strided_slice %623 {offsets = [0, 64], sizes = [8, 32], strides = [1, 1]} : vector<8x96xf32> to vector<8x32xf32>
    %642 = vector.extract_strided_slice %624 {offsets = [0, 64], sizes = [8, 32], strides = [1, 1]} : vector<8x96xf32> to vector<8x32xf32>
    %643 = vector.broadcast %528 : vector<1x32xf32> to vector<8x32xf32>
    %644 = arith.addf %642, %643 : vector<8x32xf32>
    %645 = arith.mulf %632, %644 : vector<8x32xf32>
    %646 = arith.addf %641, %645 : vector<8x32xf32>
    %647 = math.tanh %646 : vector<8x32xf32>
    %cst_152 = arith.constant 1.000000e+00 : f32
    %648 = vector.broadcast %cst_152 : f32 to vector<8x32xf32>
    %649 = arith.subf %648, %640 : vector<8x32xf32>
    %650 = arith.mulf %649, %647 : vector<8x32xf32>
    %651 = arith.mulf %640, %621 : vector<8x32xf32>
    %652 = arith.addf %650, %651 : vector<8x32xf32>
    %c24_153 = arith.constant 24 : index
    %c0_154 = arith.constant 0 : index
    %653 = vector.load %arg26[%c24_153, %c0_154] : memref<64x32xf32, #tpu.memory_space<vmem>>, vector<8x32xf32>
    tpu.vector_store %arg26[%c24_153, %c0_154], %652 {strides = array<i32>} : memref<64x32xf32, #tpu.memory_space<vmem>>, vector<8x32xf32>,
    %654 = vector.extract_strided_slice %526 {offsets = [32, 0], sizes = [8, 96], strides = [1, 1]} : vector<64x96xf32> to vector<8x96xf32>
    %cst_155 = arith.constant dense<0.000000e+00> : vector<8x96xf32>
    %655 = tpu.matmul %652, %527, %cst_155 {dimension_numbers = #tpu.dot_dimension_numbers<[1], [0], [0], [1], [0, 0, 1, 1], [], []>} : vector<8x32xf32>, vector<32x96xf32>, vector<8x96xf32> -> vector<8x96xf32>
    %656 = vector.extract_strided_slice %654 {offsets = [0, 0], sizes = [8, 32], strides = [1, 1]} : vector<8x96xf32> to vector<8x32xf32>
    %657 = vector.extract_strided_slice %655 {offsets = [0, 0], sizes = [8, 32], strides = [1, 1]} : vector<8x96xf32> to vector<8x32xf32>
    %658 = arith.addf %656, %657 : vector<8x32xf32>
    %659 = arith.negf %658 : vector<8x32xf32>
    %660 = math.exp %659 : vector<8x32xf32>
    %cst_156 = arith.constant 1.000000e+00 : f32
    %661 = vector.broadcast %cst_156 : f32 to vector<8x32xf32>
    %662 = arith.addf %661, %660 : vector<8x32xf32>
    %663 = arith.divf %661, %662 : vector<8x32xf32>
    %664 = vector.extract_strided_slice %654 {offsets = [0, 32], sizes = [8, 32], strides = [1, 1]} : vector<8x96xf32> to vector<8x32xf32>
    %665 = vector.extract_strided_slice %655 {offsets = [0, 32], sizes = [8, 32], strides = [1, 1]} : vector<8x96xf32> to vector<8x32xf32>
    %666 = arith.addf %664, %665 : vector<8x32xf32>
    %667 = arith.negf %666 : vector<8x32xf32>
    %668 = math.exp %667 : vector<8x32xf32>
    %cst_157 = arith.constant 1.000000e+00 : f32
    %669 = vector.broadcast %cst_157 : f32 to vector<8x32xf32>
    %670 = arith.addf %669, %668 : vector<8x32xf32>
    %671 = arith.divf %669, %670 : vector<8x32xf32>
    %672 = vector.extract_strided_slice %654 {offsets = [0, 64], sizes = [8, 32], strides = [1, 1]} : vector<8x96xf32> to vector<8x32xf32>
    %673 = vector.extract_strided_slice %655 {offsets = [0, 64], sizes = [8, 32], strides = [1, 1]} : vector<8x96xf32> to vector<8x32xf32>
    %674 = vector.broadcast %528 : vector<1x32xf32> to vector<8x32xf32>
    %675 = arith.addf %673, %674 : vector<8x32xf32>
    %676 = arith.mulf %663, %675 : vector<8x32xf32>
    %677 = arith.addf %672, %676 : vector<8x32xf32>
    %678 = math.tanh %677 : vector<8x32xf32>
    %cst_158 = arith.constant 1.000000e+00 : f32
    %679 = vector.broadcast %cst_158 : f32 to vector<8x32xf32>
    %680 = arith.subf %679, %671 : vector<8x32xf32>
    %681 = arith.mulf %680, %678 : vector<8x32xf32>
    %682 = arith.mulf %671, %652 : vector<8x32xf32>
    %683 = arith.addf %681, %682 : vector<8x32xf32>
    %c32_159 = arith.constant 32 : index
    %c0_160 = arith.constant 0 : index
    %684 = vector.load %arg26[%c32_159, %c0_160] : memref<64x32xf32, #tpu.memory_space<vmem>>, vector<8x32xf32>
    tpu.vector_store %arg26[%c32_159, %c0_160], %683 {strides = array<i32>} : memref<64x32xf32, #tpu.memory_space<vmem>>, vector<8x32xf32>,
    %685 = vector.extract_strided_slice %526 {offsets = [40, 0], sizes = [8, 96], strides = [1, 1]} : vector<64x96xf32> to vector<8x96xf32>
    %cst_161 = arith.constant dense<0.000000e+00> : vector<8x96xf32>
    %686 = tpu.matmul %683, %527, %cst_161 {dimension_numbers = #tpu.dot_dimension_numbers<[1], [0], [0], [1], [0, 0, 1, 1], [], []>} : vector<8x32xf32>, vector<32x96xf32>, vector<8x96xf32> -> vector<8x96xf32>
    %687 = vector.extract_strided_slice %685 {offsets = [0, 0], sizes = [8, 32], strides = [1, 1]} : vector<8x96xf32> to vector<8x32xf32>
    %688 = vector.extract_strided_slice %686 {offsets = [0, 0], sizes = [8, 32], strides = [1, 1]} : vector<8x96xf32> to vector<8x32xf32>
    %689 = arith.addf %687, %688 : vector<8x32xf32>
    %690 = arith.negf %689 : vector<8x32xf32>
    %691 = math.exp %690 : vector<8x32xf32>
    %cst_162 = arith.constant 1.000000e+00 : f32
    %692 = vector.broadcast %cst_162 : f32 to vector<8x32xf32>
    %693 = arith.addf %692, %691 : vector<8x32xf32>
    %694 = arith.divf %692, %693 : vector<8x32xf32>
    %695 = vector.extract_strided_slice %685 {offsets = [0, 32], sizes = [8, 32], strides = [1, 1]} : vector<8x96xf32> to vector<8x32xf32>
    %696 = vector.extract_strided_slice %686 {offsets = [0, 32], sizes = [8, 32], strides = [1, 1]} : vector<8x96xf32> to vector<8x32xf32>
    %697 = arith.addf %695, %696 : vector<8x32xf32>
    %698 = arith.negf %697 : vector<8x32xf32>
    %699 = math.exp %698 : vector<8x32xf32>
    %cst_163 = arith.constant 1.000000e+00 : f32
    %700 = vector.broadcast %cst_163 : f32 to vector<8x32xf32>
    %701 = arith.addf %700, %699 : vector<8x32xf32>
    %702 = arith.divf %700, %701 : vector<8x32xf32>
    %703 = vector.extract_strided_slice %685 {offsets = [0, 64], sizes = [8, 32], strides = [1, 1]} : vector<8x96xf32> to vector<8x32xf32>
    %704 = vector.extract_strided_slice %686 {offsets = [0, 64], sizes = [8, 32], strides = [1, 1]} : vector<8x96xf32> to vector<8x32xf32>
    %705 = vector.broadcast %528 : vector<1x32xf32> to vector<8x32xf32>
    %706 = arith.addf %704, %705 : vector<8x32xf32>
    %707 = arith.mulf %694, %706 : vector<8x32xf32>
    %708 = arith.addf %703, %707 : vector<8x32xf32>
    %709 = math.tanh %708 : vector<8x32xf32>
    %cst_164 = arith.constant 1.000000e+00 : f32
    %710 = vector.broadcast %cst_164 : f32 to vector<8x32xf32>
    %711 = arith.subf %710, %702 : vector<8x32xf32>
    %712 = arith.mulf %711, %709 : vector<8x32xf32>
    %713 = arith.mulf %702, %683 : vector<8x32xf32>
    %714 = arith.addf %712, %713 : vector<8x32xf32>
    %c40_165 = arith.constant 40 : index
    %c0_166 = arith.constant 0 : index
    %715 = vector.load %arg26[%c40_165, %c0_166] : memref<64x32xf32, #tpu.memory_space<vmem>>, vector<8x32xf32>
    tpu.vector_store %arg26[%c40_165, %c0_166], %714 {strides = array<i32>} : memref<64x32xf32, #tpu.memory_space<vmem>>, vector<8x32xf32>,
    %716 = vector.extract_strided_slice %526 {offsets = [48, 0], sizes = [8, 96], strides = [1, 1]} : vector<64x96xf32> to vector<8x96xf32>
    %cst_167 = arith.constant dense<0.000000e+00> : vector<8x96xf32>
    %717 = tpu.matmul %714, %527, %cst_167 {dimension_numbers = #tpu.dot_dimension_numbers<[1], [0], [0], [1], [0, 0, 1, 1], [], []>} : vector<8x32xf32>, vector<32x96xf32>, vector<8x96xf32> -> vector<8x96xf32>
    %718 = vector.extract_strided_slice %716 {offsets = [0, 0], sizes = [8, 32], strides = [1, 1]} : vector<8x96xf32> to vector<8x32xf32>
    %719 = vector.extract_strided_slice %717 {offsets = [0, 0], sizes = [8, 32], strides = [1, 1]} : vector<8x96xf32> to vector<8x32xf32>
    %720 = arith.addf %718, %719 : vector<8x32xf32>
    %721 = arith.negf %720 : vector<8x32xf32>
    %722 = math.exp %721 : vector<8x32xf32>
    %cst_168 = arith.constant 1.000000e+00 : f32
    %723 = vector.broadcast %cst_168 : f32 to vector<8x32xf32>
    %724 = arith.addf %723, %722 : vector<8x32xf32>
    %725 = arith.divf %723, %724 : vector<8x32xf32>
    %726 = vector.extract_strided_slice %716 {offsets = [0, 32], sizes = [8, 32], strides = [1, 1]} : vector<8x96xf32> to vector<8x32xf32>
    %727 = vector.extract_strided_slice %717 {offsets = [0, 32], sizes = [8, 32], strides = [1, 1]} : vector<8x96xf32> to vector<8x32xf32>
    %728 = arith.addf %726, %727 : vector<8x32xf32>
    %729 = arith.negf %728 : vector<8x32xf32>
    %730 = math.exp %729 : vector<8x32xf32>
    %cst_169 = arith.constant 1.000000e+00 : f32
    %731 = vector.broadcast %cst_169 : f32 to vector<8x32xf32>
    %732 = arith.addf %731, %730 : vector<8x32xf32>
    %733 = arith.divf %731, %732 : vector<8x32xf32>
    %734 = vector.extract_strided_slice %716 {offsets = [0, 64], sizes = [8, 32], strides = [1, 1]} : vector<8x96xf32> to vector<8x32xf32>
    %735 = vector.extract_strided_slice %717 {offsets = [0, 64], sizes = [8, 32], strides = [1, 1]} : vector<8x96xf32> to vector<8x32xf32>
    %736 = vector.broadcast %528 : vector<1x32xf32> to vector<8x32xf32>
    %737 = arith.addf %735, %736 : vector<8x32xf32>
    %738 = arith.mulf %725, %737 : vector<8x32xf32>
    %739 = arith.addf %734, %738 : vector<8x32xf32>
    %740 = math.tanh %739 : vector<8x32xf32>
    %cst_170 = arith.constant 1.000000e+00 : f32
    %741 = vector.broadcast %cst_170 : f32 to vector<8x32xf32>
    %742 = arith.subf %741, %733 : vector<8x32xf32>
    %743 = arith.mulf %742, %740 : vector<8x32xf32>
    %744 = arith.mulf %733, %714 : vector<8x32xf32>
    %745 = arith.addf %743, %744 : vector<8x32xf32>
    %c48_171 = arith.constant 48 : index
    %c0_172 = arith.constant 0 : index
    %746 = vector.load %arg26[%c48_171, %c0_172] : memref<64x32xf32, #tpu.memory_space<vmem>>, vector<8x32xf32>
    tpu.vector_store %arg26[%c48_171, %c0_172], %745 {strides = array<i32>} : memref<64x32xf32, #tpu.memory_space<vmem>>, vector<8x32xf32>,
    %747 = vector.extract_strided_slice %526 {offsets = [56, 0], sizes = [8, 96], strides = [1, 1]} : vector<64x96xf32> to vector<8x96xf32>
    %cst_173 = arith.constant dense<0.000000e+00> : vector<8x96xf32>
    %748 = tpu.matmul %745, %527, %cst_173 {dimension_numbers = #tpu.dot_dimension_numbers<[1], [0], [0], [1], [0, 0, 1, 1], [], []>} : vector<8x32xf32>, vector<32x96xf32>, vector<8x96xf32> -> vector<8x96xf32>
    %749 = vector.extract_strided_slice %747 {offsets = [0, 0], sizes = [8, 32], strides = [1, 1]} : vector<8x96xf32> to vector<8x32xf32>
    %750 = vector.extract_strided_slice %748 {offsets = [0, 0], sizes = [8, 32], strides = [1, 1]} : vector<8x96xf32> to vector<8x32xf32>
    %751 = arith.addf %749, %750 : vector<8x32xf32>
    %752 = arith.negf %751 : vector<8x32xf32>
    %753 = math.exp %752 : vector<8x32xf32>
    %cst_174 = arith.constant 1.000000e+00 : f32
    %754 = vector.broadcast %cst_174 : f32 to vector<8x32xf32>
    %755 = arith.addf %754, %753 : vector<8x32xf32>
    %756 = arith.divf %754, %755 : vector<8x32xf32>
    %757 = vector.extract_strided_slice %747 {offsets = [0, 32], sizes = [8, 32], strides = [1, 1]} : vector<8x96xf32> to vector<8x32xf32>
    %758 = vector.extract_strided_slice %748 {offsets = [0, 32], sizes = [8, 32], strides = [1, 1]} : vector<8x96xf32> to vector<8x32xf32>
    %759 = arith.addf %757, %758 : vector<8x32xf32>
    %760 = arith.negf %759 : vector<8x32xf32>
    %761 = math.exp %760 : vector<8x32xf32>
    %cst_175 = arith.constant 1.000000e+00 : f32
    %762 = vector.broadcast %cst_175 : f32 to vector<8x32xf32>
    %763 = arith.addf %762, %761 : vector<8x32xf32>
    %764 = arith.divf %762, %763 : vector<8x32xf32>
    %765 = vector.extract_strided_slice %747 {offsets = [0, 64], sizes = [8, 32], strides = [1, 1]} : vector<8x96xf32> to vector<8x32xf32>
    %766 = vector.extract_strided_slice %748 {offsets = [0, 64], sizes = [8, 32], strides = [1, 1]} : vector<8x96xf32> to vector<8x32xf32>
    %767 = vector.broadcast %528 : vector<1x32xf32> to vector<8x32xf32>
    %768 = arith.addf %766, %767 : vector<8x32xf32>
    %769 = arith.mulf %756, %768 : vector<8x32xf32>
    %770 = arith.addf %765, %769 : vector<8x32xf32>
    %771 = math.tanh %770 : vector<8x32xf32>
    %cst_176 = arith.constant 1.000000e+00 : f32
    %772 = vector.broadcast %cst_176 : f32 to vector<8x32xf32>
    %773 = arith.subf %772, %764 : vector<8x32xf32>
    %774 = arith.mulf %773, %771 : vector<8x32xf32>
    %775 = arith.mulf %764, %745 : vector<8x32xf32>
    %776 = arith.addf %774, %775 : vector<8x32xf32>
    %c56_177 = arith.constant 56 : index
    %c0_178 = arith.constant 0 : index
    %777 = vector.load %arg26[%c56_177, %c0_178] : memref<64x32xf32, #tpu.memory_space<vmem>>, vector<8x32xf32>
    tpu.vector_store %arg26[%c56_177, %c0_178], %776 {strides = array<i32>} : memref<64x32xf32, #tpu.memory_space<vmem>>, vector<8x32xf32>,
    %c0_179 = arith.constant 0 : index
    %c0_180 = arith.constant 0 : index
    %778 = vector.load %arg26[%c0_179, %c0_180] : memref<64x32xf32, #tpu.memory_space<vmem>>, vector<64x32xf32>
    %c0_181 = arith.constant 0 : index
    %c0_182 = arith.constant 0 : index
    %779 = vector.load %arg16[%c0_181, %c0_182] : memref<32x96xf32, #tpu.memory_space<vmem>>, vector<32x96xf32>
    %cst_183 = arith.constant dense<0.000000e+00> : vector<64x96xf32>
    %780 = tpu.matmul %778, %779, %cst_183 {dimension_numbers = #tpu.dot_dimension_numbers<[1], [0], [0], [1], [0, 0, 1, 1], [], []>} : vector<64x32xf32>, vector<32x96xf32>, vector<64x96xf32> -> vector<64x96xf32>
    %c0_184 = arith.constant 0 : index
    %c0_185 = arith.constant 0 : index
    %781 = vector.load %arg18[%c0_184, %c0_185] : memref<1x96xf32, #tpu.memory_space<vmem>>, vector<1x96xf32>
    %782 = vector.broadcast %781 : vector<1x96xf32> to vector<64x96xf32>
    %783 = arith.addf %780, %782 : vector<64x96xf32>
    %c0_186 = arith.constant 0 : index
    %c0_187 = arith.constant 0 : index
    %784 = vector.load %arg17[%c0_186, %c0_187] : memref<32x96xf32, #tpu.memory_space<vmem>>, vector<32x96xf32>
    %c0_188 = arith.constant 0 : index
    %c0_189 = arith.constant 0 : index
    %785 = vector.load %arg19[%c0_188, %c0_189] : memref<1x32xf32, #tpu.memory_space<vmem>>, vector<1x32xf32>
    %cst_190 = arith.constant 0.000000e+00 : f32
    %786 = vector.broadcast %cst_190 : f32 to vector<8x32xf32>
    %787 = vector.extract_strided_slice %783 {offsets = [0, 0], sizes = [8, 96], strides = [1, 1]} : vector<64x96xf32> to vector<8x96xf32>
    %cst_191 = arith.constant dense<0.000000e+00> : vector<8x96xf32>
    %788 = tpu.matmul %786, %784, %cst_191 {dimension_numbers = #tpu.dot_dimension_numbers<[1], [0], [0], [1], [0, 0, 1, 1], [], []>} : vector<8x32xf32>, vector<32x96xf32>, vector<8x96xf32> -> vector<8x96xf32>
    %789 = vector.extract_strided_slice %787 {offsets = [0, 0], sizes = [8, 32], strides = [1, 1]} : vector<8x96xf32> to vector<8x32xf32>
    %790 = vector.extract_strided_slice %788 {offsets = [0, 0], sizes = [8, 32], strides = [1, 1]} : vector<8x96xf32> to vector<8x32xf32>
    %791 = arith.addf %789, %790 : vector<8x32xf32>
    %792 = arith.negf %791 : vector<8x32xf32>
    %793 = math.exp %792 : vector<8x32xf32>
    %cst_192 = arith.constant 1.000000e+00 : f32
    %794 = vector.broadcast %cst_192 : f32 to vector<8x32xf32>
    %795 = arith.addf %794, %793 : vector<8x32xf32>
    %796 = arith.divf %794, %795 : vector<8x32xf32>
    %797 = vector.extract_strided_slice %787 {offsets = [0, 32], sizes = [8, 32], strides = [1, 1]} : vector<8x96xf32> to vector<8x32xf32>
    %798 = vector.extract_strided_slice %788 {offsets = [0, 32], sizes = [8, 32], strides = [1, 1]} : vector<8x96xf32> to vector<8x32xf32>
    %799 = arith.addf %797, %798 : vector<8x32xf32>
    %800 = arith.negf %799 : vector<8x32xf32>
    %801 = math.exp %800 : vector<8x32xf32>
    %cst_193 = arith.constant 1.000000e+00 : f32
    %802 = vector.broadcast %cst_193 : f32 to vector<8x32xf32>
    %803 = arith.addf %802, %801 : vector<8x32xf32>
    %804 = arith.divf %802, %803 : vector<8x32xf32>
    %805 = vector.extract_strided_slice %787 {offsets = [0, 64], sizes = [8, 32], strides = [1, 1]} : vector<8x96xf32> to vector<8x32xf32>
    %806 = vector.extract_strided_slice %788 {offsets = [0, 64], sizes = [8, 32], strides = [1, 1]} : vector<8x96xf32> to vector<8x32xf32>
    %807 = vector.broadcast %785 : vector<1x32xf32> to vector<8x32xf32>
    %808 = arith.addf %806, %807 : vector<8x32xf32>
    %809 = arith.mulf %796, %808 : vector<8x32xf32>
    %810 = arith.addf %805, %809 : vector<8x32xf32>
    %811 = math.tanh %810 : vector<8x32xf32>
    %cst_194 = arith.constant 1.000000e+00 : f32
    %812 = vector.broadcast %cst_194 : f32 to vector<8x32xf32>
    %813 = arith.subf %812, %804 : vector<8x32xf32>
    %814 = arith.mulf %813, %811 : vector<8x32xf32>
    %815 = arith.mulf %804, %786 : vector<8x32xf32>
    %816 = arith.addf %814, %815 : vector<8x32xf32>
    %c0_195 = arith.constant 0 : index
    %c0_196 = arith.constant 0 : index
    %817 = vector.load %arg27[%c0_195, %c0_196] : memref<64x32xf32, #tpu.memory_space<vmem>>, vector<8x32xf32>
    tpu.vector_store %arg27[%c0_195, %c0_196], %816 {strides = array<i32>} : memref<64x32xf32, #tpu.memory_space<vmem>>, vector<8x32xf32>,
    %818 = vector.extract_strided_slice %783 {offsets = [8, 0], sizes = [8, 96], strides = [1, 1]} : vector<64x96xf32> to vector<8x96xf32>
    %cst_197 = arith.constant dense<0.000000e+00> : vector<8x96xf32>
    %819 = tpu.matmul %816, %784, %cst_197 {dimension_numbers = #tpu.dot_dimension_numbers<[1], [0], [0], [1], [0, 0, 1, 1], [], []>} : vector<8x32xf32>, vector<32x96xf32>, vector<8x96xf32> -> vector<8x96xf32>
    %820 = vector.extract_strided_slice %818 {offsets = [0, 0], sizes = [8, 32], strides = [1, 1]} : vector<8x96xf32> to vector<8x32xf32>
    %821 = vector.extract_strided_slice %819 {offsets = [0, 0], sizes = [8, 32], strides = [1, 1]} : vector<8x96xf32> to vector<8x32xf32>
    %822 = arith.addf %820, %821 : vector<8x32xf32>
    %823 = arith.negf %822 : vector<8x32xf32>
    %824 = math.exp %823 : vector<8x32xf32>
    %cst_198 = arith.constant 1.000000e+00 : f32
    %825 = vector.broadcast %cst_198 : f32 to vector<8x32xf32>
    %826 = arith.addf %825, %824 : vector<8x32xf32>
    %827 = arith.divf %825, %826 : vector<8x32xf32>
    %828 = vector.extract_strided_slice %818 {offsets = [0, 32], sizes = [8, 32], strides = [1, 1]} : vector<8x96xf32> to vector<8x32xf32>
    %829 = vector.extract_strided_slice %819 {offsets = [0, 32], sizes = [8, 32], strides = [1, 1]} : vector<8x96xf32> to vector<8x32xf32>
    %830 = arith.addf %828, %829 : vector<8x32xf32>
    %831 = arith.negf %830 : vector<8x32xf32>
    %832 = math.exp %831 : vector<8x32xf32>
    %cst_199 = arith.constant 1.000000e+00 : f32
    %833 = vector.broadcast %cst_199 : f32 to vector<8x32xf32>
    %834 = arith.addf %833, %832 : vector<8x32xf32>
    %835 = arith.divf %833, %834 : vector<8x32xf32>
    %836 = vector.extract_strided_slice %818 {offsets = [0, 64], sizes = [8, 32], strides = [1, 1]} : vector<8x96xf32> to vector<8x32xf32>
    %837 = vector.extract_strided_slice %819 {offsets = [0, 64], sizes = [8, 32], strides = [1, 1]} : vector<8x96xf32> to vector<8x32xf32>
    %838 = vector.broadcast %785 : vector<1x32xf32> to vector<8x32xf32>
    %839 = arith.addf %837, %838 : vector<8x32xf32>
    %840 = arith.mulf %827, %839 : vector<8x32xf32>
    %841 = arith.addf %836, %840 : vector<8x32xf32>
    %842 = math.tanh %841 : vector<8x32xf32>
    %cst_200 = arith.constant 1.000000e+00 : f32
    %843 = vector.broadcast %cst_200 : f32 to vector<8x32xf32>
    %844 = arith.subf %843, %835 : vector<8x32xf32>
    %845 = arith.mulf %844, %842 : vector<8x32xf32>
    %846 = arith.mulf %835, %816 : vector<8x32xf32>
    %847 = arith.addf %845, %846 : vector<8x32xf32>
    %c8_201 = arith.constant 8 : index
    %c0_202 = arith.constant 0 : index
    %848 = vector.load %arg27[%c8_201, %c0_202] : memref<64x32xf32, #tpu.memory_space<vmem>>, vector<8x32xf32>
    tpu.vector_store %arg27[%c8_201, %c0_202], %847 {strides = array<i32>} : memref<64x32xf32, #tpu.memory_space<vmem>>, vector<8x32xf32>,
    %849 = vector.extract_strided_slice %783 {offsets = [16, 0], sizes = [8, 96], strides = [1, 1]} : vector<64x96xf32> to vector<8x96xf32>
    %cst_203 = arith.constant dense<0.000000e+00> : vector<8x96xf32>
    %850 = tpu.matmul %847, %784, %cst_203 {dimension_numbers = #tpu.dot_dimension_numbers<[1], [0], [0], [1], [0, 0, 1, 1], [], []>} : vector<8x32xf32>, vector<32x96xf32>, vector<8x96xf32> -> vector<8x96xf32>
    %851 = vector.extract_strided_slice %849 {offsets = [0, 0], sizes = [8, 32], strides = [1, 1]} : vector<8x96xf32> to vector<8x32xf32>
    %852 = vector.extract_strided_slice %850 {offsets = [0, 0], sizes = [8, 32], strides = [1, 1]} : vector<8x96xf32> to vector<8x32xf32>
    %853 = arith.addf %851, %852 : vector<8x32xf32>
    %854 = arith.negf %853 : vector<8x32xf32>
    %855 = math.exp %854 : vector<8x32xf32>
    %cst_204 = arith.constant 1.000000e+00 : f32
    %856 = vector.broadcast %cst_204 : f32 to vector<8x32xf32>
    %857 = arith.addf %856, %855 : vector<8x32xf32>
    %858 = arith.divf %856, %857 : vector<8x32xf32>
    %859 = vector.extract_strided_slice %849 {offsets = [0, 32], sizes = [8, 32], strides = [1, 1]} : vector<8x96xf32> to vector<8x32xf32>
    %860 = vector.extract_strided_slice %850 {offsets = [0, 32], sizes = [8, 32], strides = [1, 1]} : vector<8x96xf32> to vector<8x32xf32>
    %861 = arith.addf %859, %860 : vector<8x32xf32>
    %862 = arith.negf %861 : vector<8x32xf32>
    %863 = math.exp %862 : vector<8x32xf32>
    %cst_205 = arith.constant 1.000000e+00 : f32
    %864 = vector.broadcast %cst_205 : f32 to vector<8x32xf32>
    %865 = arith.addf %864, %863 : vector<8x32xf32>
    %866 = arith.divf %864, %865 : vector<8x32xf32>
    %867 = vector.extract_strided_slice %849 {offsets = [0, 64], sizes = [8, 32], strides = [1, 1]} : vector<8x96xf32> to vector<8x32xf32>
    %868 = vector.extract_strided_slice %850 {offsets = [0, 64], sizes = [8, 32], strides = [1, 1]} : vector<8x96xf32> to vector<8x32xf32>
    %869 = vector.broadcast %785 : vector<1x32xf32> to vector<8x32xf32>
    %870 = arith.addf %868, %869 : vector<8x32xf32>
    %871 = arith.mulf %858, %870 : vector<8x32xf32>
    %872 = arith.addf %867, %871 : vector<8x32xf32>
    %873 = math.tanh %872 : vector<8x32xf32>
    %cst_206 = arith.constant 1.000000e+00 : f32
    %874 = vector.broadcast %cst_206 : f32 to vector<8x32xf32>
    %875 = arith.subf %874, %866 : vector<8x32xf32>
    %876 = arith.mulf %875, %873 : vector<8x32xf32>
    %877 = arith.mulf %866, %847 : vector<8x32xf32>
    %878 = arith.addf %876, %877 : vector<8x32xf32>
    %c16_207 = arith.constant 16 : index
    %c0_208 = arith.constant 0 : index
    %879 = vector.load %arg27[%c16_207, %c0_208] : memref<64x32xf32, #tpu.memory_space<vmem>>, vector<8x32xf32>
    tpu.vector_store %arg27[%c16_207, %c0_208], %878 {strides = array<i32>} : memref<64x32xf32, #tpu.memory_space<vmem>>, vector<8x32xf32>,
    %880 = vector.extract_strided_slice %783 {offsets = [24, 0], sizes = [8, 96], strides = [1, 1]} : vector<64x96xf32> to vector<8x96xf32>
    %cst_209 = arith.constant dense<0.000000e+00> : vector<8x96xf32>
    %881 = tpu.matmul %878, %784, %cst_209 {dimension_numbers = #tpu.dot_dimension_numbers<[1], [0], [0], [1], [0, 0, 1, 1], [], []>} : vector<8x32xf32>, vector<32x96xf32>, vector<8x96xf32> -> vector<8x96xf32>
    %882 = vector.extract_strided_slice %880 {offsets = [0, 0], sizes = [8, 32], strides = [1, 1]} : vector<8x96xf32> to vector<8x32xf32>
    %883 = vector.extract_strided_slice %881 {offsets = [0, 0], sizes = [8, 32], strides = [1, 1]} : vector<8x96xf32> to vector<8x32xf32>
    %884 = arith.addf %882, %883 : vector<8x32xf32>
    %885 = arith.negf %884 : vector<8x32xf32>
    %886 = math.exp %885 : vector<8x32xf32>
    %cst_210 = arith.constant 1.000000e+00 : f32
    %887 = vector.broadcast %cst_210 : f32 to vector<8x32xf32>
    %888 = arith.addf %887, %886 : vector<8x32xf32>
    %889 = arith.divf %887, %888 : vector<8x32xf32>
    %890 = vector.extract_strided_slice %880 {offsets = [0, 32], sizes = [8, 32], strides = [1, 1]} : vector<8x96xf32> to vector<8x32xf32>
    %891 = vector.extract_strided_slice %881 {offsets = [0, 32], sizes = [8, 32], strides = [1, 1]} : vector<8x96xf32> to vector<8x32xf32>
    %892 = arith.addf %890, %891 : vector<8x32xf32>
    %893 = arith.negf %892 : vector<8x32xf32>
    %894 = math.exp %893 : vector<8x32xf32>
    %cst_211 = arith.constant 1.000000e+00 : f32
    %895 = vector.broadcast %cst_211 : f32 to vector<8x32xf32>
    %896 = arith.addf %895, %894 : vector<8x32xf32>
    %897 = arith.divf %895, %896 : vector<8x32xf32>
    %898 = vector.extract_strided_slice %880 {offsets = [0, 64], sizes = [8, 32], strides = [1, 1]} : vector<8x96xf32> to vector<8x32xf32>
    %899 = vector.extract_strided_slice %881 {offsets = [0, 64], sizes = [8, 32], strides = [1, 1]} : vector<8x96xf32> to vector<8x32xf32>
    %900 = vector.broadcast %785 : vector<1x32xf32> to vector<8x32xf32>
    %901 = arith.addf %899, %900 : vector<8x32xf32>
    %902 = arith.mulf %889, %901 : vector<8x32xf32>
    %903 = arith.addf %898, %902 : vector<8x32xf32>
    %904 = math.tanh %903 : vector<8x32xf32>
    %cst_212 = arith.constant 1.000000e+00 : f32
    %905 = vector.broadcast %cst_212 : f32 to vector<8x32xf32>
    %906 = arith.subf %905, %897 : vector<8x32xf32>
    %907 = arith.mulf %906, %904 : vector<8x32xf32>
    %908 = arith.mulf %897, %878 : vector<8x32xf32>
    %909 = arith.addf %907, %908 : vector<8x32xf32>
    %c24_213 = arith.constant 24 : index
    %c0_214 = arith.constant 0 : index
    %910 = vector.load %arg27[%c24_213, %c0_214] : memref<64x32xf32, #tpu.memory_space<vmem>>, vector<8x32xf32>
    tpu.vector_store %arg27[%c24_213, %c0_214], %909 {strides = array<i32>} : memref<64x32xf32, #tpu.memory_space<vmem>>, vector<8x32xf32>,
    %911 = vector.extract_strided_slice %783 {offsets = [32, 0], sizes = [8, 96], strides = [1, 1]} : vector<64x96xf32> to vector<8x96xf32>
    %cst_215 = arith.constant dense<0.000000e+00> : vector<8x96xf32>
    %912 = tpu.matmul %909, %784, %cst_215 {dimension_numbers = #tpu.dot_dimension_numbers<[1], [0], [0], [1], [0, 0, 1, 1], [], []>} : vector<8x32xf32>, vector<32x96xf32>, vector<8x96xf32> -> vector<8x96xf32>
    %913 = vector.extract_strided_slice %911 {offsets = [0, 0], sizes = [8, 32], strides = [1, 1]} : vector<8x96xf32> to vector<8x32xf32>
    %914 = vector.extract_strided_slice %912 {offsets = [0, 0], sizes = [8, 32], strides = [1, 1]} : vector<8x96xf32> to vector<8x32xf32>
    %915 = arith.addf %913, %914 : vector<8x32xf32>
    %916 = arith.negf %915 : vector<8x32xf32>
    %917 = math.exp %916 : vector<8x32xf32>
    %cst_216 = arith.constant 1.000000e+00 : f32
    %918 = vector.broadcast %cst_216 : f32 to vector<8x32xf32>
    %919 = arith.addf %918, %917 : vector<8x32xf32>
    %920 = arith.divf %918, %919 : vector<8x32xf32>
    %921 = vector.extract_strided_slice %911 {offsets = [0, 32], sizes = [8, 32], strides = [1, 1]} : vector<8x96xf32> to vector<8x32xf32>
    %922 = vector.extract_strided_slice %912 {offsets = [0, 32], sizes = [8, 32], strides = [1, 1]} : vector<8x96xf32> to vector<8x32xf32>
    %923 = arith.addf %921, %922 : vector<8x32xf32>
    %924 = arith.negf %923 : vector<8x32xf32>
    %925 = math.exp %924 : vector<8x32xf32>
    %cst_217 = arith.constant 1.000000e+00 : f32
    %926 = vector.broadcast %cst_217 : f32 to vector<8x32xf32>
    %927 = arith.addf %926, %925 : vector<8x32xf32>
    %928 = arith.divf %926, %927 : vector<8x32xf32>
    %929 = vector.extract_strided_slice %911 {offsets = [0, 64], sizes = [8, 32], strides = [1, 1]} : vector<8x96xf32> to vector<8x32xf32>
    %930 = vector.extract_strided_slice %912 {offsets = [0, 64], sizes = [8, 32], strides = [1, 1]} : vector<8x96xf32> to vector<8x32xf32>
    %931 = vector.broadcast %785 : vector<1x32xf32> to vector<8x32xf32>
    %932 = arith.addf %930, %931 : vector<8x32xf32>
    %933 = arith.mulf %920, %932 : vector<8x32xf32>
    %934 = arith.addf %929, %933 : vector<8x32xf32>
    %935 = math.tanh %934 : vector<8x32xf32>
    %cst_218 = arith.constant 1.000000e+00 : f32
    %936 = vector.broadcast %cst_218 : f32 to vector<8x32xf32>
    %937 = arith.subf %936, %928 : vector<8x32xf32>
    %938 = arith.mulf %937, %935 : vector<8x32xf32>
    %939 = arith.mulf %928, %909 : vector<8x32xf32>
    %940 = arith.addf %938, %939 : vector<8x32xf32>
    %c32_219 = arith.constant 32 : index
    %c0_220 = arith.constant 0 : index
    %941 = vector.load %arg27[%c32_219, %c0_220] : memref<64x32xf32, #tpu.memory_space<vmem>>, vector<8x32xf32>
    tpu.vector_store %arg27[%c32_219, %c0_220], %940 {strides = array<i32>} : memref<64x32xf32, #tpu.memory_space<vmem>>, vector<8x32xf32>,
    %942 = vector.extract_strided_slice %783 {offsets = [40, 0], sizes = [8, 96], strides = [1, 1]} : vector<64x96xf32> to vector<8x96xf32>
    %cst_221 = arith.constant dense<0.000000e+00> : vector<8x96xf32>
    %943 = tpu.matmul %940, %784, %cst_221 {dimension_numbers = #tpu.dot_dimension_numbers<[1], [0], [0], [1], [0, 0, 1, 1], [], []>} : vector<8x32xf32>, vector<32x96xf32>, vector<8x96xf32> -> vector<8x96xf32>
    %944 = vector.extract_strided_slice %942 {offsets = [0, 0], sizes = [8, 32], strides = [1, 1]} : vector<8x96xf32> to vector<8x32xf32>
    %945 = vector.extract_strided_slice %943 {offsets = [0, 0], sizes = [8, 32], strides = [1, 1]} : vector<8x96xf32> to vector<8x32xf32>
    %946 = arith.addf %944, %945 : vector<8x32xf32>
    %947 = arith.negf %946 : vector<8x32xf32>
    %948 = math.exp %947 : vector<8x32xf32>
    %cst_222 = arith.constant 1.000000e+00 : f32
    %949 = vector.broadcast %cst_222 : f32 to vector<8x32xf32>
    %950 = arith.addf %949, %948 : vector<8x32xf32>
    %951 = arith.divf %949, %950 : vector<8x32xf32>
    %952 = vector.extract_strided_slice %942 {offsets = [0, 32], sizes = [8, 32], strides = [1, 1]} : vector<8x96xf32> to vector<8x32xf32>
    %953 = vector.extract_strided_slice %943 {offsets = [0, 32], sizes = [8, 32], strides = [1, 1]} : vector<8x96xf32> to vector<8x32xf32>
    %954 = arith.addf %952, %953 : vector<8x32xf32>
    %955 = arith.negf %954 : vector<8x32xf32>
    %956 = math.exp %955 : vector<8x32xf32>
    %cst_223 = arith.constant 1.000000e+00 : f32
    %957 = vector.broadcast %cst_223 : f32 to vector<8x32xf32>
    %958 = arith.addf %957, %956 : vector<8x32xf32>
    %959 = arith.divf %957, %958 : vector<8x32xf32>
    %960 = vector.extract_strided_slice %942 {offsets = [0, 64], sizes = [8, 32], strides = [1, 1]} : vector<8x96xf32> to vector<8x32xf32>
    %961 = vector.extract_strided_slice %943 {offsets = [0, 64], sizes = [8, 32], strides = [1, 1]} : vector<8x96xf32> to vector<8x32xf32>
    %962 = vector.broadcast %785 : vector<1x32xf32> to vector<8x32xf32>
    %963 = arith.addf %961, %962 : vector<8x32xf32>
    %964 = arith.mulf %951, %963 : vector<8x32xf32>
    %965 = arith.addf %960, %964 : vector<8x32xf32>
    %966 = math.tanh %965 : vector<8x32xf32>
    %cst_224 = arith.constant 1.000000e+00 : f32
    %967 = vector.broadcast %cst_224 : f32 to vector<8x32xf32>
    %968 = arith.subf %967, %959 : vector<8x32xf32>
    %969 = arith.mulf %968, %966 : vector<8x32xf32>
    %970 = arith.mulf %959, %940 : vector<8x32xf32>
    %971 = arith.addf %969, %970 : vector<8x32xf32>
    %c40_225 = arith.constant 40 : index
    %c0_226 = arith.constant 0 : index
    %972 = vector.load %arg27[%c40_225, %c0_226] : memref<64x32xf32, #tpu.memory_space<vmem>>, vector<8x32xf32>
    tpu.vector_store %arg27[%c40_225, %c0_226], %971 {strides = array<i32>} : memref<64x32xf32, #tpu.memory_space<vmem>>, vector<8x32xf32>,
    %973 = vector.extract_strided_slice %783 {offsets = [48, 0], sizes = [8, 96], strides = [1, 1]} : vector<64x96xf32> to vector<8x96xf32>
    %cst_227 = arith.constant dense<0.000000e+00> : vector<8x96xf32>
    %974 = tpu.matmul %971, %784, %cst_227 {dimension_numbers = #tpu.dot_dimension_numbers<[1], [0], [0], [1], [0, 0, 1, 1], [], []>} : vector<8x32xf32>, vector<32x96xf32>, vector<8x96xf32> -> vector<8x96xf32>
    %975 = vector.extract_strided_slice %973 {offsets = [0, 0], sizes = [8, 32], strides = [1, 1]} : vector<8x96xf32> to vector<8x32xf32>
    %976 = vector.extract_strided_slice %974 {offsets = [0, 0], sizes = [8, 32], strides = [1, 1]} : vector<8x96xf32> to vector<8x32xf32>
    %977 = arith.addf %975, %976 : vector<8x32xf32>
    %978 = arith.negf %977 : vector<8x32xf32>
    %979 = math.exp %978 : vector<8x32xf32>
    %cst_228 = arith.constant 1.000000e+00 : f32
    %980 = vector.broadcast %cst_228 : f32 to vector<8x32xf32>
    %981 = arith.addf %980, %979 : vector<8x32xf32>
    %982 = arith.divf %980, %981 : vector<8x32xf32>
    %983 = vector.extract_strided_slice %973 {offsets = [0, 32], sizes = [8, 32], strides = [1, 1]} : vector<8x96xf32> to vector<8x32xf32>
    %984 = vector.extract_strided_slice %974 {offsets = [0, 32], sizes = [8, 32], strides = [1, 1]} : vector<8x96xf32> to vector<8x32xf32>
    %985 = arith.addf %983, %984 : vector<8x32xf32>
    %986 = arith.negf %985 : vector<8x32xf32>
    %987 = math.exp %986 : vector<8x32xf32>
    %cst_229 = arith.constant 1.000000e+00 : f32
    %988 = vector.broadcast %cst_229 : f32 to vector<8x32xf32>
    %989 = arith.addf %988, %987 : vector<8x32xf32>
    %990 = arith.divf %988, %989 : vector<8x32xf32>
    %991 = vector.extract_strided_slice %973 {offsets = [0, 64], sizes = [8, 32], strides = [1, 1]} : vector<8x96xf32> to vector<8x32xf32>
    %992 = vector.extract_strided_slice %974 {offsets = [0, 64], sizes = [8, 32], strides = [1, 1]} : vector<8x96xf32> to vector<8x32xf32>
    %993 = vector.broadcast %785 : vector<1x32xf32> to vector<8x32xf32>
    %994 = arith.addf %992, %993 : vector<8x32xf32>
    %995 = arith.mulf %982, %994 : vector<8x32xf32>
    %996 = arith.addf %991, %995 : vector<8x32xf32>
    %997 = math.tanh %996 : vector<8x32xf32>
    %cst_230 = arith.constant 1.000000e+00 : f32
    %998 = vector.broadcast %cst_230 : f32 to vector<8x32xf32>
    %999 = arith.subf %998, %990 : vector<8x32xf32>
    %1000 = arith.mulf %999, %997 : vector<8x32xf32>
    %1001 = arith.mulf %990, %971 : vector<8x32xf32>
    %1002 = arith.addf %1000, %1001 : vector<8x32xf32>
    %c48_231 = arith.constant 48 : index
    %c0_232 = arith.constant 0 : index
    %1003 = vector.load %arg27[%c48_231, %c0_232] : memref<64x32xf32, #tpu.memory_space<vmem>>, vector<8x32xf32>
    tpu.vector_store %arg27[%c48_231, %c0_232], %1002 {strides = array<i32>} : memref<64x32xf32, #tpu.memory_space<vmem>>, vector<8x32xf32>,
    %1004 = vector.extract_strided_slice %783 {offsets = [56, 0], sizes = [8, 96], strides = [1, 1]} : vector<64x96xf32> to vector<8x96xf32>
    %cst_233 = arith.constant dense<0.000000e+00> : vector<8x96xf32>
    %1005 = tpu.matmul %1002, %784, %cst_233 {dimension_numbers = #tpu.dot_dimension_numbers<[1], [0], [0], [1], [0, 0, 1, 1], [], []>} : vector<8x32xf32>, vector<32x96xf32>, vector<8x96xf32> -> vector<8x96xf32>
    %1006 = vector.extract_strided_slice %1004 {offsets = [0, 0], sizes = [8, 32], strides = [1, 1]} : vector<8x96xf32> to vector<8x32xf32>
    %1007 = vector.extract_strided_slice %1005 {offsets = [0, 0], sizes = [8, 32], strides = [1, 1]} : vector<8x96xf32> to vector<8x32xf32>
    %1008 = arith.addf %1006, %1007 : vector<8x32xf32>
    %1009 = arith.negf %1008 : vector<8x32xf32>
    %1010 = math.exp %1009 : vector<8x32xf32>
    %cst_234 = arith.constant 1.000000e+00 : f32
    %1011 = vector.broadcast %cst_234 : f32 to vector<8x32xf32>
    %1012 = arith.addf %1011, %1010 : vector<8x32xf32>
    %1013 = arith.divf %1011, %1012 : vector<8x32xf32>
    %1014 = vector.extract_strided_slice %1004 {offsets = [0, 32], sizes = [8, 32], strides = [1, 1]} : vector<8x96xf32> to vector<8x32xf32>
    %1015 = vector.extract_strided_slice %1005 {offsets = [0, 32], sizes = [8, 32], strides = [1, 1]} : vector<8x96xf32> to vector<8x32xf32>
    %1016 = arith.addf %1014, %1015 : vector<8x32xf32>
    %1017 = arith.negf %1016 : vector<8x32xf32>
    %1018 = math.exp %1017 : vector<8x32xf32>
    %cst_235 = arith.constant 1.000000e+00 : f32
    %1019 = vector.broadcast %cst_235 : f32 to vector<8x32xf32>
    %1020 = arith.addf %1019, %1018 : vector<8x32xf32>
    %1021 = arith.divf %1019, %1020 : vector<8x32xf32>
    %1022 = vector.extract_strided_slice %1004 {offsets = [0, 64], sizes = [8, 32], strides = [1, 1]} : vector<8x96xf32> to vector<8x32xf32>
    %1023 = vector.extract_strided_slice %1005 {offsets = [0, 64], sizes = [8, 32], strides = [1, 1]} : vector<8x96xf32> to vector<8x32xf32>
    %1024 = vector.broadcast %785 : vector<1x32xf32> to vector<8x32xf32>
    %1025 = arith.addf %1023, %1024 : vector<8x32xf32>
    %1026 = arith.mulf %1013, %1025 : vector<8x32xf32>
    %1027 = arith.addf %1022, %1026 : vector<8x32xf32>
    %1028 = math.tanh %1027 : vector<8x32xf32>
    %cst_236 = arith.constant 1.000000e+00 : f32
    %1029 = vector.broadcast %cst_236 : f32 to vector<8x32xf32>
    %1030 = arith.subf %1029, %1021 : vector<8x32xf32>
    %1031 = arith.mulf %1030, %1028 : vector<8x32xf32>
    %1032 = arith.mulf %1021, %1002 : vector<8x32xf32>
    %1033 = arith.addf %1031, %1032 : vector<8x32xf32>
    %c56_237 = arith.constant 56 : index
    %c0_238 = arith.constant 0 : index
    %1034 = vector.load %arg27[%c56_237, %c0_238] : memref<64x32xf32, #tpu.memory_space<vmem>>, vector<8x32xf32>
    tpu.vector_store %arg27[%c56_237, %c0_238], %1033 {strides = array<i32>} : memref<64x32xf32, #tpu.memory_space<vmem>>, vector<8x32xf32>,
    %c0_239 = arith.constant 0 : index
    %c0_240 = arith.constant 0 : index
    %1035 = vector.load %arg27[%c0_239, %c0_240] : memref<64x32xf32, #tpu.memory_space<vmem>>, vector<64x32xf32>
    %c0_241 = arith.constant 0 : index
    %c0_242 = arith.constant 0 : index
    %1036 = vector.load %arg20[%c0_241, %c0_242] : memref<32x128xf32, #tpu.memory_space<vmem>>, vector<32x128xf32>
    %cst_243 = arith.constant dense<0.000000e+00> : vector<64x128xf32>
    %1037 = tpu.matmul %1035, %1036, %cst_243 {dimension_numbers = #tpu.dot_dimension_numbers<[1], [0], [0], [1], [0, 0, 1, 1], [], []>} : vector<64x32xf32>, vector<32x128xf32>, vector<64x128xf32> -> vector<64x128xf32>
    %c0_244 = arith.constant 0 : index
    %c0_245 = arith.constant 0 : index
    %1038 = vector.load %arg21[%c0_244, %c0_245] : memref<1x128xf32, #tpu.memory_space<vmem>>, vector<1x128xf32>
    %1039 = vector.broadcast %1038 : vector<1x128xf32> to vector<64x128xf32>
    %1040 = arith.addf %1037, %1039 : vector<64x128xf32>
    %c0_246 = arith.constant 0 : index
    %c0_247 = arith.constant 0 : index
    %1041 = vector.load %arg22[%c0_246, %c0_247] : memref<64x128xf32, #tpu.memory_space<vmem>>, vector<64x128xf32>
    tpu.vector_store %arg22[%c0_246, %c0_247], %1040 {strides = array<i32>} : memref<64x128xf32, #tpu.memory_space<vmem>>, vector<64x128xf32>,
    %1042 = tpu.iota {dimensions = array<i32: 1>} : vector<64x128xi32>
    %c12_i32 = arith.constant 12 : i32
    %1043 = vector.broadcast %c12_i32 : i32 to vector<64x128xi32>
    %1044 = arith.cmpi slt, %1042, %1043 : vector<64x128xi32>
    %cst_248 = arith.constant 0xFF800000 : f32
    %1045 = vector.broadcast %cst_248 : f32 to vector<64x128xf32>
    %1046 = arith.select %1044, %1040, %1045 : vector<64x128xi1>, vector<64x128xf32>
    %cst_249 = arith.constant dense<0xFF800000> : vector<64xf32>
    %1047 = vector.multi_reduction <maximumf>, %1046, %cst_249 [1] : vector<64x128xf32> to vector<64xf32>
    %1048 = vector.shape_cast %1047 : vector<64xf32> to vector<64x1xf32>
    %1049 = vector.broadcast %1048 : vector<64x1xf32> to vector<64x128xf32>
    %1050 = arith.cmpf oeq, %1046, %1049 : vector<64x128xf32>
    %c2147483647_i32 = arith.constant 2147483647 : i32
    %1051 = vector.broadcast %c2147483647_i32 : i32 to vector<64x128xi32>
    %1052 = arith.select %1050, %1042, %1051 : vector<64x128xi1>, vector<64x128xi32>
    %cst_250 = arith.constant dense<2147483647> : vector<64xi32>
    %1053 = vector.multi_reduction <minsi>, %1052, %cst_250 [1] : vector<64x128xi32> to vector<64xi32>
    %1054 = vector.shape_cast %1053 : vector<64xi32> to vector<64x1xi32>
    %c0_251 = arith.constant 0 : index
    %c0_252 = arith.constant 0 : index
    %1055 = vector.load %arg23[%c0_251, %c0_252] : memref<64x1xi32, #tpu.memory_space<vmem>>, vector<64x1xi32>
    tpu.vector_store %arg23[%c0_251, %c0_252], %1054 {strides = array<i32>} : memref<64x1xi32, #tpu.memory_space<vmem>>, vector<64x1xi32>,
    return
  }
}

</mosaic_0001>

<bundles_post_ra>
// kernel: _forward_jit.1
= control target key start
LH: loop header
LB: loop body
LE: loop exit
PB: predicated region body
PF: predicated region fallthrough
CT: control target
= control target key end

     0   :  { %vm95_vm0 = vcmask 130048   ;;  %v3308_v8 = vmov 0.0   ;;  %vm218_vm5 = vcmask 261120   ;;  %s4440_s6 = inlined_call_operand.vmem [shape: f32[16,96], index: 6, kind: input, shape index: {}]   ;;  %s4441_s7 = inlined_call_operand.vmem [shape: f32[32,96], index: 7, kind: input, shape index: {}]   ;;  %s4442_s0 = inlined_call_operand.vmem [shape: f32[64,16], index: 0, kind: input, shape index: {}]   ;;  %s4443_s9 = inlined_call_operand.vmem [shape: f32[1,32], index: 9, kind: input, shape index: {}]   ;;  %s4444_s8 = inlined_call_operand.vmem [shape: f32[1,96], index: 8, kind: input, shape index: {}]   ;;  %s4445_s2 = inlined_call_operand.vmem [shape: f32[16,96], index: 2, kind: input, shape index: {}]   ;;  %s4446_s3 = inlined_call_operand.vmem [shape: f32[32,96], index: 3, kind: input, shape index: {}]   ;;  %s4447_s5 = inlined_call_operand.vmem [shape: f32[1,32], index: 5, kind: input, shape index: {}]   ;;  %s4448_s4 = inlined_call_operand.vmem [shape: f32[1,96], index: 4, kind: input, shape index: {}]   ;;  %s4449_s11 = inlined_call_operand.vmem [shape: f32[32,96], index: 11, kind: input, shape index: {}]   ;;  %s4450_s10 = inlined_call_operand.vmem [shape: f32[16,96], index: 10, kind: input, shape index: {}]   ;;  %s4451_s1 = inlined_call_operand.vmem [shape: f32[64,16], index: 1, kind: input, shape index: {}]   ;;  %s4452_s15 = inlined_call_operand.vmem [shape: f32[1,32], index: 15, kind: input, shape index: {}]   ;;  %s4453_s13 = inlined_call_operand.vmem [shape: f32[32,96], index: 13, kind: input, shape index: {}]   ;;  %s4454_s14 = inlined_call_operand.vmem [shape: f32[1,96], index: 14, kind: input, shape index: {}]   ;;  %s4455_s12 = inlined_call_operand.vmem [shape: f32[32,96], index: 12, kind: input, shape index: {}]   ;;  %s4456_s19 = inlined_call_operand.vmem [shape: f32[1,32], index: 19, kind: input, shape index: {}]   ;;  %s4457_s17 = inlined_call_operand.vmem [shape: f32[32,96], index: 17, kind: input, shape index: {}]   ;;  %s4458_s16 = inlined_call_operand.vmem [shape: f32[32,96], index: 16, kind: input, shape index: {}]   ;;  %s4459_s18 = inlined_call_operand.vmem [shape: f32[1,96], index: 18, kind: input, shape index: {}]   ;;  %s4460_s20 = inlined_call_operand.vmem [shape: f32[32,128], index: 20, kind: input, shape index: {}]   ;;  %s4461_s21 = inlined_call_operand.vmem [shape: f32[1,128], index: 21, kind: input, shape index: {}]   ;;  %s4462_s22 = inlined_call_operand.vmem [shape: f32[64,128], index: 22, kind: output, shape index: {0}]   ;;  %s4463_s23 = inlined_call_operand.vmem [shape: s32[64,1], index: 23, kind: output, shape index: {1}]  }
   0x1   :  { %4470 = sst [smem:[#allocation6_spill]] %s4440_s6 }
   0x2   :  { %4471 = sst [smem:[#allocation7_spill]] %s4441_s7 }
   0x3   :  { %4472 = sst [smem:[#allocation8_spill]] %s4442_s0 }
   0x4   :  { %4473 = sst [smem:[#allocation9_spill]] %s4443_s9 }
   0x5   :  { %4474 = sst [smem:[#allocation10_spill]] %s4444_s8 }
   0x6   :  { %4475 = sst [smem:[#allocation11_spill]] %s4445_s2  ;;  %s3307_s2 = smov 64  }
   0x7   :  { %4476 = sst [smem:[#allocation12_spill]] %s4446_s3 }
   0x8   :  { %4477 = sst [smem:[#allocation13_spill]] %s4447_s5 }
   0x9   :  { %4478 = sst [smem:[#allocation14_spill]] %s4458_s16 }
   0xa   :  { %s4479_s24 = sld [smem:[#allocation6_spill]] }
   0xb   :  { %s4480_s16 = sld [smem:[#allocation7_spill]] }
   0xc   :  { %s4481_s28 = sld [smem:[#allocation8_spill]] }
   0xd   :  { %s4482_s30 = sld [smem:[#allocation9_spill]] }
   0xe   :  { %s4483_s3 = sld [smem:[#allocation10_spill]] }
   0xf   :  { %s4484_s5 = sld [smem:[#allocation11_spill]] }
  0x10   :  { %v162_v0 = vld [vmem:[%s4479_s24 + $0x8] sm:$0xff]  ;;  %v161_v2 = vld [vmem:[%s4479_s24] sm:$0xff]  ;;  %s4486_s29 = sld [smem:[#allocation13_spill]] }
  0x11   :  { %v3436_v1 = vld [vmem:[%s4480_s16 + $0x18] sm:$0xff]  ;;  %181 = vmatpush.msra.mxu1 %v162_v0  ;;  %v3445_v3 = vld [vmem:[%s4480_s16 + $0x10] sm:$0xff]  ;;  %v3455_v5 = vld [vmem:[%s4480_s16 + $0x8] sm:$0xff] }
  0x12   :  { %299 = vmatpush.msra.mxu3 %v3436_v1  ;;  %v3450_v4 = vld [vmem:[%s4481_s28] sm:$0xff]  ;;  %v3475_v9 = vld [vmem:[%s4481_s28 + $0x8] sm:$0xff]  ;;  %v3487_v10 = vld [vmem:[%s4481_s28 + $0x10] sm:$0xff] }
  0x13   :  { %182 = vmatpush.msra.mxu1 %v161_v2  ;;  %v3096_v6 = vld [vmem:[%s4482_s30] ss:$0 sm:$0xff]  ;;  %v3497_v11 = vld [vmem:[%s4481_s28 + $0x18] sm:$0xff]  ;;  %v3511_v13 = vld [vmem:[%s4481_s28 + $0x28] sm:$0xff]  ;;  %s4485_s30 = sld [smem:[#allocation12_spill]] }
  0x14   :  { %300 = vmatpush.msra.mxu3 %v3445_v3  ;;  %2979 = vmatmul.msk.f32.vlgmr.msra.gmra.mxu1 %vm95_vm0, %v3450_v4  ;;  %v3466_v7 = vld [vmem:[%s4480_s16] sm:$0xff]  ;;  %v3518_v14 = vld [vmem:[%s4481_s28 + $0x30] sm:$0xff]  ;;  %v80_v15 = vld [vmem:[%s4481_s28 + $0x38] sm:$0xff] }
  0x15   :  { %329 = vrot.lane.b32.xlu0 %v3096_v6, %s3307_s2  ;;  %v3504_v12 = vld [vmem:[%s4481_s28 + $0x20] sm:$0xff]  ;;  %v90_v52 = vld [vmem:[%s4484_s5 + $0x8] sm:$0xff]  ;;  %s3309_s28 = smov 96  }
  0x16   :  { %301 = vmatpush.msra.mxu3 %v3455_v5  ;;  %v3097_v16 = vld [vmem:[%s4483_s3] ss:$0 sm:$0xff]  ;;  %3087 = vmatpush.msra.mxu2 %v90_v52 }
  0x17   :  { %v89_v53 = vld [vmem:[%s4484_s5] sm:$0xff]  ;;  %134 = vmatpush.msra.mxu0 %v90_v52 }
  0x18   :  { %302 = vmatpush.msra.mxu3 %v3466_v7  ;;  %3088 = vmatpush.msra.mxu2 %v89_v53 }
  0x19   :  { %303 = vmatmul.f32.vlgmr.msra.gmra.mxu3 %v3308_v8  ;;  %v3557_v54 = vld [vmem:[%s4485_s30 + $0x18] sm:$0xff]  ;;  %135 = vmatpush.msra.mxu0 %v89_v53  ;;  %v3563_v55 = vld [vmem:[%s4485_s30 + $0x10] sm:$0xff]  ;;  %v3571_v56 = vld [vmem:[%s4485_s30 + $0x8] sm:$0xff] }
  0x1a   :  { %438 = vmatpush.msrb.mxu3 %v3436_v1  ;;  %2978 = vmatmul.msk.f32.vlgmr.msra.gmra.mxu2 %vm95_vm0, %v80_v15  ;;  %v3577_v57 = vld [vmem:[%s4485_s30] sm:$0xff] }
  0x1b   :  { %2971 = vmatmul.msk.f32.vlgmr.msra.gmra.mxu0 %vm95_vm0, %v3450_v4  ;;  %234 = vmatpush.msrb.mxu2 %v3557_v54  ;;  %v3098_v4 = vld [vmem:[%s4486_s29] ss:$0 sm:$0xff] }
  0x1c   :  { %439 = vmatpush.msrb.mxu3 %v3445_v3  ;;  %2980 = vmatmul.msk.f32.gmra.mxu1 %vm95_vm0, %v3475_v9 }
  0x1d   :  { %235 = vmatpush.msrb.mxu2 %v3563_v55 }
  0x1e   :  { %440 = vmatpush.msrb.mxu3 %v3455_v5 }
  0x1f   :  { %236 = vmatpush.msrb.mxu2 %v3571_v56 }
  0x20   :  { %441 = vmatpush.msrb.mxu3 %v3466_v7 }
  0x21   :  { %237 = vmatpush.msrb.mxu2 %v3577_v57 }
  0x22   :  { %572 = vmatpush.msra.mxu3 %v3436_v1  ;;  %238 = vmatmul.f32.vlgmr.msrb.gmra.mxu2 %v3308_v8 }
  0x23   :  { %2972 = vmatmul.msk.f32.gmra.mxu0 %vm95_vm0, %v3475_v9  ;;  %376 = vmatpush.msra.mxu2 %v3557_v54 }
  0x24   :  { %573 = vmatpush.msra.mxu3 %v3445_v3  ;;  %2981 = vmatmul.msk.f32.gmra.mxu1 %vm95_vm0, %v3487_v10 }
  0x25   :  { %377 = vmatpush.msra.mxu2 %v3563_v55 }
  0x26   :  { %574 = vmatpush.msra.mxu3 %v3455_v5 }
  0x27   :  { %378 = vmatpush.msra.mxu2 %v3571_v56 }
  0x28   :  { %575 = vmatpush.msra.mxu3 %v3466_v7 }
  0x29   :  { %379 = vmatpush.msra.mxu2 %v3577_v57 }
  0x2b   :  { %2973 = vmatmul.msk.f32.gmra.mxu0 %vm95_vm0, %v3487_v10  ;;  %510 = vmatpush.msrb.mxu2 %v3557_v54 }
  0x2c   :  { %2982 = vmatmul.msk.f32.gmra.mxu1 %vm95_vm0, %v3497_v11 }
  0x2d   :  { %511 = vmatpush.msrb.mxu2 %v3563_v55 }
  0x2f   :  { %512 = vmatpush.msrb.mxu2 %v3571_v56 }
  0x31   :  { %513 = vmatpush.msrb.mxu2 %v3577_v57 }
  0x33   :  { %2974 = vmatmul.msk.f32.gmra.mxu0 %vm95_vm0, %v3497_v11 }
  0x34   :  { %2983 = vmatmul.msk.f32.gmra.mxu1 %vm95_vm0, %v3504_v12 }
  0x3b   :  { %2975 = vmatmul.msk.f32.gmra.mxu0 %vm95_vm0, %v3504_v12 }
  0x3c   :  { %2984 = vmatmul.msk.f32.gmra.mxu1 %vm95_vm0, %v3511_v13 }
  0x43   :  { %2976 = vmatmul.msk.f32.gmra.mxu0 %vm95_vm0, %v3511_v13  ;;  %v3626_v13 = vld [vmem:[%s4448_s4] ss:$0 sm:$0xff] }
  0x44   :  { %2985 = vmatmul.msk.f32.gmra.mxu1 %vm95_vm0, %v3518_v14 }
  0x4b   :  { %2977 = vmatmul.msk.f32.gmra.mxu0 %vm95_vm0, %v3518_v14 }
  0x4c   :  { %2986 = vmatmul.msk.f32.gmra.mxu1 %vm95_vm0, %v80_v15 }
  0x87   :  { %v3531_v20 = vpop.permute.xlu0 %329 }
  0x91   :  { %v184_v17 = vpop.f32.mrf.mxu1 }
  0x92   :  { %v3529_v18 = vadd.f32 %v3097_v16, %v184_v17 }
  0x98   :  { %v137_v14 = vpop.f32.mrf.mxu0 }
  0x99   :  { %v187_v19 = vpop.f32.mrf.mxu1  ;;  %v138_v15 = vadd.f32 %v3626_v13, %v137_v14 }
  0x9a   :  { %v3533_v21 = vadd.f32 %v3097_v16, %v187_v19 }
  0x9c   :  { %v304_v22 = vpop.f32.mrf.mxu3 }
  0x9d   :  { %v332_v23 = vadd.f32 %v3531_v20, %v304_v22  ;;  %v3611_v6 = vpop.f32.mrf.mxu2 }
  0x9f   :  { %334 = vrot.lane.b32.xlu0 %v332_v23, %s3307_s2 }
  0xa1   :  { %v190_v24 = vpop.f32.mrf.mxu1 }
  0xa2   :  { %v3537_v25 = vadd.f32 %v3097_v16, %v190_v24 }
  0xa5   :  { %v239_v10 = vpop.f32.mrf.mxu2 }
  0xa9   :  { %v193_v26 = vpop.f32.mrf.mxu1 }
  0xaa   :  { %v3539_v27 = vadd.f32 %v3097_v16, %v193_v26 }
  0xb1   :  { %v196_v28 = vpop.f32.mrf.mxu1 }
  0xb2   :  { %v3541_v29 = vadd.f32 %v3097_v16, %v196_v28 }
  0xb9   :  { %v199_v30 = vpop.f32.mrf.mxu1 }
  0xba   :  { %v3543_v31 = vadd.f32 %v3097_v16, %v199_v30 }
  0xc1   :  { %v202_v32 = vpop.f32.mrf.mxu1 }
  0xc2   :  { %v3545_v33 = vadd.f32 %v3097_v16, %v202_v32 }
  0xc9   :  { %v205_v34 = vpop.f32.mrf.mxu1 }
  0xca   :  { %v206_v35 = vadd.f32 %v3097_v16, %v205_v34  ;;  %v242_v16 = vadd.f32 %v239_v10, %v138_v15 }
  0xcc   :  { %v307_v36 = vadd.f32 %v304_v22, %v206_v35  ;;  %v2987_v17 = vmul.f32 -1.442695, %v242_v16 }
  0xce   :  { %v2988_v37 = vmul.f32 -1.442695, %v307_v36 }
  0xd0   :  { %3105 = vpow2.f32 %v2988_v37 }
  0xd6   :  { %v3106_v38 = vpop.eup %3105 }
  0xd7   :  { %v311_v39 = vadd.f32 1.0, %v3106_v38 }
  0xd9   :  { %3107 = vrcp.f32 %v311_v39  ;;  %v323_v45 = vand.u32 2147483648, %v311_v39  ;;  %vm317_vm2 = vweird.f32 %v311_v39  ;;  %v321_v46 = vand.u32 2147483647, %v311_v39 }
  0xdb   :  { %v324_v48 = vor.u32 1.1754944e-38, %v323_v45  ;;  %vm322_vm4 = vcmp.eq.f32.partialorder %v321_v46, 8.507059e+37 }
  0xdf   :  { %v3108_v40 = vpop.eup %3107 }
  0xe0   :  { %v313_v41 = vmul.f32 %v3108_v40, %v311_v39  ;;  %vm318_vm1 = vweird.f32 %v3108_v40 }
  0xe1   :  { %vm319_vm3 = vmor %vm317_vm2, %vm318_vm1 }
  0xe2   :  { %v314_v42 = vsub.f32 1.0, %v313_v41 }
  0xe4   :  { %v315_v43 = vmul.f32 %v3108_v40, %v314_v42 }
  0xe6   :  { %v316_v44 = vadd.f32 %v3108_v40, %v315_v43 }
  0xe8   :  { %v320_v47 = vsel %vm319_vm3, %v3108_v40, %v316_v44 }
  0xe9   :  { %v325_v50 = vsel %vm322_vm4, %v324_v48, %v320_v47 }
  0xea   :  { %v344_v61 = vsub.f32 1.0, %v325_v50  ;;  %v350_v0 = vmul.f32 0.0, %v325_v50 }
 0x111   :  { %v335_v49 = vpop.permute.xlu0 %334 }
 0x112   :  { %v337_v51 = vmul.f32 %v335_v49, %v325_v50 }
 0x114   :  { %339 = vrot.lane.b32.xlu1 %v337_v51, %s3307_s2 }
 0x186   :  { %v340_v58 = vpop.permute.xlu1 %339 }
 0x187   :  { %v342_v59 = vadd.f32 %v340_v58, %v206_v35 }
 0x189   :  { %3109 = vtanh.f32 %v342_v59 }
 0x18a   :  { %3111 = vpow2.f32 %v2987_v17 }
 0x18f   :  { %v3110_v60 = vpop.eup %3109 }
 0x190   :  { %346 = vrot.lane.b32.xlu1 %v3110_v60, %s3309_s28  ;;  %v3112_v19 = vpop.eup %3111 }
 0x191   :  { %v246_v22 = vadd.f32 1.0, %v3112_v19  ;;  %v1313_v19 = vld [vmem:[%s4449_s11 + $0x18] sm:$0xff] }
 0x192   :  { %1350 = vmatpush.msrb.mxu0 %v1313_v19 }
 0x193   :  { %3113 = vrcp.f32 %v246_v22  ;;  %vm252_vm6 = vweird.f32 %v246_v22  ;;  %v258_v30 = vand.u32 2147483648, %v246_v22  ;;  %v256_v34 = vand.u32 2147483647, %v246_v22 }
 0x195   :  { %v259_v35 = vor.u32 1.1754944e-38, %v258_v30  ;;  %vm257_vm9 = vcmp.eq.f32.partialorder %v256_v34, 8.507059e+37 }
 0x199   :  { %v3114_v23 = vpop.eup %3113 }
 0x19a   :  { %v248_v24 = vmul.f32 %v3114_v23, %v246_v22  ;;  %vm253_vm7 = vweird.f32 %v3114_v23  ;;  %v1312_v22 = vld [vmem:[%s4449_s11 + $0x10] sm:$0xff] }
 0x19b   :  { %vm254_vm8 = vmor %vm252_vm6, %vm253_vm7  ;;  %1351 = vmatpush.msrb.mxu0 %v1312_v22 }
 0x19c   :  { %v249_v26 = vsub.f32 1.0, %v248_v24  ;;  %v1310_v24 = vld [vmem:[%s4449_s11] sm:$0xff] }
 0x19e   :  { %v250_v28 = vmul.f32 %v3114_v23, %v249_v26  ;;  %v1300_v26 = vld [vmem:[%s4450_s10] sm:$0xff] }
 0x1a0   :  { %v251_v32 = vadd.f32 %v3114_v23, %v250_v28  ;;  %v81_v28 = vld [vmem:[%s4451_s1] sm:$0xff] }
 0x1a2   :  { %v255_v36 = vsel %vm254_vm8, %v3114_v23, %v251_v32  ;;  %v1311_v23 = vld [vmem:[%s4449_s11 + $0x8] sm:$0xff] }
 0x1a3   :  { %v260_v37 = vsel %vm257_vm9, %v259_v35, %v255_v36  ;;  %1352 = vmatpush.msrb.mxu0 %v1311_v23 }
 0x1a5   :  { %1353 = vmatpush.msrb.mxu0 %v1310_v24 }
 0x202   :  { %v347_v62 = vpop.permute.xlu1 %346 }
 0x203   :  { %v349_v63 = vmul.f32 %v347_v62, %v344_v61 }
 0x205   :  { %v3603_v2 = vadd.f32 %v350_v0, %v349_v63 }
 0x207   :  { %358 = vrot.lane.b32.xlu2 %v3603_v2, %s3309_s28 }
 0x20f   :  { %264 = vrot.lane.b32.xlu2 %v3098_v4, %s3307_s2  ;;  %v279_v4 = vsub.f32 1.0, %v260_v37 }
 0x261   :  { %v359_v9 = vpop.permute.xlu2 %358 }
 0x262   :  { %361 = vst.msk [vmem:[#allocation3 + $0x38] sm:$0xff] %vm218_vm5, %v359_v9  ;;  %2991 = vmatmul.msk.f32.vlgmr.msrb.gmra.mxu3 %vm218_vm5, %v359_v9 }
 0x263   :  { %706 = vmatpush.msrb.mxu3 %v3436_v1 }
 0x265   :  { %707 = vmatpush.msrb.mxu3 %v3445_v3 }
 0x267   :  { %708 = vmatpush.msrb.mxu3 %v3455_v5 }
 0x269   :  { %v3618_v11 = vpop.permute.xlu2 %264  ;;  %709 = vmatpush.msrb.mxu3 %v3466_v7 }
 0x26a   :  { %v267_v12 = vadd.f32 %v3618_v11, %v239_v10  ;;  %v285_v10 = vmul.f32 0.0, %v260_v37 }
 0x26c   :  { %269 = vrot.lane.b32.xlu0 %v267_v12, %s3307_s2 }
 0x2de   :  { %v270_v38 = vpop.permute.xlu0 %269 }
 0x2df   :  { %v272_v39 = vmul.f32 %v270_v38, %v260_v37 }
 0x2e1   :  { %274 = vrot.lane.b32.xlu2 %v272_v39, %s3307_s2 }
 0x2e5   :  { %v443_v40 = vpop.f32.mrf.mxu3 }
 0x2e6   :  { %v466_v41 = vadd.f32 %v443_v40, %v3531_v20  ;;  %v446_v42 = vadd.f32 %v443_v40, %v3545_v33 }
 0x2e8   :  { %468 = vrot.lane.b32.xlu1 %v466_v41, %s3307_s2  ;;  %v2992_v43 = vmul.f32 -1.442695, %v446_v42  ;;  %v140_v41 = vpop.f32.mrf.mxu0 }
 0x2e9   :  { %v141_v42 = vadd.f32 %v3626_v13, %v140_v41 }
 0x2ea   :  { %3115 = vpow2.f32 %v2992_v43 }
 0x2f0   :  { %v3116_v44 = vpop.eup %3115 }
 0x2f1   :  { %v450_v45 = vadd.f32 1.0, %v3116_v44 }
 0x2f3   :  { %3117 = vrcp.f32 %v450_v45  ;;  %v462_v58 = vand.u32 2147483648, %v450_v45  ;;  %vm456_vm11 = vweird.f32 %v450_v45  ;;  %v460_v59 = vand.u32 2147483647, %v450_v45 }
 0x2f5   :  { %v463_v61 = vor.u32 1.1754944e-38, %v462_v58  ;;  %vm461_vm13 = vcmp.eq.f32.partialorder %v460_v59, 8.507059e+37 }
 0x2f9   :  { %v3118_v48 = vpop.eup %3117 }
 0x2fa   :  { %v452_v50 = vmul.f32 %v3118_v48, %v450_v45  ;;  %vm457_vm10 = vweird.f32 %v3118_v48 }
 0x2fb   :  { %vm458_vm12 = vmor %vm456_vm11, %vm457_vm10 }
 0x2fc   :  { %v453_v51 = vsub.f32 1.0, %v452_v50 }
 0x2fe   :  { %v454_v52 = vmul.f32 %v3118_v48, %v453_v51 }
 0x300   :  { %v455_v53 = vadd.f32 %v3118_v48, %v454_v52 }
 0x302   :  { %v459_v60 = vsel %vm458_vm12, %v3118_v48, %v455_v53 }
 0x303   :  { %v464_v63 = vsel %vm461_vm13, %v463_v61, %v459_v60 }
 0x304   :  { %v478_v32 = vsub.f32 1.0, %v464_v63  ;;  %v484_v35 = vmul.f32 %v464_v63, %v3603_v2 }
 0x33b   :  { %v275_v46 = vpop.permute.xlu2 %274 }
 0x33c   :  { %v277_v47 = vadd.f32 %v275_v46, %v138_v15 }
 0x33e   :  { %3119 = vtanh.f32 %v277_v47 }
 0x344   :  { %v3120_v49 = vpop.eup %3119 }
 0x345   :  { %281 = vrot.lane.b32.xlu1 %v3120_v49, %s3309_s28 }
 0x35a   :  { %v469_v62 = vpop.permute.xlu1 %468 }
 0x35b   :  { %v471_v0 = vmul.f32 %v469_v62, %v464_v63 }
 0x35d   :  { %473 = vrot.lane.b32.xlu0 %v471_v0, %s3307_s2 }
 0x3b7   :  { %v282_v9 = vpop.permute.xlu1 %281 }
 0x3b8   :  { %v284_v12 = vmul.f32 %v282_v9, %v279_v4 }
 0x3ba   :  { %v3635_v14 = vadd.f32 %v285_v10, %v284_v12 }
 0x3bc   :  { %353 = vrot.lane.b32.xlu0 %v3635_v14, %s3309_s28 }
 0x3cf   :  { %v474_v15 = vpop.permute.xlu0 %473 }
 0x3d0   :  { %v476_v16 = vadd.f32 %v474_v15, %v3545_v33  ;;  %v1301_v33 = vld [vmem:[%s4450_s10 + $0x8] sm:$0xff] }
 0x3d1   :  { %1417 = vmatpush.msrb.mxu1 %v1301_v33 }
 0x3d2   :  { %3121 = vtanh.f32 %v476_v16 }
 0x3d3   :  { %1418 = vmatpush.msrb.mxu1 %v1300_v26 }
 0x3d4   :  { %3025 = vmatmul.msk.f32.vlgmr.msrb.gmra.mxu1 %vm95_vm0, %v81_v28 }
 0x3d8   :  { %v3122_v17 = vpop.eup %3121 }
 0x3d9   :  { %480 = vrot.lane.b32.xlu2 %v3122_v17, %s3309_s28 }
 0x42e   :  { %v354_v30 = vpop.permute.xlu0 %353 }
 0x42f   :  { %356 = vst.msk [vmem:[#allocation2] sm:$0xff] %vm218_vm5, %v354_v30  ;;  %2989 = vmatmul.msk.f32.vlgmr.msra.gmra.mxu2 %vm218_vm5, %v354_v30 }
 0x430   :  { %644 = vmatpush.msra.mxu2 %v3557_v54 }
 0x432   :  { %645 = vmatpush.msra.mxu2 %v3563_v55 }
 0x433   :  { %v481_v34 = vpop.permute.xlu2 %480 }
 0x434   :  { %v483_v36 = vmul.f32 %v481_v34, %v478_v32  ;;  %646 = vmatpush.msra.mxu2 %v3571_v56 }
 0x436   :  { %v3669_v37 = vadd.f32 %v484_v35, %v483_v36  ;;  %v1302_v38 = vld [vmem:[#allocation2] sm:$0xff]  ;;  %647 = vmatpush.msra.mxu2 %v3577_v57 }
 0x437   :  { %3017 = vmatmul.msk.f32.vlgmr.msrb.gmra.mxu0 %vm218_vm5, %v1302_v38 }
 0x438   :  { %492 = vrot.lane.b32.xlu1 %v3669_v37, %s3309_s28 }
 0x4aa   :  { %v493_v39 = vpop.permute.xlu1 %492 }
 0x4ab   :  { %495 = vst.msk [vmem:[#allocation3 + $0x30] sm:$0xff] %vm218_vm5, %v493_v39  ;;  %2995 = vmatmul.msk.f32.vlgmr.msra.gmra.mxu3 %vm218_vm5, %v493_v39 }
 0x4ac   :  { %840 = vmatpush.msra.mxu3 %v3436_v1 }
 0x4ae   :  { %841 = vmatpush.msra.mxu3 %v3445_v3 }
 0x4b0   :  { %842 = vmatpush.msra.mxu3 %v3455_v5 }
 0x4b2   :  { %v381_v2 = vpop.f32.mrf.mxu2  ;;  %843 = vmatpush.msra.mxu3 %v3466_v7 }
 0x4b3   :  { %v404_v40 = vadd.f32 %v381_v2, %v3618_v11  ;;  %v384_v43 = vadd.f32 %v381_v2, %v141_v42 }
 0x4b5   :  { %406 = vrot.lane.b32.xlu2 %v404_v40, %s3307_s2  ;;  %v2990_v44 = vmul.f32 -1.442695, %v384_v43 }
 0x4b7   :  { %3123 = vpow2.f32 %v2990_v44 }
 0x4bd   :  { %v3124_v45 = vpop.eup %3123 }
 0x4be   :  { %v388_v46 = vadd.f32 1.0, %v3124_v45  ;;  %v82_v45 = vld [vmem:[%s4451_s1 + $0x8] sm:$0xff] }
 0x4bf   :  { %3026 = vmatmul.msk.f32.gmra.mxu1 %vm95_vm0, %v82_v45 }
 0x4c0   :  { %3125 = vrcp.f32 %v388_v46  ;;  %v400_v52 = vand.u32 2147483648, %v388_v46  ;;  %vm394_vm15 = vweird.f32 %v388_v46  ;;  %v398_v53 = vand.u32 2147483647, %v388_v46 }
 0x4c2   :  { %v401_v59 = vor.u32 1.1754944e-38, %v400_v52  ;;  %vm399_vm2 = vcmp.eq.f32.partialorder %v398_v53, 8.507059e+37 }
 0x4c6   :  { %v3126_v47 = vpop.eup %3125 }
 0x4c7   :  { %v390_v48 = vmul.f32 %v3126_v47, %v388_v46  ;;  %vm395_vm14 = vweird.f32 %v3126_v47 }
 0x4c8   :  { %vm396_vm1 = vmor %vm394_vm15, %vm395_vm14 }
 0x4c9   :  { %v391_v49 = vsub.f32 1.0, %v390_v48 }
 0x4cb   :  { %v392_v50 = vmul.f32 %v3126_v47, %v391_v49 }
 0x4cd   :  { %v393_v51 = vadd.f32 %v3126_v47, %v392_v50 }
 0x4cf   :  { %v397_v58 = vsel %vm396_vm1, %v3126_v47, %v393_v51 }
 0x4d0   :  { %v402_v60 = vsel %vm399_vm2, %v401_v59, %v397_v58 }
 0x4d1   :  { %v416_v38 = vsub.f32 1.0, %v402_v60  ;;  %v422_v40 = vmul.f32 %v402_v60, %v3635_v14 }
 0x50f   :  { %v407_v61 = vpop.permute.xlu2 %406 }
 0x510   :  { %v409_v62 = vmul.f32 %v407_v61, %v402_v60 }
 0x512   :  { %411 = vrot.lane.b32.xlu1 %v409_v62, %s3307_s2 }
 0x52e   :  { %v577_v63 = vpop.f32.mrf.mxu3 }
 0x52f   :  { %v600_v0 = vadd.f32 %v577_v63, %v3531_v20  ;;  %v580_v4 = vadd.f32 %v577_v63, %v3543_v31 }
 0x531   :  { %602 = vrot.lane.b32.xlu0 %v600_v0, %s3307_s2  ;;  %v2996_v9 = vmul.f32 -1.442695, %v580_v4 }
 0x533   :  { %3127 = vpow2.f32 %v2996_v9 }
 0x539   :  { %v3128_v10 = vpop.eup %3127 }
 0x53a   :  { %v584_v12 = vadd.f32 1.0, %v3128_v10 }
 0x53c   :  { %3129 = vrcp.f32 %v584_v12  ;;  %v596_v26 = vand.u32 2147483648, %v584_v12  ;;  %vm590_vm4 = vweird.f32 %v584_v12  ;;  %v594_v28 = vand.u32 2147483647, %v584_v12 }
 0x53e   :  { %v597_v32 = vor.u32 1.1754944e-38, %v596_v26  ;;  %vm595_vm7 = vcmp.eq.f32.partialorder %v594_v28, 8.507059e+37 }
 0x542   :  { %v3130_v17 = vpop.eup %3129 }
 0x543   :  { %v586_v22 = vmul.f32 %v3130_v17, %v584_v12  ;;  %vm591_vm3 = vweird.f32 %v3130_v17 }
 0x544   :  { %vm592_vm6 = vmor %vm590_vm4, %vm591_vm3 }
 0x545   :  { %v587_v23 = vsub.f32 1.0, %v586_v22 }
 0x547   :  { %v588_v33 = vmul.f32 %v3130_v17, %v587_v23 }
 0x549   :  { %v589_v24 = vadd.f32 %v3130_v17, %v588_v33 }
 0x54b   :  { %v593_v30 = vsel %vm592_vm6, %v3130_v17, %v589_v24 }
 0x54c   :  { %v598_v35 = vsel %vm595_vm7, %v597_v32, %v593_v30 }
 0x54d   :  { %v612_v14 = vsub.f32 1.0, %v598_v35  ;;  %v618_v48 = vmul.f32 %v598_v35, %v3669_v37  ;;  %v143_v37 = vpop.f32.mrf.mxu0 }
 0x54e   :  { %v144_v58 = vadd.f32 %v3626_v13, %v143_v37 }
 0x584   :  { %v412_v15 = vpop.permute.xlu1 %411 }
 0x585   :  { %v414_v16 = vadd.f32 %v412_v15, %v141_v42 }
 0x587   :  { %3131 = vtanh.f32 %v414_v16 }
 0x58d   :  { %v3132_v19 = vpop.eup %3131 }
 0x58e   :  { %418 = vrot.lane.b32.xlu0 %v3132_v19, %s3309_s28 }
 0x5a3   :  { %v603_v34 = vpop.permute.xlu0 %602 }
 0x5a4   :  { %v605_v36 = vmul.f32 %v603_v34, %v598_v35 }
 0x5a6   :  { %607 = vrot.lane.b32.xlu2 %v605_v36, %s3307_s2 }
 0x600   :  { %v419_v39 = vpop.permute.xlu0 %418  ;;  %v608_v2 = vpop.permute.xlu2 %607 }
 0x601   :  { %v421_v41 = vmul.f32 %v419_v39, %v416_v38  ;;  %v610_v42 = vadd.f32 %v608_v2, %v3543_v31 }
 0x603   :  { %v3692_v43 = vadd.f32 %v422_v40, %v421_v41  ;;  %3133 = vtanh.f32 %v610_v42 }
 0x605   :  { %487 = vrot.lane.b32.xlu2 %v3692_v43, %s3309_s28 }
 0x609   :  { %v3134_v44 = vpop.eup %3133 }
 0x60a   :  { %614 = vrot.lane.b32.xlu1 %v3134_v44, %s3309_s28 }
 0x65f   :  { %v488_v46 = vpop.permute.xlu2 %487 }
 0x660   :  { %490 = vst.msk [vmem:[#allocation2 + $0x8] sm:$0xff] %vm218_vm5, %v488_v46  ;;  %2993 = vmatmul.msk.f32.vlgmr.msrb.gmra.mxu2 %vm218_vm5, %v488_v46 }
 0x661   :  { %778 = vmatpush.msrb.mxu2 %v3557_v54 }
 0x663   :  { %779 = vmatpush.msrb.mxu2 %v3563_v55 }
 0x665   :  { %780 = vmatpush.msrb.mxu2 %v3571_v56 }
 0x667   :  { %v1303_v31 = vld [vmem:[#allocation2 + $0x8] sm:$0xff]  ;;  %781 = vmatpush.msrb.mxu2 %v3577_v57 }
 0x668   :  { %3018 = vmatmul.msk.f32.gmra.mxu0 %vm218_vm5, %v1303_v31 }
 0x67c   :  { %v615_v47 = vpop.permute.xlu1 %614 }
 0x67d   :  { %v617_v49 = vmul.f32 %v615_v47, %v612_v14 }
 0x67f   :  { %v3709_v50 = vadd.f32 %v618_v48, %v617_v49 }
 0x681   :  { %626 = vrot.lane.b32.xlu0 %v3709_v50, %s3309_s28 }
 0x6e3   :  { %v515_v51 = vpop.f32.mrf.mxu2 }
 0x6e4   :  { %v538_v52 = vadd.f32 %v515_v51, %v3618_v11  ;;  %v518_v59 = vadd.f32 %v515_v51, %v144_v58 }
 0x6e6   :  { %540 = vrot.lane.b32.xlu1 %v538_v52, %s3307_s2  ;;  %v2994_v60 = vmul.f32 -1.442695, %v518_v59 }
 0x6e8   :  { %3135 = vpow2.f32 %v2994_v60  ;;  %v83_v60 = vld [vmem:[%s4451_s1 + $0x10] sm:$0xff] }
 0x6e9   :  { %3027 = vmatmul.msk.f32.gmra.mxu1 %vm95_vm0, %v83_v60 }
 0x6ee   :  { %v3136_v61 = vpop.eup %3135 }
 0x6ef   :  { %v522_v62 = vadd.f32 1.0, %v3136_v61 }
 0x6f1   :  { %3137 = vrcp.f32 %v522_v62  ;;  %v534_v12 = vand.u32 2147483648, %v522_v62  ;;  %vm528_vm9 = vweird.f32 %v522_v62  ;;  %v532_v15 = vand.u32 2147483647, %v522_v62 }
 0x6f3   :  { %v627_v53 = vpop.permute.xlu0 %626  ;;  %v535_v17 = vor.u32 1.1754944e-38, %v534_v12  ;;  %vm533_vm11 = vcmp.eq.f32.partialorder %v532_v15, 8.507059e+37  ;;  %v146_v12 = vpop.f32.mrf.mxu0 }
 0x6f4   :  { %629 = vst.msk [vmem:[#allocation3 + $0x28] sm:$0xff] %vm218_vm5, %v627_v53  ;;  %2999 = vmatmul.msk.f32.vlgmr.msrb.gmra.mxu3 %vm218_vm5, %v627_v53  ;;  %v147_v15 = vadd.f32 %v3626_v13, %v146_v12 }
 0x6f5   :  { %974 = vmatpush.msrb.mxu3 %v3436_v1 }
 0x6f7   :  { %975 = vmatpush.msrb.mxu3 %v3445_v3  ;;  %v3138_v63 = vpop.eup %3137 }
 0x6f8   :  { %v524_v0 = vmul.f32 %v3138_v63, %v522_v62  ;;  %vm529_vm8 = vweird.f32 %v3138_v63 }
 0x6f9   :  { %976 = vmatpush.msrb.mxu3 %v3455_v5  ;;  %vm530_vm10 = vmor %vm528_vm9, %vm529_vm8 }
 0x6fa   :  { %v525_v4 = vsub.f32 1.0, %v524_v0 }
 0x6fb   :  { %977 = vmatpush.msrb.mxu3 %v3466_v7 }
 0x6fc   :  { %v526_v9 = vmul.f32 %v3138_v63, %v525_v4 }
 0x6fe   :  { %v527_v10 = vadd.f32 %v3138_v63, %v526_v9 }
 0x700   :  { %v531_v16 = vsel %vm530_vm10, %v3138_v63, %v527_v10 }
 0x701   :  { %v536_v22 = vsel %vm533_vm11, %v535_v17, %v531_v16 }
 0x702   :  { %v550_v48 = vsub.f32 1.0, %v536_v22  ;;  %v556_v51 = vmul.f32 %v536_v22, %v3692_v43 }
 0x758   :  { %v541_v19 = vpop.permute.xlu1 %540 }
 0x759   :  { %v543_v23 = vmul.f32 %v541_v19, %v536_v22 }
 0x75b   :  { %545 = vrot.lane.b32.xlu0 %v543_v23, %s3307_s2 }
 0x777   :  { %v711_v33 = vpop.f32.mrf.mxu3 }
 0x778   :  { %v734_v24 = vadd.f32 %v711_v33, %v3531_v20  ;;  %v714_v26 = vadd.f32 %v711_v33, %v3541_v29 }
 0x77a   :  { %736 = vrot.lane.b32.xlu2 %v734_v24, %s3307_s2  ;;  %v3000_v28 = vmul.f32 -1.442695, %v714_v26 }
 0x77c   :  { %3139 = vpow2.f32 %v3000_v28 }
 0x782   :  { %v3140_v30 = vpop.eup %3139 }
 0x783   :  { %v718_v32 = vadd.f32 1.0, %v3140_v30 }
 0x785   :  { %3141 = vrcp.f32 %v718_v32  ;;  %v730_v41 = vand.u32 2147483648, %v718_v32  ;;  %vm724_vm13 = vweird.f32 %v718_v32  ;;  %v728_v42 = vand.u32 2147483647, %v718_v32 }
 0x787   :  { %v731_v45 = vor.u32 1.1754944e-38, %v730_v41  ;;  %vm729_vm15 = vcmp.eq.f32.partialorder %v728_v42, 8.507059e+37 }
 0x78b   :  { %v3142_v34 = vpop.eup %3141 }
 0x78c   :  { %v720_v35 = vmul.f32 %v3142_v34, %v718_v32  ;;  %vm725_vm12 = vweird.f32 %v3142_v34 }
 0x78d   :  { %vm726_vm14 = vmor %vm724_vm13, %vm725_vm12 }
 0x78e   :  { %v721_v36 = vsub.f32 1.0, %v720_v35 }
 0x790   :  { %v722_v38 = vmul.f32 %v3142_v34, %v721_v36 }
 0x792   :  { %v723_v2 = vadd.f32 %v3142_v34, %v722_v38 }
 0x794   :  { %v727_v44 = vsel %vm726_vm14, %v3142_v34, %v723_v2 }
 0x795   :  { %v732_v46 = vsel %vm729_vm15, %v731_v45, %v727_v44 }
 0x796   :  { %v746_v61 = vsub.f32 1.0, %v732_v46  ;;  %v752_v63 = vmul.f32 %v732_v46, %v3709_v50 }
 0x7cd   :  { %v546_v39 = vpop.permute.xlu0 %545 }
 0x7ce   :  { %v548_v40 = vadd.f32 %v546_v39, %v144_v58 }
 0x7d0   :  { %3143 = vtanh.f32 %v548_v40 }
 0x7d4   :  { %v737_v31 = vpop.permute.xlu2 %736 }
 0x7d5   :  { %v739_v14 = vmul.f32 %v737_v31, %v732_v46 }
 0x7d6   :  { %v3144_v47 = vpop.eup %3143 }
 0x7d7   :  { %552 = vrot.lane.b32.xlu2 %v3144_v47, %s3309_s28  ;;  %741 = vrot.lane.b32.xlu1 %v739_v14, %s3307_s2 }
 0x831   :  { %v553_v49 = vpop.permute.xlu2 %552 }
 0x832   :  { %v555_v52 = vmul.f32 %v553_v49, %v550_v48 }
 0x834   :  { %v3729_v53 = vadd.f32 %v556_v51, %v555_v52 }
 0x836   :  { %621 = vrot.lane.b32.xlu1 %v3729_v53, %s3309_s28 }
 0x849   :  { %v742_v37 = vpop.permute.xlu1 %741 }
 0x84a   :  { %v744_v58 = vadd.f32 %v742_v37, %v3541_v29 }
 0x84c   :  { %3145 = vtanh.f32 %v744_v58 }
 0x852   :  { %v3146_v59 = vpop.eup %3145 }
 0x853   :  { %748 = vrot.lane.b32.xlu0 %v3146_v59, %s3309_s28 }
 0x8a8   :  { %v622_v43 = vpop.permute.xlu1 %621 }
 0x8a9   :  { %624 = vst.msk [vmem:[#allocation2 + $0x10] sm:$0xff] %vm218_vm5, %v622_v43  ;;  %2997 = vmatmul.msk.f32.vlgmr.msra.gmra.mxu2 %vm218_vm5, %v622_v43 }
 0x8aa   :  { %912 = vmatpush.msra.mxu2 %v3557_v54 }
 0x8ac   :  { %913 = vmatpush.msra.mxu2 %v3563_v55 }
 0x8ae   :  { %914 = vmatpush.msra.mxu2 %v3571_v56 }
 0x8b0   :  { %v1304_v29 = vld [vmem:[#allocation2 + $0x10] sm:$0xff]  ;;  %915 = vmatpush.msra.mxu2 %v3577_v57 }
 0x8b1   :  { %3019 = vmatmul.msk.f32.gmra.mxu0 %vm218_vm5, %v1304_v29 }
 0x8c5   :  { %v749_v62 = vpop.permute.xlu0 %748 }
 0x8c6   :  { %v751_v0 = vmul.f32 %v749_v62, %v746_v61 }
 0x8c8   :  { %v3747_v4 = vadd.f32 %v752_v63, %v751_v0 }
 0x8ca   :  { %760 = vrot.lane.b32.xlu2 %v3747_v4, %s3309_s28 }
 0x924   :  { %v761_v9 = vpop.permute.xlu2 %760 }
 0x925   :  { %763 = vst.msk [vmem:[#allocation3 + $0x20] sm:$0xff] %vm218_vm5, %v761_v9  ;;  %3003 = vmatmul.msk.f32.vlgmr.msra.gmra.mxu3 %vm218_vm5, %v761_v9 }
 0x926   :  { %1108 = vmatpush.msra.mxu3 %v3436_v1 }
 0x928   :  { %1109 = vmatpush.msra.mxu3 %v3445_v3 }
 0x92a   :  { %1110 = vmatpush.msra.mxu3 %v3455_v5 }
 0x92c   :  { %v649_v10 = vpop.f32.mrf.mxu2  ;;  %1111 = vmatpush.msra.mxu3 %v3466_v7 }
 0x92d   :  { %v672_v50 = vadd.f32 %v649_v10, %v3618_v11  ;;  %v652_v16 = vadd.f32 %v649_v10, %v147_v15  ;;  %v84_v10 = vld [vmem:[%s4451_s1 + $0x18] sm:$0xff] }
 0x92e   :  { %3028 = vmatmul.msk.f32.gmra.mxu1 %vm95_vm0, %v84_v10 }
 0x92f   :  { %674 = vrot.lane.b32.xlu0 %v672_v50, %s3307_s2  ;;  %v2998_v17 = vmul.f32 -1.442695, %v652_v16 }
 0x931   :  { %3147 = vpow2.f32 %v2998_v17 }
 0x937   :  { %v3148_v19 = vpop.eup %3147 }
 0x938   :  { %v656_v22 = vadd.f32 1.0, %v3148_v19  ;;  %v3300_v19 = vld [vmem:[%s4480_s16] sm:$0xff] }
 0x93a   :  { %3149 = vrcp.f32 %v656_v22  ;;  %v668_v7 = vand.u32 2147483648, %v656_v22  ;;  %vm662_vm2 = vweird.f32 %v656_v22  ;;  %v666_v24 = vand.u32 2147483647, %v656_v22 }
 0x93c   :  { %v669_v28 = vor.u32 1.1754944e-38, %v668_v7  ;;  %vm667_vm4 = vcmp.eq.f32.partialorder %v666_v24, 8.507059e+37 }
 0x940   :  { %v3150_v1 = vpop.eup %3149 }
 0x941   :  { %v658_v3 = vmul.f32 %v3150_v1, %v656_v22  ;;  %vm663_vm1 = vweird.f32 %v3150_v1 }
 0x942   :  { %vm664_vm3 = vmor %vm662_vm2, %vm663_vm1 }
 0x943   :  { %v659_v23 = vsub.f32 1.0, %v658_v3 }
 0x945   :  { %v660_v5 = vmul.f32 %v3150_v1, %v659_v23 }
 0x947   :  { %v661_v33 = vadd.f32 %v3150_v1, %v660_v5 }
 0x949   :  { %v665_v26 = vsel %vm664_vm3, %v3150_v1, %v661_v33  ;;  %v149_v1 = vpop.f32.mrf.mxu0 }
 0x94a   :  { %v670_v32 = vsel %vm667_vm4, %v669_v28, %v665_v26  ;;  %v150_v3 = vadd.f32 %v3626_v13, %v149_v1 }
 0x94b   :  { %v684_v60 = vsub.f32 1.0, %v670_v32  ;;  %v690_v29 = vmul.f32 %v670_v32, %v3729_v53 }
 0x9a1   :  { %v675_v30 = vpop.permute.xlu0 %674 }
 0x9a2   :  { %v677_v34 = vmul.f32 %v675_v30, %v670_v32 }
 0x9a4   :  { %679 = vrot.lane.b32.xlu2 %v677_v34, %s3307_s2 }
 0x9a8   :  { %v845_v35 = vpop.f32.mrf.mxu3 }
 0x9a9   :  { %v868_v36 = vadd.f32 %v845_v35, %v3531_v20  ;;  %v848_v38 = vadd.f32 %v845_v35, %v3539_v27 }
 0x9ab   :  { %870 = vrot.lane.b32.xlu1 %v868_v36, %s3307_s2  ;;  %v3004_v39 = vmul.f32 -1.442695, %v848_v38 }
 0x9ad   :  { %3151 = vpow2.f32 %v3004_v39 }
 0x9b3   :  { %v3152_v2 = vpop.eup %3151 }
 0x9b4   :  { %v852_v40 = vadd.f32 1.0, %v3152_v2 }
 0x9b6   :  { %3153 = vrcp.f32 %v852_v40  ;;  %v864_v48 = vand.u32 2147483648, %v852_v40  ;;  %vm858_vm7 = vweird.f32 %v852_v40  ;;  %v862_v49 = vand.u32 2147483647, %v852_v40 }
 0x9b8   :  { %v865_v52 = vor.u32 1.1754944e-38, %v864_v48  ;;  %vm863_vm9 = vcmp.eq.f32.partialorder %v862_v49, 8.507059e+37 }
 0x9bc   :  { %v3154_v44 = vpop.eup %3153 }
 0x9bd   :  { %v854_v46 = vmul.f32 %v3154_v44, %v852_v40  ;;  %vm859_vm6 = vweird.f32 %v3154_v44 }
 0x9be   :  { %vm860_vm8 = vmor %vm858_vm7, %vm859_vm6 }
 0x9bf   :  { %v855_v31 = vsub.f32 1.0, %v854_v46 }
 0x9c1   :  { %v856_v14 = vmul.f32 %v3154_v44, %v855_v31 }
 0x9c3   :  { %v857_v47 = vadd.f32 %v3154_v44, %v856_v14 }
 0x9c5   :  { %v861_v51 = vsel %vm860_vm8, %v3154_v44, %v857_v47 }
 0x9c6   :  { %v866_v58 = vsel %vm863_vm9, %v865_v52, %v861_v51 }
 0x9c7   :  { %v880_v50 = vsub.f32 1.0, %v866_v58  ;;  %v886_v12 = vmul.f32 %v866_v58, %v3747_v4 }
 0x9fe   :  { %v680_v41 = vpop.permute.xlu2 %679 }
 0x9ff   :  { %v682_v42 = vadd.f32 %v680_v41, %v147_v15 }
 0xa01   :  { %3155 = vtanh.f32 %v682_v42 }
 0xa07   :  { %v3156_v45 = vpop.eup %3155 }
 0xa08   :  { %686 = vrot.lane.b32.xlu1 %v3156_v45, %s3309_s28 }
 0xa1d   :  { %v871_v37 = vpop.permute.xlu1 %870 }
 0xa1e   :  { %v873_v59 = vmul.f32 %v871_v37, %v866_v58 }
 0xa20   :  { %875 = vrot.lane.b32.xlu0 %v873_v59, %s3307_s2 }
 0xa7a   :  { %v687_v43 = vpop.permute.xlu1 %686 }
 0xa7b   :  { %v689_v61 = vmul.f32 %v687_v43, %v684_v60 }
 0xa7d   :  { %v3767_v62 = vadd.f32 %v690_v29, %v689_v61 }
 0xa7f   :  { %755 = vrot.lane.b32.xlu0 %v3767_v62, %s3309_s28 }
 0xa92   :  { %v876_v63 = vpop.permute.xlu0 %875 }
 0xa93   :  { %v878_v0 = vadd.f32 %v876_v63, %v3539_v27 }
 0xa95   :  { %3157 = vtanh.f32 %v878_v0 }
 0xa9b   :  { %v3158_v9 = vpop.eup %3157 }
 0xa9c   :  { %882 = vrot.lane.b32.xlu2 %v3158_v9, %s3309_s28 }
 0xaf1   :  { %v756_v53 = vpop.permute.xlu0 %755 }
 0xaf2   :  { %758 = vst.msk [vmem:[#allocation2 + $0x18] sm:$0xff] %vm218_vm5, %v756_v53  ;;  %3001 = vmatmul.msk.f32.vlgmr.msrb.gmra.mxu2 %vm218_vm5, %v756_v53 }
 0xaf3   :  { %1046 = vmatpush.msrb.mxu2 %v3557_v54 }
 0xaf5   :  { %1047 = vmatpush.msrb.mxu2 %v3563_v55  ;;  %v3297_v55 = vld [vmem:[%s4480_s16 + $0x18] sm:$0xff] }
 0xaf6   :  { %v883_v27 = vpop.permute.xlu2 %882 }
 0xaf7   :  { %v885_v15 = vmul.f32 %v883_v27, %v880_v50  ;;  %1048 = vmatpush.msrb.mxu2 %v3571_v56  ;;  %v3298_v56 = vld [vmem:[%s4480_s16 + $0x10] sm:$0xff] }
 0xaf9   :  { %v3783_v16 = vadd.f32 %v886_v12, %v885_v15  ;;  %v1305_v17 = vld [vmem:[#allocation2 + $0x18] sm:$0xff]  ;;  %1049 = vmatpush.msrb.mxu2 %v3577_v57  ;;  %v3299_v57 = vld [vmem:[%s4480_s16 + $0x8] sm:$0xff] }
 0xafa   :  { %3020 = vmatmul.msk.f32.gmra.mxu0 %vm218_vm5, %v1305_v17 }
 0xafb   :  { %894 = vrot.lane.b32.xlu1 %v3783_v16, %s3309_s28 }
 0xb6d   :  { %v895_v54 = vpop.permute.xlu1 %894 }
 0xb6e   :  { %897 = vst.msk [vmem:[#allocation3 + $0x18] sm:$0xff] %vm218_vm5, %v895_v54  ;;  %3007 = vmatmul.msk.f32.vlgmr.msrb.gmra.mxu3 %vm218_vm5, %v895_v54  ;;  %v85_v54 = vld [vmem:[%s4451_s1 + $0x20] sm:$0xff] }
 0xb6f   :  { %1242 = vmatpush.msrb.mxu3 %v3297_v55  ;;  %3029 = vmatmul.msk.f32.gmra.mxu1 %vm95_vm0, %v85_v54 }
 0xb71   :  { %1243 = vmatpush.msrb.mxu3 %v3298_v56  ;;  %v3303_v56 = vld [vmem:[%s4485_s30 + $0x8] sm:$0xff] }
 0xb73   :  { %1244 = vmatpush.msrb.mxu3 %v3299_v57 }
 0xb75   :  { %v783_v4 = vpop.f32.mrf.mxu2  ;;  %1245 = vmatpush.msrb.mxu3 %v3300_v19 }
 0xb76   :  { %v806_v22 = vadd.f32 %v783_v4, %v3618_v11  ;;  %v786_v23 = vadd.f32 %v783_v4, %v150_v3  ;;  %v3304_v4 = vld [vmem:[%s4485_s30] sm:$0xff] }
 0xb78   :  { %808 = vrot.lane.b32.xlu2 %v806_v22, %s3307_s2  ;;  %v3002_v5 = vmul.f32 -1.442695, %v786_v23 }
 0xb7a   :  { %3159 = vpow2.f32 %v3002_v5 }
 0xb80   :  { %v3160_v33 = vpop.eup %3159 }
 0xb81   :  { %v790_v7 = vadd.f32 1.0, %v3160_v33 }
 0xb83   :  { %3161 = vrcp.f32 %v790_v7  ;;  %v802_v34 = vand.u32 2147483648, %v790_v7  ;;  %vm796_vm11 = vweird.f32 %v790_v7  ;;  %v800_v35 = vand.u32 2147483647, %v790_v7 }
 0xb85   :  { %v803_v38 = vor.u32 1.1754944e-38, %v802_v34  ;;  %vm801_vm13 = vcmp.eq.f32.partialorder %v800_v35, 8.507059e+37 }
 0xb89   :  { %v3162_v24 = vpop.eup %3161 }
 0xb8a   :  { %v792_v26 = vmul.f32 %v3162_v24, %v790_v7  ;;  %vm797_vm10 = vweird.f32 %v3162_v24 }
 0xb8b   :  { %vm798_vm12 = vmor %vm796_vm11, %vm797_vm10 }
 0xb8c   :  { %v793_v28 = vsub.f32 1.0, %v792_v26 }
 0xb8e   :  { %v794_v30 = vmul.f32 %v3162_v24, %v793_v28 }
 0xb90   :  { %v795_v32 = vadd.f32 %v3162_v24, %v794_v30 }
 0xb92   :  { %v799_v36 = vsel %vm798_vm12, %v3162_v24, %v795_v32  ;;  %v152_v24 = vpop.f32.mrf.mxu0 }
 0xb93   :  { %v804_v39 = vsel %vm801_vm13, %v803_v38, %v799_v36  ;;  %v153_v26 = vadd.f32 %v3626_v13, %v152_v24 }
 0xb94   :  { %v818_v9 = vsub.f32 1.0, %v804_v39  ;;  %v824_v50 = vmul.f32 %v804_v39, %v3767_v62  ;;  %v3302_v62 = vld [vmem:[%s4485_s30 + $0x10] sm:$0xff] }
 0xb9a   :  { %v155_v24 = vpop.f32.mrf.mxu0 }
 0xbd2   :  { %v809_v2 = vpop.permute.xlu2 %808 }
 0xbd3   :  { %v811_v40 = vmul.f32 %v809_v2, %v804_v39 }
 0xbd5   :  { %813 = vrot.lane.b32.xlu1 %v811_v40, %s3307_s2 }
 0xbf1   :  { %v979_v41 = vpop.f32.mrf.mxu3 }
 0xbf2   :  { %v1002_v42 = vadd.f32 %v979_v41, %v3531_v20  ;;  %v982_v44 = vadd.f32 %v979_v41, %v3537_v25 }
 0xbf4   :  { %1004 = vrot.lane.b32.xlu0 %v1002_v42, %s3307_s2  ;;  %v3008_v45 = vmul.f32 -1.442695, %v982_v44 }
 0xbf6   :  { %3163 = vpow2.f32 %v3008_v45 }
 0xbfc   :  { %v3164_v46 = vpop.eup %3163 }
 0xbfd   :  { %v986_v31 = vadd.f32 1.0, %v3164_v46 }
 0xbff   :  { %3165 = vrcp.f32 %v986_v31  ;;  %v998_v59 = vand.u32 2147483648, %v986_v31  ;;  %vm992_vm15 = vweird.f32 %v986_v31  ;;  %v996_v60 = vand.u32 2147483647, %v986_v31 }
 0xc01   :  { %v999_v29 = vor.u32 1.1754944e-38, %v998_v59  ;;  %vm997_vm2 = vcmp.eq.f32.partialorder %v996_v60, 8.507059e+37 }
 0xc05   :  { %v3166_v48 = vpop.eup %3165 }
 0xc06   :  { %v988_v51 = vmul.f32 %v3166_v48, %v986_v31  ;;  %vm993_vm14 = vweird.f32 %v3166_v48 }
 0xc07   :  { %vm994_vm1 = vmor %vm992_vm15, %vm993_vm14 }
 0xc08   :  { %v989_v52 = vsub.f32 1.0, %v988_v51 }
 0xc0a   :  { %v990_v37 = vmul.f32 %v3166_v48, %v989_v52 }
 0xc0c   :  { %v991_v58 = vadd.f32 %v3166_v48, %v990_v37 }
 0xc0e   :  { %v995_v43 = vsel %vm994_vm1, %v3166_v48, %v991_v58 }
 0xc0f   :  { %v1000_v63 = vsel %vm997_vm2, %v999_v29, %v995_v43 }
 0xc10   :  { %v1014_v19 = vsub.f32 1.0, %v1000_v63  ;;  %v1020_v1 = vmul.f32 %v1000_v63, %v3783_v16 }
 0xc47   :  { %v814_v14 = vpop.permute.xlu1 %813 }
 0xc48   :  { %v816_v47 = vadd.f32 %v814_v14, %v150_v3 }
 0xc4a   :  { %3167 = vtanh.f32 %v816_v47 }
 0xc50   :  { %v3168_v49 = vpop.eup %3167 }
 0xc51   :  { %820 = vrot.lane.b32.xlu0 %v3168_v49, %s3309_s28 }
 0xc66   :  { %v1005_v61 = vpop.permute.xlu0 %1004 }
 0xc67   :  { %v1007_v0 = vmul.f32 %v1005_v61, %v1000_v63 }
 0xc69   :  { %1009 = vrot.lane.b32.xlu2 %v1007_v0, %s3307_s2 }
 0xcc3   :  { %v821_v10 = vpop.permute.xlu0 %820  ;;  %v1010_v53 = vpop.permute.xlu2 %1009 }
 0xcc4   :  { %v823_v27 = vmul.f32 %v821_v10, %v818_v9  ;;  %v1012_v12 = vadd.f32 %v1010_v53, %v3537_v25  ;;  %v3301_v25 = vld [vmem:[%s4485_s30 + $0x18] sm:$0xff] }
 0xcc6   :  { %v3814_v15 = vadd.f32 %v824_v50, %v823_v27  ;;  %3169 = vtanh.f32 %v1012_v12 }
 0xcc8   :  { %889 = vrot.lane.b32.xlu2 %v3814_v15, %s3309_s28 }
 0xccc   :  { %v3170_v17 = vpop.eup %3169 }
 0xccd   :  { %1016 = vrot.lane.b32.xlu1 %v3170_v17, %s3309_s28 }
 0xd22   :  { %v890_v55 = vpop.permute.xlu2 %889 }
 0xd23   :  { %892 = vst.msk [vmem:[#allocation2 + $0x20] sm:$0xff] %vm218_vm5, %v890_v55  ;;  %3005 = vmatmul.msk.f32.vlgmr.msra.gmra.mxu2 %vm218_vm5, %v890_v55 }
 0xd24   :  { %1180 = vmatpush.msra.mxu2 %v3301_v25 }
 0xd26   :  { %1181 = vmatpush.msra.mxu2 %v3302_v62 }
 0xd28   :  { %1182 = vmatpush.msra.mxu2 %v3303_v56 }
 0xd2a   :  { %v1306_v57 = vld [vmem:[#allocation2 + $0x20] sm:$0xff]  ;;  %1183 = vmatpush.msra.mxu2 %v3304_v4 }
 0xd2b   :  { %3021 = vmatmul.msk.f32.gmra.mxu0 %vm218_vm5, %v1306_v57  ;;  %v86_v57 = vld [vmem:[%s4451_s1 + $0x28] sm:$0xff] }
 0xd2c   :  { %3030 = vmatmul.msk.f32.gmra.mxu1 %vm95_vm0, %v86_v57  ;;  %v87_v57 = vld [vmem:[%s4451_s1 + $0x30] sm:$0xff] }
 0xd34   :  { %3031 = vmatmul.msk.f32.gmra.mxu1 %vm95_vm0, %v87_v57 }
 0xd3f   :  { %v1017_v22 = vpop.permute.xlu1 %1016 }
 0xd40   :  { %v1019_v3 = vmul.f32 %v1017_v22, %v1014_v19 }
 0xd42   :  { %v3839_v23 = vadd.f32 %v1020_v1, %v1019_v3 }
 0xd44   :  { %1028 = vrot.lane.b32.xlu0 %v3839_v23, %s3309_s28 }
 0xda6   :  { %v917_v5 = vpop.f32.mrf.mxu2 }
 0xda7   :  { %v940_v33 = vadd.f32 %v917_v5, %v3618_v11  ;;  %v920_v16 = vadd.f32 %v917_v5, %v153_v26 }
 0xda9   :  { %942 = vrot.lane.b32.xlu1 %v940_v33, %s3307_s2  ;;  %v3006_v28 = vmul.f32 -1.442695, %v920_v16 }
 0xdab   :  { %3171 = vpow2.f32 %v3006_v28 }
 0xdb1   :  { %v3172_v30 = vpop.eup %3171 }
 0xdb2   :  { %v924_v32 = vadd.f32 1.0, %v3172_v30 }
 0xdb4   :  { %3173 = vrcp.f32 %v924_v32  ;;  %v936_v2 = vand.u32 2147483648, %v924_v32  ;;  %vm930_vm4 = vweird.f32 %v924_v32  ;;  %v934_v40 = vand.u32 2147483647, %v924_v32 }
 0xdb6   :  { %v1029_v7 = vpop.permute.xlu0 %1028  ;;  %v937_v42 = vor.u32 1.1754944e-38, %v936_v2  ;;  %vm935_vm7 = vcmp.eq.f32.partialorder %v934_v40, 8.507059e+37 }
 0xdb7   :  { %1031 = vst.msk [vmem:[#allocation3 + $0x10] sm:$0xff] %vm218_vm5, %v1029_v7  ;;  %3011 = vmatmul.msk.f32.vlgmr.msra.gmra.mxu3 %vm218_vm5, %v1029_v7 }
 0xdba   :  { %v3174_v34 = vpop.eup %3173 }
 0xdbb   :  { %v926_v35 = vmul.f32 %v3174_v34, %v924_v32  ;;  %vm931_vm3 = vweird.f32 %v3174_v34 }
 0xdbc   :  { %vm932_vm6 = vmor %vm930_vm4, %vm931_vm3 }
 0xdbd   :  { %v927_v36 = vsub.f32 1.0, %v926_v35 }
 0xdbf   :  { %v928_v38 = vmul.f32 %v3174_v34, %v927_v36 }
 0xdc1   :  { %v929_v39 = vadd.f32 %v3174_v34, %v928_v38 }
 0xdc3   :  { %v933_v41 = vsel %vm932_vm6, %v3174_v34, %v929_v39 }
 0xdc4   :  { %v938_v44 = vsel %vm935_vm7, %v937_v42, %v933_v41 }
 0xdc5   :  { %v952_v27 = vsub.f32 1.0, %v938_v44  ;;  %v958_v17 = vmul.f32 %v938_v44, %v3814_v15 }
 0xe1b   :  { %v943_v13 = vpop.permute.xlu1 %942 }
 0xe1c   :  { %v945_v45 = vmul.f32 %v943_v13, %v938_v44 }
 0xe1e   :  { %947 = vrot.lane.b32.xlu0 %v945_v45, %s3307_s2 }
 0xe3a   :  { %v1113_v46 = vpop.f32.mrf.mxu3 }
 0xe3b   :  { %v1136_v31 = vadd.f32 %v1113_v46, %v3531_v20  ;;  %v1116_v14 = vadd.f32 %v1113_v46, %v3533_v21 }
 0xe3d   :  { %1138 = vrot.lane.b32.xlu2 %v1136_v31, %s3307_s2  ;;  %v3012_v47 = vmul.f32 -1.442695, %v1116_v14 }
 0xe3f   :  { %3175 = vpow2.f32 %v3012_v47 }
 0xe45   :  { %v3176_v48 = vpop.eup %3175 }
 0xe46   :  { %v1120_v49 = vadd.f32 1.0, %v3176_v48 }
 0xe48   :  { %3177 = vrcp.f32 %v1120_v49  ;;  %v1132_v29 = vand.u32 2147483648, %v1120_v49  ;;  %vm1126_vm9 = vweird.f32 %v1120_v49  ;;  %v1130_v61 = vand.u32 2147483647, %v1120_v49 }
 0xe4a   :  { %v1133_v0 = vor.u32 1.1754944e-38, %v1132_v29  ;;  %vm1131_vm11 = vcmp.eq.f32.partialorder %v1130_v61, 8.507059e+37 }
 0xe4e   :  { %v3178_v51 = vpop.eup %3177 }
 0xe4f   :  { %v1122_v52 = vmul.f32 %v3178_v51, %v1120_v49  ;;  %vm1127_vm8 = vweird.f32 %v3178_v51 }
 0xe50   :  { %vm1128_vm10 = vmor %vm1126_vm9, %vm1127_vm8 }
 0xe51   :  { %v1123_v37 = vsub.f32 1.0, %v1122_v52 }
 0xe53   :  { %v1124_v58 = vmul.f32 %v3178_v51, %v1123_v37 }
 0xe55   :  { %v1125_v60 = vadd.f32 %v3178_v51, %v1124_v58 }
 0xe57   :  { %v1129_v63 = vsel %vm1128_vm10, %v3178_v51, %v1125_v60 }
 0xe58   :  { %v1134_v9 = vsel %vm1131_vm11, %v1133_v0, %v1129_v63 }
 0xe59   :  { %v1148_v19 = vsub.f32 1.0, %v1134_v9  ;;  %v1154_v22 = vmul.f32 %v1134_v9, %v3839_v23  ;;  %v3880_v23 = vld [vmem:[%s4448_s4] ss:$0 sm:$0xff] }
 0xe90   :  { %v948_v59 = vpop.permute.xlu0 %947 }
 0xe91   :  { %v950_v43 = vadd.f32 %v948_v59, %v153_v26  ;;  %v156_v26 = vadd.f32 %v3880_v23, %v155_v24 }
 0xe93   :  { %3179 = vtanh.f32 %v950_v43 }
 0xe97   :  { %v1139_v10 = vpop.permute.xlu2 %1138 }
 0xe98   :  { %v1141_v53 = vmul.f32 %v1139_v10, %v1134_v9 }
 0xe99   :  { %v3180_v50 = vpop.eup %3179 }
 0xe9a   :  { %954 = vrot.lane.b32.xlu2 %v3180_v50, %s3309_s28  ;;  %1143 = vrot.lane.b32.xlu1 %v1141_v53, %s3307_s2 }
 0xef4   :  { %v955_v12 = vpop.permute.xlu2 %954 }
 0xef5   :  { %v957_v54 = vmul.f32 %v955_v12, %v952_v27 }
 0xef7   :  { %v3855_v55 = vadd.f32 %v958_v17, %v957_v54 }
 0xef9   :  { %1023 = vrot.lane.b32.xlu1 %v3855_v55, %s3309_s28 }
 0xf0c   :  { %v1144_v25 = vpop.permute.xlu1 %1143 }
 0xf0d   :  { %v1146_v62 = vadd.f32 %v1144_v25, %v3533_v21 }
 0xf0f   :  { %3181 = vtanh.f32 %v1146_v62 }
 0xf15   :  { %v3182_v56 = vpop.eup %3181 }
 0xf16   :  { %1150 = vrot.lane.b32.xlu0 %v3182_v56, %s3309_s28 }
 0xf6b   :  { %v1024_v15 = vpop.permute.xlu1 %1023 }
 0xf6c   :  { %1026 = vst.msk [vmem:[#allocation2 + $0x28] sm:$0xff] %vm218_vm5, %v1024_v15  ;;  %3009 = vmatmul.msk.f32.vlgmr.msrb.gmra.mxu2 %vm218_vm5, %v1024_v15  ;;  %v3908_v15 = vld [vmem:[%s4453_s13 + $0x10] sm:$0xff] }
 0xf73   :  { %v1307_v4 = vld [vmem:[#allocation2 + $0x28] sm:$0xff] }
 0xf74   :  { %3022 = vmatmul.msk.f32.gmra.mxu0 %vm218_vm5, %v1307_v4  ;;  %v3917_v4 = vld [vmem:[%s4453_s13 + $0x8] sm:$0xff] }
 0xf88   :  { %v1151_v21 = vpop.permute.xlu0 %1150 }
 0xf89   :  { %v1153_v1 = vmul.f32 %v1151_v21, %v1148_v19  ;;  %v3924_v19 = vld [vmem:[%s4453_s13] sm:$0xff] }
 0xf8b   :  { %v3869_v3 = vadd.f32 %v1154_v22, %v1153_v1 }
 0xf8d   :  { %1162 = vrot.lane.b32.xlu2 %v3869_v3, %s3309_s28 }
 0xfe7   :  { %v1163_v5 = vpop.permute.xlu2 %1162 }
 0xfe8   :  { %1165 = vst.msk [vmem:[#allocation3 + $0x8] sm:$0xff] %vm218_vm5, %v1163_v5  ;;  %3015 = vmatmul.msk.f32.vlgmr.msrb.gmra.mxu3 %vm218_vm5, %v1163_v5 }
 0xfef   :  { %v1051_v33 = vpop.f32.mrf.mxu2 }
 0xff0   :  { %v1074_v7 = vadd.f32 %v1051_v33, %v3618_v11  ;;  %v1054_v16 = vadd.f32 %v1051_v33, %v156_v26 }
 0xff2   :  { %1076 = vrot.lane.b32.xlu0 %v1074_v7, %s3307_s2  ;;  %v3010_v28 = vmul.f32 -1.442695, %v1054_v16  ;;  %v1454_v16 = vld [vmem:[%s4455_s12 + $0x10] sm:$0xff] }
 0xff4   :  { %3183 = vpow2.f32 %v3010_v28  ;;  %v1452_v28 = vld [vmem:[%s4455_s12] sm:$0xff] }
 0xffa   :  { %v3184_v30 = vpop.eup %3183 }
 0xffb   :  { %v1058_v32 = vadd.f32 1.0, %v3184_v30 }
 0xffd   :  { %3185 = vrcp.f32 %v1058_v32  ;;  %v1070_v2 = vand.u32 2147483648, %v1058_v32  ;;  %vm1064_vm13 = vweird.f32 %v1058_v32  ;;  %v1068_v40 = vand.u32 2147483647, %v1058_v32 }
 0xfff   :  { %v1071_v42 = vor.u32 1.1754944e-38, %v1070_v2  ;;  %vm1069_vm15 = vcmp.eq.f32.partialorder %v1068_v40, 8.507059e+37  ;;  %v1447_v2 = vld [vmem:[#allocation3 + $0x18] sm:$0xff]  ;;  %v1448_v40 = vld [vmem:[#allocation3 + $0x20] sm:$0xff] }
0x1003   :  { %v3186_v34 = vpop.eup %3185 }
0x1004   :  { %v1060_v35 = vmul.f32 %v3186_v34, %v1058_v32  ;;  %vm1065_vm12 = vweird.f32 %v3186_v34 }
0x1005   :  { %vm1066_vm14 = vmor %vm1064_vm13, %vm1065_vm12 }
0x1006   :  { %v1061_v36 = vsub.f32 1.0, %v1060_v35  ;;  %v1446_v35 = vld [vmem:[#allocation3 + $0x10] sm:$0xff] }
0x1008   :  { %v1062_v38 = vmul.f32 %v3186_v34, %v1061_v36 }
0x100a   :  { %v1063_v39 = vadd.f32 %v3186_v34, %v1062_v38 }
0x100c   :  { %v1067_v41 = vsel %vm1066_vm14, %v3186_v34, %v1063_v39  ;;  %v1445_v34 = vld [vmem:[#allocation3 + $0x8] sm:$0xff] }
0x100d   :  { %v1072_v44 = vsel %vm1069_vm15, %v1071_v42, %v1067_v41  ;;  %v1449_v41 = vld [vmem:[#allocation3 + $0x28] sm:$0xff]  ;;  %v1450_v42 = vld [vmem:[#allocation3 + $0x30] sm:$0xff] }
0x100e   :  { %v1086_v50 = vsub.f32 1.0, %v1072_v44  ;;  %v1092_v12 = vmul.f32 %v1072_v44, %v3855_v55  ;;  %v3903_v55 = vld [vmem:[%s4453_s13 + $0x18] sm:$0xff] }
0x100f   :  { %1558 = vmatpush.msra.mxu3 %v3903_v55 }
0x1011   :  { %1559 = vmatpush.msra.mxu3 %v3908_v15 }
0x1013   :  { %1560 = vmatpush.msra.mxu3 %v3917_v4 }
0x1015   :  { %1561 = vmatpush.msra.mxu3 %v3924_v19 }
0x1016   :  { %1562 = vmatmul.f32.vlgmr.msra.gmra.mxu3 %v3308_v8 }
0x1017   :  { %1630 = vmatpush.msrb.mxu3 %v3903_v55 }
0x1019   :  { %1631 = vmatpush.msrb.mxu3 %v3908_v15 }
0x101b   :  { %1632 = vmatpush.msrb.mxu3 %v3917_v4 }
0x101d   :  { %1633 = vmatpush.msrb.mxu3 %v3924_v19 }
0x101f   :  { %1697 = vmatpush.msra.mxu3 %v3903_v55 }
0x1021   :  { %1698 = vmatpush.msra.mxu3 %v3908_v15 }
0x1023   :  { %1699 = vmatpush.msra.mxu3 %v3917_v4 }
0x1025   :  { %1700 = vmatpush.msra.mxu3 %v3924_v19 }
0x1064   :  { %v1077_v13 = vpop.permute.xlu0 %1076 }
0x1065   :  { %v1079_v45 = vmul.f32 %v1077_v13, %v1072_v44  ;;  %v1451_v13 = vld [vmem:[#allocation3 + $0x38] sm:$0xff] }
0x1067   :  { %1081 = vrot.lane.b32.xlu2 %v1079_v45, %s3307_s2  ;;  %v1355_v45 = vpop.f32.mrf.mxu0 }
0x106b   :  { %v1247_v46 = vpop.f32.mrf.mxu3 }
0x106c   :  { %v1270_v31 = vadd.f32 %v1247_v46, %v3531_v20  ;;  %v1250_v14 = vadd.f32 %v1247_v46, %v3529_v18  ;;  %v1420_v46 = vpop.f32.mrf.mxu1 }
0x106e   :  { %1272 = vrot.lane.b32.xlu1 %v1270_v31, %s3307_s2  ;;  %v3016_v47 = vmul.f32 -1.442695, %v1250_v14  ;;  %v1421_v31 = vadd.f32 %v1420_v46, %v1355_v45  ;;  %v3972_v14 = vld [vmem:[%s4454_s14] ss:$0 sm:$0xff] }
0x1070   :  { %3187 = vpow2.f32 %v3016_v47 }
0x1076   :  { %v3188_v48 = vpop.eup %3187 }
0x1077   :  { %v1254_v49 = vadd.f32 1.0, %v3188_v48 }
0x1079   :  { %3189 = vrcp.f32 %v1254_v49  ;;  %v1266_v29 = vand.u32 2147483648, %v1254_v49  ;;  %vm1260_vm2 = vweird.f32 %v1254_v49  ;;  %v1264_v61 = vand.u32 2147483647, %v1254_v49 }
0x107b   :  { %v1267_v0 = vor.u32 1.1754944e-38, %v1266_v29  ;;  %vm1265_vm4 = vcmp.eq.f32.partialorder %v1264_v61, 8.507059e+37 }
0x107f   :  { %v3190_v37 = vpop.eup %3189 }
0x1080   :  { %v1256_v59 = vmul.f32 %v3190_v37, %v1254_v49  ;;  %vm1261_vm1 = vweird.f32 %v3190_v37 }
0x1081   :  { %vm1262_vm3 = vmor %vm1260_vm2, %vm1261_vm1 }
0x1082   :  { %v1257_v60 = vsub.f32 1.0, %v1256_v59 }
0x1084   :  { %v1258_v43 = vmul.f32 %v3190_v37, %v1257_v60 }
0x1086   :  { %v1259_v20 = vadd.f32 %v3190_v37, %v1258_v43 }
0x1088   :  { %v1263_v63 = vsel %vm1262_vm3, %v3190_v37, %v1259_v20 }
0x1089   :  { %v1268_v10 = vsel %vm1265_vm4, %v1267_v0, %v1263_v63 }
0x108a   :  { %v1282_v22 = vsub.f32 1.0, %v1268_v10  ;;  %v1288_v5 = vmul.f32 %v1268_v10, %v3869_v3  ;;  %v1453_v3 = vld [vmem:[%s4455_s12 + $0x8] sm:$0xff] }
0x1099   :  { %v1563_v36 = vpop.f32.mrf.mxu3 }
0x10c1   :  { %v1082_v51 = vpop.permute.xlu2 %1081 }
0x10c2   :  { %v1084_v52 = vadd.f32 %v1082_v51, %v156_v26  ;;  %v1455_v26 = vld [vmem:[%s4455_s12 + $0x18] sm:$0xff] }
0x10c3   :  { %1492 = vmatpush.msrb.mxu2 %v1455_v26 }
0x10c4   :  { %3191 = vtanh.f32 %v1084_v52 }
0x10c5   :  { %1493 = vmatpush.msrb.mxu2 %v1454_v16 }
0x10c7   :  { %1494 = vmatpush.msrb.mxu2 %v1453_v3 }
0x10c9   :  { %1495 = vmatpush.msrb.mxu2 %v1452_v28 }
0x10ca   :  { %v3192_v58 = vpop.eup %3191 }
0x10cb   :  { %1088 = vrot.lane.b32.xlu1 %v3192_v58, %s3309_s28 }
0x10e0   :  { %v1273_v9 = vpop.permute.xlu1 %1272 }
0x10e1   :  { %v1275_v53 = vmul.f32 %v1273_v9, %v1268_v10 }
0x10e3   :  { %1277 = vrot.lane.b32.xlu0 %v1275_v53, %s3307_s2 }
0x113d   :  { %v1089_v27 = vpop.permute.xlu1 %1088 }
0x113e   :  { %v1091_v17 = vmul.f32 %v1089_v27, %v1086_v50 }
0x1140   :  { %v3890_v54 = vadd.f32 %v1092_v12, %v1091_v17 }
0x1142   :  { %1157 = vrot.lane.b32.xlu0 %v3890_v54, %s3309_s28 }
0x1155   :  { %v1278_v25 = vpop.permute.xlu0 %1277 }
0x1156   :  { %v1280_v62 = vadd.f32 %v1278_v25, %v3529_v18  ;;  %v3100_v18 = vld [vmem:[%s4452_s15] ss:$0 sm:$0xff]  ;;  %s4487_s15 = sld [smem:[#allocation14_spill]] }
0x1158   :  { %3193 = vtanh.f32 %v1280_v62 }
0x115e   :  { %v3194_v56 = vpop.eup %3193 }
0x115f   :  { %1284 = vrot.lane.b32.xlu2 %v3194_v56, %s3309_s28 }
0x1167   :  { %1588 = vrot.lane.b32.xlu2 %v3100_v18, %s3307_s2 }
0x11b4   :  { %v1158_v21 = vpop.permute.xlu0 %1157 }
0x11b5   :  { %1160 = vst.msk [vmem:[#allocation2 + $0x30] sm:$0xff] %vm218_vm5, %v1158_v21  ;;  %3013 = vmatmul.msk.f32.vlgmr.msra.gmra.mxu2 %vm218_vm5, %v1158_v21 }
0x11b9   :  { %v1285_v1 = vpop.permute.xlu2 %1284 }
0x11ba   :  { %v1287_v33 = vmul.f32 %v1285_v1, %v1282_v22 }
0x11bc   :  { %v1289_v7 = vadd.f32 %v1288_v5, %v1287_v33  ;;  %v1308_v24 = vld [vmem:[#allocation2 + $0x30] sm:$0xff]  ;;  %v1358_v5 = vpop.f32.mrf.mxu0  ;;  %v1423_v33 = vpop.f32.mrf.mxu1 }
0x11bd   :  { %3023 = vmatmul.msk.f32.gmra.mxu0 %vm218_vm5, %v1308_v24  ;;  %v1424_v24 = vadd.f32 %v1423_v33, %v1358_v5 }
0x11be   :  { %1296 = vrot.lane.b32.xlu1 %v1289_v7, %s3309_s28 }
0x11c1   :  { %v3958_v38 = vpop.permute.xlu2 %1588 }
0x11c2   :  { %v1591_v39 = vadd.f32 %v3958_v38, %v1563_v36 }
0x11c4   :  { %1593 = vrot.lane.b32.xlu0 %v1591_v39, %s3307_s2 }
0x1230   :  { %v1297_v30 = vpop.permute.xlu1 %1296 }
0x1231   :  { %1299 = vst.msk [vmem:[#allocation3] sm:$0xff] %vm218_vm5, %v1297_v30 }
0x1236   :  { %v1594_v9 = vpop.permute.xlu0 %1593 }
0x1238   :  { %v1444_v32 = vld [vmem:[#allocation3] sm:$0xff]  ;;  %v3967_v44 = vpop.f32.mrf.mxu2 }
0x1239   :  { %3033 = vmatmul.msk.f32.vlgmr.msrb.gmra.mxu2 %vm218_vm5, %v1444_v32 }
0x1241   :  { %3034 = vmatmul.msk.f32.gmra.mxu2 %vm218_vm5, %v1445_v34 }
0x1249   :  { %3035 = vmatmul.msk.f32.gmra.mxu2 %vm218_vm5, %v1446_v35 }
0x1251   :  { %3036 = vmatmul.msk.f32.gmra.mxu2 %vm218_vm5, %v1447_v2 }
0x1259   :  { %3037 = vmatmul.msk.f32.gmra.mxu2 %vm218_vm5, %v1448_v40 }
0x1261   :  { %3038 = vmatmul.msk.f32.gmra.mxu2 %vm218_vm5, %v1449_v41 }
0x1269   :  { %3039 = vmatmul.msk.f32.gmra.mxu2 %vm218_vm5, %v1450_v42 }
0x1271   :  { %3040 = vmatmul.msk.f32.gmra.mxu2 %vm218_vm5, %v1451_v13 }
0x12bc   :  { %v1497_v47 = vpop.f32.mrf.mxu2 }
0x12bd   :  { %v1521_v48 = vadd.f32 %v1497_v47, %v1421_v31 }
0x12bf   :  { %v1533_v49 = vadd.f32 %v3972_v14, %v1521_v48 }
0x12c1   :  { %v1566_v51 = vadd.f32 %v1563_v36, %v1533_v49 }
0x12c3   :  { %v3041_v52 = vmul.f32 -1.442695, %v1566_v51 }
0x12c4   :  { %v1500_v7 = vpop.f32.mrf.mxu2 }
0x12c5   :  { %3195 = vpow2.f32 %v3041_v52  ;;  %v1522_v26 = vadd.f32 %v1500_v7, %v1424_v24 }
0x12c7   :  { %v1534_v16 = vadd.f32 %v3972_v14, %v1522_v26 }
0x12cb   :  { %v3196_v37 = vpop.eup %3195 }
0x12cc   :  { %v1570_v58 = vadd.f32 1.0, %v3196_v37 }
0x12ce   :  { %3197 = vrcp.f32 %v1570_v58  ;;  %v1582_v20 = vand.u32 2147483648, %v1570_v58  ;;  %v1580_v61 = vand.u32 2147483647, %v1570_v58  ;;  %vm1576_vm7 = vweird.f32 %v1570_v58 }
0x12d0   :  { %v1583_v0 = vor.u32 1.1754944e-38, %v1582_v20  ;;  %vm1581_vm9 = vcmp.eq.f32.partialorder %v1580_v61, 8.507059e+37  ;;  %v1426_v61 = vpop.f32.mrf.mxu1 }
0x12d4   :  { %v3198_v59 = vpop.eup %3197 }
0x12d5   :  { %v1572_v60 = vmul.f32 %v3198_v59, %v1570_v58  ;;  %vm1577_vm6 = vweird.f32 %v3198_v59 }
0x12d6   :  { %vm1578_vm8 = vmor %vm1576_vm7, %vm1577_vm6 }
0x12d7   :  { %v1573_v43 = vsub.f32 1.0, %v1572_v60 }
0x12d9   :  { %v1574_v29 = vmul.f32 %v3198_v59, %v1573_v43 }
0x12db   :  { %v1575_v63 = vadd.f32 %v3198_v59, %v1574_v29  ;;  %v1361_v29 = vpop.f32.mrf.mxu0 }
0x12dd   :  { %v1579_v10 = vsel %vm1578_vm8, %v3198_v59, %v1575_v63  ;;  %v1503_v63 = vpop.f32.mrf.mxu2 }
0x12de   :  { %v1584_v53 = vsel %vm1581_vm9, %v1583_v0, %v1579_v10  ;;  %v1427_v0 = vadd.f32 %v1426_v61, %v1361_v29 }
0x12df   :  { %v1596_v50 = vmul.f32 %v1594_v9, %v1584_v53  ;;  %v1603_v25 = vsub.f32 1.0, %v1584_v53  ;;  %v1609_v56 = vmul.f32 0.0, %v1584_v53 }
0x12e0   :  { %v1523_v9 = vadd.f32 %v1503_v63, %v1427_v0 }
0x12e1   :  { %1598 = vrot.lane.b32.xlu1 %v1596_v50, %s3307_s2 }
0x12e2   :  { %v1535_v10 = vadd.f32 %v3972_v14, %v1523_v9 }
0x1353   :  { %v1599_v27 = vpop.permute.xlu1 %1598 }
0x1354   :  { %v1601_v12 = vadd.f32 %v1599_v27, %v1533_v49 }
0x1356   :  { %3199 = vtanh.f32 %v1601_v12 }
0x135c   :  { %v3200_v17 = vpop.eup %3199 }
0x135d   :  { %1605 = vrot.lane.b32.xlu2 %v3200_v17, %s3309_s28 }
0x13b7   :  { %v1606_v62 = vpop.permute.xlu2 %1605 }
0x13b8   :  { %v1608_v57 = vmul.f32 %v1606_v62, %v1603_v25 }
0x13ba   :  { %v1610_v18 = vadd.f32 %v1609_v56, %v1608_v57 }
0x13bc   :  { %1612 = vrot.lane.b32.xlu0 %v1610_v18, %s3309_s28 }
0x142e   :  { %v1613_v21 = vpop.permute.xlu0 %1612 }
0x142f   :  { %1615 = vst.msk [vmem:[#allocation4] sm:$0xff] %vm218_vm5, %v1613_v21  ;;  %3042 = vmatmul.msk.f32.vlgmr.msrb.gmra.mxu3 %vm218_vm5, %v1613_v21 }
0x1430   :  { %1764 = vmatpush.msrb.mxu3 %v3903_v55 }
0x1432   :  { %1765 = vmatpush.msrb.mxu3 %v3908_v15 }
0x1434   :  { %1766 = vmatpush.msrb.mxu3 %v3917_v4 }
0x1436   :  { %1767 = vmatpush.msrb.mxu3 %v3924_v19 }
0x14b2   :  { %v1635_v22 = vpop.f32.mrf.mxu3 }
0x14b3   :  { %v1658_v1 = vadd.f32 %v1635_v22, %v3958_v38  ;;  %v1638_v3 = vadd.f32 %v1635_v22, %v1534_v16 }
0x14b5   :  { %1660 = vrot.lane.b32.xlu1 %v1658_v1, %s3307_s2  ;;  %v3043_v28 = vmul.f32 -1.442695, %v1638_v3 }
0x14b7   :  { %3201 = vpow2.f32 %v3043_v28 }
0x14bd   :  { %v3202_v30 = vpop.eup %3201 }
0x14be   :  { %v1642_v32 = vadd.f32 1.0, %v3202_v30 }
0x14c0   :  { %3203 = vrcp.f32 %v1642_v32  ;;  %v1654_v40 = vand.u32 2147483648, %v1642_v32  ;;  %vm1648_vm11 = vweird.f32 %v1642_v32  ;;  %v1652_v41 = vand.u32 2147483647, %v1642_v32 }
0x14c2   :  { %v1655_v13 = vor.u32 1.1754944e-38, %v1654_v40  ;;  %vm1653_vm13 = vcmp.eq.f32.partialorder %v1652_v41, 8.507059e+37  ;;  %v1429_v40 = vpop.f32.mrf.mxu1  ;;  %v1506_v41 = vpop.f32.mrf.mxu2 }
0x14c6   :  { %v3204_v34 = vpop.eup %3203 }
0x14c7   :  { %v1644_v35 = vmul.f32 %v3204_v34, %v1642_v32  ;;  %vm1649_vm10 = vweird.f32 %v3204_v34 }
0x14c8   :  { %vm1650_vm12 = vmor %vm1648_vm11, %vm1649_vm10 }
0x14c9   :  { %v1645_v36 = vsub.f32 1.0, %v1644_v35 }
0x14cb   :  { %v1646_v39 = vmul.f32 %v3204_v34, %v1645_v36 }
0x14cd   :  { %v1647_v2 = vadd.f32 %v3204_v34, %v1646_v39 }
0x14cf   :  { %v1651_v42 = vsel %vm1650_vm12, %v3204_v34, %v1647_v2  ;;  %v1364_v2 = vpop.f32.mrf.mxu0 }
0x14d0   :  { %v1656_v46 = vsel %vm1653_vm13, %v1655_v13, %v1651_v42  ;;  %v1430_v42 = vadd.f32 %v1429_v40, %v1364_v2 }
0x14d1   :  { %v1670_v51 = vsub.f32 1.0, %v1656_v46  ;;  %v1676_v37 = vmul.f32 %v1656_v46, %v1610_v18 }
0x14d2   :  { %v1524_v13 = vadd.f32 %v1506_v41, %v1430_v42 }
0x1527   :  { %v1661_v45 = vpop.permute.xlu1 %1660 }
0x1528   :  { %v1663_v31 = vmul.f32 %v1661_v45, %v1656_v46  ;;  %v1536_v45 = vadd.f32 %v3972_v14, %v1524_v13 }
0x152a   :  { %1665 = vrot.lane.b32.xlu2 %v1663_v31, %s3307_s2 }
0x1584   :  { %v1666_v47 = vpop.permute.xlu2 %1665 }
0x1585   :  { %v1668_v48 = vadd.f32 %v1666_v47, %v1534_v16 }
0x1587   :  { %3205 = vtanh.f32 %v1668_v48 }
0x158d   :  { %v3206_v49 = vpop.eup %3205 }
0x158e   :  { %1672 = vrot.lane.b32.xlu0 %v3206_v49, %s3309_s28 }
0x1600   :  { %v1673_v52 = vpop.permute.xlu0 %1672 }
0x1601   :  { %v1675_v58 = vmul.f32 %v1673_v52, %v1670_v51 }
0x1603   :  { %v1677_v59 = vadd.f32 %v1676_v37, %v1675_v58 }
0x1605   :  { %1679 = vrot.lane.b32.xlu1 %v1677_v59, %s3309_s28 }
0x1677   :  { %v1680_v60 = vpop.permute.xlu1 %1679 }
0x1678   :  { %1682 = vst.msk [vmem:[#allocation4 + $0x8] sm:$0xff] %vm218_vm5, %v1680_v60  ;;  %3044 = vmatmul.msk.f32.vlgmr.msra.gmra.mxu3 %vm218_vm5, %v1680_v60 }
0x1679   :  { %1831 = vmatpush.msra.mxu3 %v3903_v55 }
0x167b   :  { %1832 = vmatpush.msra.mxu3 %v3908_v15 }
0x167d   :  { %1833 = vmatpush.msra.mxu3 %v3917_v4 }
0x167f   :  { %1834 = vmatpush.msra.mxu3 %v3924_v19 }
0x16fb   :  { %v1702_v43 = vpop.f32.mrf.mxu3 }
0x16fc   :  { %v1725_v20 = vadd.f32 %v1702_v43, %v3958_v38  ;;  %v1705_v53 = vadd.f32 %v1702_v43, %v1535_v10 }
0x16fe   :  { %1727 = vrot.lane.b32.xlu2 %v1725_v20, %s3307_s2  ;;  %v3045_v50 = vmul.f32 -1.442695, %v1705_v53  ;;  %v1208_v53 = vadd.f32 %v3967_v44, %v3618_v11  ;;  %v159_v11 = vadd.f32 %v3880_v23, %v3611_v6 }
0x1700   :  { %3207 = vpow2.f32 %v3045_v50 }
0x1706   :  { %v3208_v27 = vpop.eup %3207 }
0x1707   :  { %v1709_v12 = vadd.f32 1.0, %v3208_v27 }
0x1709   :  { %3209 = vrcp.f32 %v1709_v12  ;;  %v1721_v18 = vand.u32 2147483648, %v1709_v12  ;;  %vm1715_vm15 = vweird.f32 %v1709_v12  ;;  %v1719_v21 = vand.u32 2147483647, %v1709_v12 }
0x170b   :  { %v1722_v1 = vor.u32 1.1754944e-38, %v1721_v18  ;;  %vm1720_vm2 = vcmp.eq.f32.partialorder %v1719_v21, 8.507059e+37 }
0x170f   :  { %v3210_v17 = vpop.eup %3209 }
0x1710   :  { %v1711_v25 = vmul.f32 %v3210_v17, %v1709_v12  ;;  %vm1716_vm14 = vweird.f32 %v3210_v17 }
0x1711   :  { %vm1717_vm1 = vmor %vm1715_vm15, %vm1716_vm14 }
0x1712   :  { %v1712_v62 = vsub.f32 1.0, %v1711_v25 }
0x1714   :  { %v1713_v56 = vmul.f32 %v3210_v17, %v1712_v62 }
0x1716   :  { %v1714_v57 = vadd.f32 %v3210_v17, %v1713_v56  ;;  %v1188_v56 = vadd.f32 %v3967_v44, %v159_v11 }
0x1718   :  { %v1718_v22 = vsel %vm1717_vm1, %v3210_v17, %v1714_v57  ;;  %v3014_v57 = vmul.f32 -1.442695, %v1188_v56 }
0x1719   :  { %v1723_v33 = vsel %vm1720_vm2, %v1722_v1, %v1718_v22 }
0x171a   :  { %v1737_v3 = vsub.f32 1.0, %v1723_v33  ;;  %v1743_v30 = vmul.f32 %v1723_v33, %v1677_v59 }
0x1758   :  { %v1728_v5 = vpop.permute.xlu2 %1727 }
0x1759   :  { %v1730_v7 = vmul.f32 %v1728_v5, %v1723_v33 }
0x175b   :  { %1732 = vrot.lane.b32.xlu0 %v1730_v7, %s3307_s2 }
0x17cd   :  { %v1733_v24 = vpop.permute.xlu0 %1732 }
0x17ce   :  { %v1735_v26 = vadd.f32 %v1733_v24, %v1535_v10 }
0x17d0   :  { %3211 = vtanh.f32 %v1735_v26 }
0x17d6   :  { %v3212_v16 = vpop.eup %3211 }
0x17d7   :  { %1739 = vrot.lane.b32.xlu1 %v3212_v16, %s3309_s28 }
0x1849   :  { %v1740_v28 = vpop.permute.xlu1 %1739 }
0x184a   :  { %v1742_v32 = vmul.f32 %v1740_v28, %v1737_v3 }
0x184c   :  { %v1744_v34 = vadd.f32 %v1743_v30, %v1742_v32  ;;  %v1367_v32 = vpop.f32.mrf.mxu0 }
0x184e   :  { %1746 = vrot.lane.b32.xlu2 %v1744_v34, %s3309_s28 }
0x18a8   :  { %v1747_v35 = vpop.permute.xlu2 %1746 }
0x18a9   :  { %1749 = vst.msk [vmem:[#allocation4 + $0x10] sm:$0xff] %vm218_vm5, %v1747_v35  ;;  %3046 = vmatmul.msk.f32.vlgmr.msrb.gmra.mxu3 %vm218_vm5, %v1747_v35  ;;  %v1509_v35 = vpop.f32.mrf.mxu2 }
0x18aa   :  { %1898 = vmatpush.msrb.mxu3 %v3903_v55 }
0x18ac   :  { %1899 = vmatpush.msrb.mxu3 %v3908_v15 }
0x18ae   :  { %1900 = vmatpush.msrb.mxu3 %v3917_v4 }
0x18b0   :  { %1901 = vmatpush.msrb.mxu3 %v3924_v19 }
0x192c   :  { %v1769_v36 = vpop.f32.mrf.mxu3 }
0x192d   :  { %v1792_v39 = vadd.f32 %v1769_v36, %v3958_v38  ;;  %v1772_v46 = vadd.f32 %v1769_v36, %v1536_v45 }
0x192f   :  { %1794 = vrot.lane.b32.xlu0 %v1792_v39, %s3307_s2  ;;  %v3047_v31 = vmul.f32 -1.442695, %v1772_v46 }
0x1931   :  { %3213 = vpow2.f32 %v3047_v31 }
0x1937   :  { %v3214_v47 = vpop.eup %3213 }
0x1938   :  { %v1776_v48 = vadd.f32 1.0, %v3214_v47 }
0x193a   :  { %3215 = vrcp.f32 %v1776_v48  ;;  %v1788_v59 = vand.u32 2147483648, %v1776_v48  ;;  %vm1782_vm4 = vweird.f32 %v1776_v48  ;;  %v1786_v60 = vand.u32 2147483647, %v1776_v48 }
0x193c   :  { %v1789_v20 = vor.u32 1.1754944e-38, %v1788_v59  ;;  %vm1787_vm7 = vcmp.eq.f32.partialorder %v1786_v60, 8.507059e+37 }
0x1940   :  { %v3216_v49 = vpop.eup %3215 }
0x1941   :  { %v1778_v51 = vmul.f32 %v3216_v49, %v1776_v48  ;;  %vm1783_vm3 = vweird.f32 %v3216_v49 }
0x1942   :  { %vm1784_vm6 = vmor %vm1782_vm4, %vm1783_vm3 }
0x1943   :  { %v1779_v52 = vsub.f32 1.0, %v1778_v51 }
0x1945   :  { %v1780_v37 = vmul.f32 %v3216_v49, %v1779_v52 }
0x1947   :  { %v1781_v58 = vadd.f32 %v3216_v49, %v1780_v37 }
0x1949   :  { %v1785_v43 = vsel %vm1784_vm6, %v3216_v49, %v1781_v58 }
0x194a   :  { %v1790_v61 = vsel %vm1787_vm7, %v1789_v20, %v1785_v43 }
0x194b   :  { %v1804_v50 = vsub.f32 1.0, %v1790_v61  ;;  %v1810_v12 = vmul.f32 %v1790_v61, %v1744_v34  ;;  %v1432_v34 = vpop.f32.mrf.mxu1 }
0x194c   :  { %v1433_v36 = vadd.f32 %v1432_v34, %v1367_v32  ;;  %v2087_v32 = vld [vmem:[#allocation4 + $0x10] sm:$0xff] }
0x194e   :  { %v1525_v39 = vadd.f32 %v1509_v35, %v1433_v36 }
0x1950   :  { %v1537_v2 = vadd.f32 %v3972_v14, %v1525_v39  ;;  %v1370_v39 = vpop.f32.mrf.mxu0 }
0x19a1   :  { %v1795_v29 = vpop.permute.xlu0 %1794 }
0x19a2   :  { %v1797_v63 = vmul.f32 %v1795_v29, %v1790_v61  ;;  %v88_v61 = vld [vmem:[%s4451_s1 + $0x38] sm:$0xff] }
0x19a3   :  { %3032 = vmatmul.msk.f32.gmra.mxu1 %vm95_vm0, %v88_v61 }
0x19a4   :  { %1799 = vrot.lane.b32.xlu1 %v1797_v63, %s3307_s2  ;;  %v4047_v63 = vld [vmem:[%s4457_s17 + $0x18] sm:$0xff] }
0x19a5   :  { %2255 = vmatpush.msra.mxu2 %v4047_v63  ;;  %2183 = vmatpush.msra.mxu1 %v4047_v63 }
0x1a16   :  { %v1800_v0 = vpop.permute.xlu1 %1799 }
0x1a17   :  { %v1802_v9 = vadd.f32 %v1800_v0, %v1536_v45  ;;  %v4053_v0 = vld [vmem:[%s4457_s17 + $0x10] sm:$0xff] }
0x1a18   :  { %2256 = vmatpush.msra.mxu2 %v4053_v0  ;;  %2184 = vmatpush.msra.mxu1 %v4053_v0 }
0x1a19   :  { %3217 = vtanh.f32 %v1802_v9  ;;  %v3102_v9 = vld [vmem:[%s4456_s19] ss:$0 sm:$0xff] }
0x1a1a   :  { %3219 = vpow2.f32 %v3014_v57  ;;  %v2096_v57 = vld [vmem:[%s4487_s15 + $0x18] sm:$0xff] }
0x1a1b   :  { %2137 = vmatpush.msra.mxu0 %v2096_v57 }
0x1a1f   :  { %v3218_v10 = vpop.eup %3217 }
0x1a20   :  { %1806 = vrot.lane.b32.xlu2 %v3218_v10, %s3309_s28  ;;  %v3220_v18 = vpop.eup %3219  ;;  %v4063_v10 = vld [vmem:[%s4457_s17 + $0x8] sm:$0xff] }
0x1a21   :  { %v1192_v21 = vadd.f32 1.0, %v3220_v18  ;;  %2257 = vmatpush.msra.mxu2 %v4063_v10  ;;  %2185 = vmatpush.msra.mxu1 %v4063_v10  ;;  %v2095_v18 = vld [vmem:[%s4487_s15 + $0x10] sm:$0xff] }
0x1a22   :  { %2138 = vmatpush.msra.mxu0 %v2095_v18 }
0x1a23   :  { %3221 = vrcp.f32 %v1192_v21  ;;  %v1204_v16 = vand.u32 2147483648, %v1192_v21  ;;  %vm1198_vm9 = vweird.f32 %v1192_v21  ;;  %v1202_v3 = vand.u32 2147483647, %v1192_v21 }
0x1a25   :  { %v1205_v23 = vor.u32 1.1754944e-38, %v1204_v16  ;;  %vm1203_vm11 = vcmp.eq.f32.partialorder %v1202_v3, 8.507059e+37 }
0x1a28   :  { %1210 = vrot.lane.b32.xlu2 %v1208_v53, %s3307_s2  ;;  %v4071_v53 = vld [vmem:[%s4457_s17] sm:$0xff] }
0x1a29   :  { %v3222_v22 = vpop.eup %3221  ;;  %2258 = vmatpush.msra.mxu2 %v4071_v53  ;;  %2186 = vmatpush.msra.mxu1 %v4071_v53 }
0x1a2a   :  { %v1194_v1 = vmul.f32 %v3222_v22, %v1192_v21  ;;  %vm1199_vm8 = vweird.f32 %v3222_v22  ;;  %2187 = vmatmul.f32.vlgmr.msra.gmra.mxu1 %v3308_v8  ;;  %v2094_v21 = vld [vmem:[%s4487_s15 + $0x8] sm:$0xff] }
0x1a2b   :  { %vm1200_vm10 = vmor %vm1198_vm9, %vm1199_vm8  ;;  %2456 = vmatpush.msrb.mxu2 %v4047_v63  ;;  %2389 = vmatpush.msrb.mxu1 %v4047_v63 }
0x1a2c   :  { %v1195_v5 = vsub.f32 1.0, %v1194_v1  ;;  %2139 = vmatpush.msra.mxu0 %v2094_v21 }
0x1a2d   :  { %2457 = vmatpush.msrb.mxu2 %v4053_v0  ;;  %2390 = vmatpush.msrb.mxu1 %v4053_v0 }
0x1a2e   :  { %v1196_v33 = vmul.f32 %v3222_v22, %v1195_v5 }
0x1a2f   :  { %2458 = vmatpush.msrb.mxu2 %v4063_v10  ;;  %2391 = vmatpush.msrb.mxu1 %v4063_v10 }
0x1a30   :  { %v1197_v24 = vadd.f32 %v3222_v22, %v1196_v33 }
0x1a31   :  { %2459 = vmatpush.msrb.mxu2 %v4071_v53  ;;  %2392 = vmatpush.msrb.mxu1 %v4071_v53 }
0x1a32   :  { %v1201_v6 = vsel %vm1200_vm10, %v3222_v22, %v1197_v24 }
0x1a33   :  { %v4031_v28 = vsel %vm1203_vm11, %v1205_v23, %v1201_v6  ;;  %2590 = vmatpush.msra.mxu1 %v4047_v63 }
0x1a35   :  { %2591 = vmatpush.msra.mxu1 %v4053_v0 }
0x1a37   :  { %2592 = vmatpush.msra.mxu1 %v4063_v10 }
0x1a39   :  { %2593 = vmatpush.msra.mxu1 %v4071_v53 }
0x1a7a   :  { %v1807_v27 = vpop.permute.xlu2 %1806 }
0x1a7b   :  { %v1809_v17 = vmul.f32 %v1807_v27, %v1804_v50 }
0x1a7d   :  { %v4016_v25 = vadd.f32 %v1810_v12, %v1809_v17  ;;  %v1220_v12 = vsub.f32 1.0, %v4031_v28 }
0x1a7f   :  { %1813 = vrot.lane.b32.xlu0 %v4016_v25, %s3309_s28 }
0x1a82   :  { %v1211_v44 = vpop.permute.xlu2 %1210 }
0x1a83   :  { %v1213_v30 = vmul.f32 %v1211_v44, %v4031_v28 }
0x1af1   :  { %v1814_v62 = vpop.permute.xlu0 %1813 }
0x1af2   :  { %1816 = vst.msk [vmem:[#allocation4 + $0x18] sm:$0xff] %vm218_vm5, %v1814_v62  ;;  %3048 = vmatmul.msk.f32.vlgmr.msra.gmra.mxu3 %vm218_vm5, %v1814_v62  ;;  %v1226_v62 = vmul.f32 %v4031_v28, %v3890_v54  ;;  %v2093_v54 = vld [vmem:[%s4487_s15] sm:$0xff] }
0x1af3   :  { %1965 = vmatpush.msra.mxu3 %v3903_v55  ;;  %2140 = vmatpush.msra.mxu0 %v2093_v54 }
0x1af5   :  { %1966 = vmatpush.msra.mxu3 %v3908_v15 }
0x1af7   :  { %1967 = vmatpush.msra.mxu3 %v3917_v4 }
0x1af9   :  { %1968 = vmatpush.msra.mxu3 %v3924_v19  ;;  %v2088_v34 = vld [vmem:[#allocation4 + $0x18] sm:$0xff] }
0x1b75   :  { %v1836_v7 = vpop.f32.mrf.mxu3 }
0x1b76   :  { %v1859_v26 = vadd.f32 %v1836_v7, %v3958_v38  ;;  %v1839_v40 = vadd.f32 %v1836_v7, %v1537_v2  ;;  %v4110_v7 = vpop.f32.mrf.mxu1 }
0x1b77   :  { %v1436_v61 = vadd.f32 %v4110_v7, %v1370_v39 }
0x1b78   :  { %1861 = vrot.lane.b32.xlu1 %v1859_v26, %s3307_s2  ;;  %v3049_v41 = vmul.f32 -1.442695, %v1839_v40 }
0x1b7a   :  { %3223 = vpow2.f32 %v3049_v41  ;;  %v4144_v41 = vld [vmem:[%s4459_s18] ss:$0 sm:$0xff] }
0x1b7e   :  { %v4116_v16 = vpop.f32.mrf.mxu1 }
0x1b80   :  { %1215 = vrot.lane.b32.xlu1 %v1213_v30, %s3307_s2  ;;  %v3224_v42 = vpop.eup %3223  ;;  %v2086_v30 = vld [vmem:[#allocation4 + $0x8] sm:$0xff] }
0x1b81   :  { %v1843_v13 = vadd.f32 1.0, %v3224_v42 }
0x1b83   :  { %3225 = vrcp.f32 %v1843_v13  ;;  %v1855_v49 = vand.u32 2147483648, %v1843_v13  ;;  %vm1849_vm13 = vweird.f32 %v1843_v13  ;;  %v1853_v51 = vand.u32 2147483647, %v1843_v13 }
0x1b85   :  { %v1856_v37 = vor.u32 1.1754944e-38, %v1855_v49  ;;  %vm1854_vm15 = vcmp.eq.f32.partialorder %v1853_v51, 8.507059e+37 }
0x1b86   :  { %v4120_v6 = vpop.f32.mrf.mxu1 }
0x1b89   :  { %v3226_v45 = vpop.eup %3225 }
0x1b8a   :  { %v1845_v46 = vmul.f32 %v3226_v45, %v1843_v13  ;;  %vm1850_vm12 = vweird.f32 %v3226_v45 }
0x1b8b   :  { %vm1851_vm14 = vmor %vm1849_vm13, %vm1850_vm12 }
0x1b8c   :  { %v1846_v31 = vsub.f32 1.0, %v1845_v46 }
0x1b8e   :  { %v1847_v47 = vmul.f32 %v3226_v45, %v1846_v31  ;;  %v2188_v44 = vpop.f32.mrf.mxu1 }
0x1b90   :  { %v1848_v48 = vadd.f32 %v3226_v45, %v1847_v47 }
0x1b92   :  { %v1852_v52 = vsel %vm1851_vm14, %v3226_v45, %v1848_v48 }
0x1b93   :  { %v4036_v59 = vsel %vm1854_vm15, %v1856_v37, %v1852_v52 }
0x1b94   :  { %v1871_v22 = vsub.f32 1.0, %v4036_v59  ;;  %v1877_v5 = vmul.f32 %v4036_v59, %v4016_v25  ;;  %v2085_v25 = vld [vmem:[#allocation4] sm:$0xff] }
0x1bea   :  { %v1862_v58 = vpop.permute.xlu1 %1861 }
0x1beb   :  { %v1864_v60 = vmul.f32 %v1862_v58, %v4036_v59 }
0x1bed   :  { %1866 = vrot.lane.b32.xlu0 %v1864_v60, %s3307_s2 }
0x1bf2   :  { %v1216_v43 = vpop.permute.xlu1 %1215 }
0x1bf3   :  { %v1218_v20 = vadd.f32 %v1216_v43, %v159_v11 }
0x1bf5   :  { %3227 = vtanh.f32 %v1218_v20 }
0x1bfb   :  { %v3228_v29 = vpop.eup %3227 }
0x1bfc   :  { %1222 = vrot.lane.b32.xlu0 %v3228_v29, %s3309_s28  ;;  %v1512_v29 = vpop.f32.mrf.mxu2 }
0x1c04   :  { %2213 = vrot.lane.b32.xlu0 %v3102_v9, %s3307_s2  ;;  %v1526_v9 = vadd.f32 %v1512_v29, %v1436_v61 }
0x1c5f   :  { %v1867_v50 = vpop.permute.xlu0 %1866 }
0x1c60   :  { %v1869_v27 = vadd.f32 %v1867_v50, %v1537_v2  ;;  %v4137_v2 = vpop.f32.mrf.mxu0  ;;  %v1538_v50 = vadd.f32 %v3972_v14, %v1526_v9 }
0x1c62   :  { %3229 = vtanh.f32 %v1869_v27 }
0x1c68   :  { %v3230_v8 = vpop.eup %3229 }
0x1c69   :  { %1873 = vrot.lane.b32.xlu2 %v3230_v8, %s3309_s28 }
0x1c6e   :  { %v1223_v17 = vpop.permute.xlu0 %1222 }
0x1c6f   :  { %v1225_v11 = vmul.f32 %v1223_v17, %v1220_v12 }
0x1c71   :  { %v1227_v56 = vadd.f32 %v1226_v62, %v1225_v11 }
0x1c73   :  { %1291 = vrot.lane.b32.xlu2 %v1227_v56, %s3309_s28 }
0x1c76   :  { %v4122_v23 = vpop.permute.xlu0 %2213 }
0x1c77   :  { %v2216_v28 = vadd.f32 %v4122_v23, %v2188_v44 }
0x1c7b   :  { %2218 = vrot.lane.b32.xlu2 %v2216_v28, %s3307_s2 }
0x1cc3   :  { %v1874_v1 = vpop.permute.xlu2 %1873 }
0x1cc4   :  { %v1876_v33 = vmul.f32 %v1874_v1, %v1871_v22 }
0x1cc6   :  { %v4112_v24 = vadd.f32 %v1877_v5, %v1876_v33 }
0x1cc8   :  { %1880 = vrot.lane.b32.xlu1 %v4112_v24, %s3309_s28 }
0x1ccd   :  { %v1292_v26 = vpop.permute.xlu2 %1291 }
0x1cce   :  { %1294 = vst.msk [vmem:[#allocation2 + $0x38] sm:$0xff] %vm218_vm5, %v1292_v26 }
0x1cd5   :  { %v1309_v3 = vld [vmem:[#allocation2 + $0x38] sm:$0xff]  ;;  %v2219_v60 = vpop.permute.xlu2 %2218 }
0x1cd6   :  { %3024 = vmatmul.msk.f32.gmra.mxu0 %vm218_vm5, %v1309_v3 }
0x1cde   :  { %3056 = vmatmul.msk.f32.vlgmr.msra.gmra.mxu0 %vm218_vm5, %v2085_v25 }
0x1ce6   :  { %3057 = vmatmul.msk.f32.gmra.mxu0 %vm218_vm5, %v2086_v30 }
0x1cee   :  { %3058 = vmatmul.msk.f32.gmra.mxu0 %vm218_vm5, %v2087_v32 }
0x1cf6   :  { %3059 = vmatmul.msk.f32.gmra.mxu0 %vm218_vm5, %v2088_v34 }
0x1d3a   :  { %v1881_v35 = vpop.permute.xlu1 %1880 }
0x1d3b   :  { %1883 = vst.msk [vmem:[#allocation4 + $0x20] sm:$0xff] %vm218_vm5, %v1881_v35  ;;  %3050 = vmatmul.msk.f32.vlgmr.msrb.gmra.mxu3 %vm218_vm5, %v1881_v35 }
0x1d3c   :  { %2032 = vmatpush.msrb.mxu3 %v3903_v55 }
0x1d3e   :  { %2033 = vmatpush.msrb.mxu3 %v3908_v15 }
0x1d40   :  { %2034 = vmatpush.msrb.mxu3 %v3917_v4 }
0x1d42   :  { %v2089_v36 = vld [vmem:[#allocation4 + $0x20] sm:$0xff]  ;;  %2035 = vmatpush.msrb.mxu3 %v3924_v19 }
0x1d43   :  { %3060 = vmatmul.msk.f32.gmra.mxu0 %vm218_vm5, %v2089_v36 }
0x1d53   :  { %v4139_v40 = vpop.f32.mrf.mxu0 }
0x1d5b   :  { %v2142_v55 = vpop.f32.mrf.mxu0 }
0x1d5c   :  { %v2143_v15 = vadd.f32 %v4144_v41, %v2142_v55 }
0x1d5e   :  { %v2191_v42 = vadd.f32 %v2188_v44, %v2143_v15 }
0x1d60   :  { %v3064_v4 = vmul.f32 -1.442695, %v2191_v42 }
0x1d62   :  { %3231 = vpow2.f32 %v3064_v4 }
0x1d68   :  { %v3232_v13 = vpop.eup %3231 }
0x1d69   :  { %v2195_v19 = vadd.f32 1.0, %v3232_v13 }
0x1d6b   :  { %3233 = vrcp.f32 %v2195_v19  ;;  %v2207_v49 = vand.u32 2147483648, %v2195_v19  ;;  %vm2201_vm1 = vweird.f32 %v2195_v19  ;;  %v2205_v52 = vand.u32 2147483647, %v2195_v19 }
0x1d6d   :  { %v2208_v59 = vor.u32 1.1754944e-38, %v2207_v49  ;;  %vm2206_vm3 = vcmp.eq.f32.partialorder %v2205_v52, 8.507059e+37  ;;  %v2145_v49 = vpop.f32.mrf.mxu0 }
0x1d71   :  { %v3234_v45 = vpop.eup %3233 }
0x1d72   :  { %v2197_v46 = vmul.f32 %v3234_v45, %v2195_v19  ;;  %vm2202_vm0 = vweird.f32 %v3234_v45 }
0x1d73   :  { %vm2203_vm2 = vmor %vm2201_vm1, %vm2202_vm0 }
0x1d74   :  { %v2198_v31 = vsub.f32 1.0, %v2197_v46 }
0x1d76   :  { %v2199_v47 = vmul.f32 %v3234_v45, %v2198_v31 }
0x1d78   :  { %v2200_v48 = vadd.f32 %v3234_v45, %v2199_v47 }
0x1d7a   :  { %v2204_v58 = vsel %vm2203_vm2, %v3234_v45, %v2200_v48  ;;  %v1515_v45 = vpop.f32.mrf.mxu2 }
0x1d7b   :  { %v2209_v43 = vsel %vm2206_vm3, %v2208_v59, %v2204_v58 }
0x1d7c   :  { %v2221_v20 = vmul.f32 %v2219_v60, %v2209_v43  ;;  %v2228_v32 = vsub.f32 1.0, %v2209_v43  ;;  %v2234_v35 = vmul.f32 0.0, %v2209_v43 }
0x1d82   :  { %v4177_v31 = vpop.f32.mrf.mxu2 }
0x1dbe   :  { %v1903_v51 = vpop.f32.mrf.mxu3 }
0x1dbf   :  { %v1926_v37 = vadd.f32 %v1903_v51, %v3958_v38  ;;  %v1906_v27 = vadd.f32 %v1903_v51, %v1538_v50  ;;  %v2146_v51 = vadd.f32 %v4144_v41, %v2145_v49 }
0x1dc1   :  { %1928 = vrot.lane.b32.xlu1 %v1926_v37, %s3307_s2  ;;  %v3051_v8 = vmul.f32 -1.442695, %v1906_v27 }
0x1dc3   :  { %3235 = vpow2.f32 %v3051_v8 }
0x1dc9   :  { %2223 = vrot.lane.b32.xlu1 %v2221_v20, %s3307_s2  ;;  %v3236_v12 = vpop.eup %3235 }
0x1dca   :  { %v1910_v17 = vadd.f32 1.0, %v3236_v12 }
0x1dcc   :  { %3237 = vrcp.f32 %v1910_v17  ;;  %v1922_v21 = vand.u32 2147483648, %v1910_v17  ;;  %vm1916_vm6 = vweird.f32 %v1910_v17  ;;  %v1920_v54 = vand.u32 2147483647, %v1910_v17 }
0x1dce   :  { %v1923_v1 = vor.u32 1.1754944e-38, %v1922_v21  ;;  %vm1921_vm8 = vcmp.eq.f32.partialorder %v1920_v54, 8.507059e+37 }
0x1dd2   :  { %v3238_v62 = vpop.eup %3237 }
0x1dd3   :  { %v1912_v11 = vmul.f32 %v3238_v62, %v1910_v17  ;;  %vm1917_vm4 = vweird.f32 %v3238_v62 }
0x1dd4   :  { %vm1918_vm7 = vmor %vm1916_vm6, %vm1917_vm4 }
0x1dd5   :  { %v1913_v56 = vsub.f32 1.0, %v1912_v11 }
0x1dd7   :  { %v1914_v57 = vmul.f32 %v3238_v62, %v1913_v56 }
0x1dd9   :  { %v1915_v18 = vadd.f32 %v3238_v62, %v1914_v57  ;;  %v1439_v57 = vadd.f32 %v4116_v16, %v4137_v2 }
0x1ddb   :  { %v1919_v22 = vsel %vm1918_vm7, %v3238_v62, %v1915_v18  ;;  %v1527_v18 = vadd.f32 %v1515_v45, %v1439_v57 }
0x1ddc   :  { %v1924_v33 = vsel %vm1921_vm8, %v1923_v1, %v1919_v22 }
0x1ddd   :  { %v1938_v55 = vsub.f32 1.0, %v1924_v33  ;;  %v1944_v42 = vmul.f32 %v1924_v33, %v4112_v24  ;;  %v1539_v21 = vadd.f32 %v3972_v14, %v1527_v18 }
0x1e33   :  { %v1929_v5 = vpop.permute.xlu1 %1928 }
0x1e34   :  { %v1931_v7 = vmul.f32 %v1929_v5, %v1924_v33 }
0x1e36   :  { %1933 = vrot.lane.b32.xlu0 %v1931_v7, %s3307_s2 }
0x1e3b   :  { %v2224_v26 = vpop.permute.xlu1 %2223 }
0x1e3c   :  { %v2226_v3 = vadd.f32 %v2224_v26, %v2143_v15 }
0x1e3e   :  { %3239 = vtanh.f32 %v2226_v3 }
0x1e44   :  { %v3240_v25 = vpop.eup %3239 }
0x1e45   :  { %2230 = vrot.lane.b32.xlu0 %v3240_v25, %s3309_s28 }
0x1ea8   :  { %v1934_v44 = vpop.permute.xlu0 %1933 }
0x1ea9   :  { %v1936_v28 = vadd.f32 %v1934_v44, %v1538_v50 }
0x1eab   :  { %3241 = vtanh.f32 %v1936_v28 }
0x1eb1   :  { %v3242_v30 = vpop.eup %3241 }
0x1eb2   :  { %1940 = vrot.lane.b32.xlu2 %v3242_v30, %s3309_s28 }
0x1eb7   :  { %v2231_v34 = vpop.permute.xlu0 %2230 }
0x1eb8   :  { %v2233_v36 = vmul.f32 %v2231_v34, %v2228_v32 }
0x1eba   :  { %v4155_v39 = vadd.f32 %v2234_v35, %v2233_v36 }
0x1ebc   :  { %2237 = vrot.lane.b32.xlu2 %v4155_v39, %s3309_s28 }
0x1f0c   :  { %v1941_v15 = vpop.permute.xlu2 %1940 }
0x1f0d   :  { %v1943_v4 = vmul.f32 %v1941_v15, %v1938_v55 }
0x1f0f   :  { %v4160_v13 = vadd.f32 %v1944_v42, %v1943_v4 }
0x1f11   :  { %1947 = vrot.lane.b32.xlu1 %v4160_v13, %s3309_s28 }
0x1f16   :  { %v2238_v19 = vpop.permute.xlu2 %2237 }
0x1f17   :  { %2240 = vst.msk [vmem:[#allocation5] sm:$0xff] %vm218_vm5, %v2238_v19  ;;  %3065 = vmatmul.msk.f32.vlgmr.msra.gmra.mxu2 %vm218_vm5, %v2238_v19 }
0x1f18   :  { %2657 = vmatpush.msra.mxu2 %v4047_v63 }
0x1f1a   :  { %2658 = vmatpush.msra.mxu2 %v4053_v0 }
0x1f1c   :  { %2659 = vmatpush.msra.mxu2 %v4063_v10 }
0x1f1e   :  { %2660 = vmatpush.msra.mxu2 %v4071_v53 }
0x1f83   :  { %v1948_v24 = vpop.permute.xlu1 %1947 }
0x1f84   :  { %1950 = vst.msk [vmem:[#allocation4 + $0x28] sm:$0xff] %vm218_vm5, %v1948_v24  ;;  %3052 = vmatmul.msk.f32.vlgmr.msra.gmra.mxu3 %vm218_vm5, %v1948_v24 }
0x1f85   :  { %2322 = vmatpush.msra.mxu3 %v4047_v63 }
0x1f87   :  { %2323 = vmatpush.msra.mxu3 %v4053_v0 }
0x1f89   :  { %2324 = vmatpush.msra.mxu3 %v4063_v10 }
0x1f8b   :  { %v2090_v46 = vld [vmem:[#allocation4 + $0x28] sm:$0xff]  ;;  %2325 = vmatpush.msra.mxu3 %v4071_v53 }
0x1f8c   :  { %3061 = vmatmul.msk.f32.gmra.mxu0 %vm218_vm5, %v2090_v46 }
0x1f9a   :  { %v2260_v47 = vpop.f32.mrf.mxu2 }
0x1f9b   :  { %v2283_v48 = vadd.f32 %v2260_v47, %v4122_v23  ;;  %v2263_v52 = vadd.f32 %v2260_v47, %v2146_v51 }
0x1f9d   :  { %2285 = vrot.lane.b32.xlu1 %v2283_v48, %s3307_s2  ;;  %v3066_v37 = vmul.f32 -1.442695, %v2263_v52 }
0x1f9f   :  { %3243 = vpow2.f32 %v3066_v37 }
0x1fa5   :  { %v3244_v58 = vpop.eup %3243 }
0x1fa6   :  { %v2267_v59 = vadd.f32 1.0, %v3244_v58 }
0x1fa8   :  { %3245 = vrcp.f32 %v2267_v59  ;;  %v2279_v27 = vand.u32 2147483648, %v2267_v59  ;;  %vm2273_vm10 = vweird.f32 %v2267_v59  ;;  %v2277_v8 = vand.u32 2147483647, %v2267_v59 }
0x1faa   :  { %v2280_v17 = vor.u32 1.1754944e-38, %v2279_v27  ;;  %vm2278_vm12 = vcmp.eq.f32.partialorder %v2277_v8, 8.507059e+37 }
0x1fae   :  { %v3246_v60 = vpop.eup %3245 }
0x1faf   :  { %v2269_v43 = vmul.f32 %v3246_v60, %v2267_v59  ;;  %vm2274_vm9 = vweird.f32 %v3246_v60 }
0x1fb0   :  { %vm2275_vm11 = vmor %vm2273_vm10, %vm2274_vm9 }
0x1fb1   :  { %v2270_v20 = vsub.f32 1.0, %v2269_v43  ;;  %v2148_v43 = vpop.f32.mrf.mxu0 }
0x1fb3   :  { %v2271_v29 = vmul.f32 %v3246_v60, %v2270_v20 }
0x1fb5   :  { %v2272_v50 = vadd.f32 %v3246_v60, %v2271_v29 }
0x1fb7   :  { %v2276_v12 = vsel %vm2275_vm11, %v3246_v60, %v2272_v50 }
0x1fb8   :  { %v2281_v62 = vsel %vm2278_vm12, %v2280_v17, %v2276_v12 }
0x1fb9   :  { %v2295_v4 = vsub.f32 1.0, %v2281_v62  ;;  %v2301_v24 = vmul.f32 %v2281_v62, %v4155_v39 }
0x2007   :  { %v1970_v61 = vpop.f32.mrf.mxu3 }
0x2008   :  { %v1993_v9 = vadd.f32 %v1970_v61, %v3958_v38  ;;  %v1973_v54 = vadd.f32 %v1970_v61, %v1539_v21 }
0x200a   :  { %1995 = vrot.lane.b32.xlu0 %v1993_v9, %s3307_s2  ;;  %v3053_v22 = vmul.f32 -1.442695, %v1973_v54 }
0x200c   :  { %3247 = vpow2.f32 %v3053_v22 }
0x200f   :  { %v2286_v11 = vpop.permute.xlu1 %2285 }
0x2010   :  { %v2288_v56 = vmul.f32 %v2286_v11, %v2281_v62 }
0x2012   :  { %2290 = vrot.lane.b32.xlu0 %v2288_v56, %s3307_s2  ;;  %v3248_v1 = vpop.eup %3247 }
0x2013   :  { %v1977_v5 = vadd.f32 1.0, %v3248_v1 }
0x2015   :  { %3249 = vrcp.f32 %v1977_v5  ;;  %v1989_v44 = vand.u32 2147483648, %v1977_v5  ;;  %vm1983_vm14 = vweird.f32 %v1977_v5  ;;  %v1987_v28 = vand.u32 2147483647, %v1977_v5 }
0x2017   :  { %v1990_v2 = vor.u32 1.1754944e-38, %v1989_v44  ;;  %vm1988_vm0 = vcmp.eq.f32.partialorder %v1987_v28, 8.507059e+37  ;;  %v2151_v44 = vpop.f32.mrf.mxu0 }
0x2018   :  { %v2152_v28 = vadd.f32 %v4144_v41, %v2151_v44  ;;  %v2720_v44 = vld [vmem:[%s4460_s20 + $0x10] sm:$0xff] }
0x201b   :  { %v3250_v33 = vpop.eup %3249 }
0x201c   :  { %v1979_v7 = vmul.f32 %v3250_v33, %v1977_v5  ;;  %vm1984_vm13 = vweird.f32 %v3250_v33 }
0x201d   :  { %vm1985_vm15 = vmor %vm1983_vm14, %vm1984_vm13 }
0x201e   :  { %v1980_v26 = vsub.f32 1.0, %v1979_v7 }
0x2020   :  { %v1981_v3 = vmul.f32 %v3250_v33, %v1980_v26 }
0x2022   :  { %v1982_v25 = vadd.f32 %v3250_v33, %v1981_v3 }
0x2024   :  { %v1986_v16 = vsel %vm1985_vm15, %v3250_v33, %v1982_v25 }
0x2025   :  { %v1991_v30 = vsel %vm1988_vm0, %v1990_v2, %v1986_v16 }
0x2026   :  { %v2005_v47 = vsub.f32 1.0, %v1991_v30  ;;  %v2011_v49 = vmul.f32 %v1991_v30, %v4160_v13 }
0x207c   :  { %v1996_v14 = vpop.permute.xlu0 %1995 }
0x207d   :  { %v1998_v32 = vmul.f32 %v1996_v14, %v1991_v30 }
0x207f   :  { %2000 = vrot.lane.b32.xlu2 %v1998_v32, %s3307_s2 }
0x2084   :  { %v2291_v34 = vpop.permute.xlu0 %2290 }
0x2085   :  { %v2293_v35 = vadd.f32 %v2291_v34, %v2146_v51 }
0x2087   :  { %3251 = vtanh.f32 %v2293_v35 }
0x208d   :  { %v3252_v36 = vpop.eup %3251 }
0x208e   :  { %2297 = vrot.lane.b32.xlu2 %v3252_v36, %s3309_s28 }
0x20d9   :  { %v2001_v55 = vpop.permute.xlu2 %2000 }
0x20da   :  { %v2003_v15 = vadd.f32 %v2001_v55, %v1539_v21 }
0x20dc   :  { %3253 = vtanh.f32 %v2003_v15 }
0x20e2   :  { %v3254_v42 = vpop.eup %3253 }
0x20e3   :  { %2007 = vrot.lane.b32.xlu1 %v3254_v42, %s3309_s28 }
0x20e8   :  { %v2298_v19 = vpop.permute.xlu2 %2297 }
0x20e9   :  { %v2300_v45 = vmul.f32 %v2298_v19, %v2295_v4 }
0x20eb   :  { %v2302_v46 = vadd.f32 %v2301_v24, %v2300_v45 }
0x20ed   :  { %2304 = vrot.lane.b32.xlu1 %v2302_v46, %s3309_s28 }
0x2155   :  { %v2008_v48 = vpop.permute.xlu1 %2007 }
0x2156   :  { %v2010_v51 = vmul.f32 %v2008_v48, %v2005_v47 }
0x2158   :  { %v4194_v52 = vadd.f32 %v2011_v49, %v2010_v51 }
0x215a   :  { %2014 = vrot.lane.b32.xlu0 %v4194_v52, %s3309_s28 }
0x215f   :  { %v2305_v37 = vpop.permute.xlu1 %2304 }
0x2160   :  { %2307 = vst.msk [vmem:[#allocation5 + $0x8] sm:$0xff] %vm218_vm5, %v2305_v37 }
0x21cc   :  { %v2015_v58 = vpop.permute.xlu0 %2014 }
0x21cd   :  { %2017 = vst.msk [vmem:[#allocation4 + $0x30] sm:$0xff] %vm218_vm5, %v2015_v58  ;;  %3054 = vmatmul.msk.f32.vlgmr.msrb.gmra.mxu3 %vm218_vm5, %v2015_v58 }
0x21ce   :  { %2523 = vmatpush.msrb.mxu3 %v4047_v63  ;;  %v2149_v63 = vadd.f32 %v4144_v41, %v2148_v43 }
0x21d0   :  { %2524 = vmatpush.msrb.mxu3 %v4053_v0 }
0x21d2   :  { %2525 = vmatpush.msrb.mxu3 %v4063_v10 }
0x21d4   :  { %v2091_v39 = vld [vmem:[#allocation4 + $0x30] sm:$0xff]  ;;  %2526 = vmatpush.msrb.mxu3 %v4071_v53 }
0x21d5   :  { %3062 = vmatmul.msk.f32.gmra.mxu0 %vm218_vm5, %v2091_v39  ;;  %3067 = vmatmul.msk.f32.vlgmr.msra.gmra.mxu3 %vm218_vm5, %v2305_v37 }
0x2250   :  { %v4207_v13 = vpop.f32.mrf.mxu3 }
0x2258   :  { %v2327_v59 = vpop.f32.mrf.mxu3 }
0x2259   :  { %v2350_v60 = vadd.f32 %v2327_v59, %v4122_v23  ;;  %v2330_v0 = vadd.f32 %v2327_v59, %v2149_v63 }
0x225b   :  { %2352 = vrot.lane.b32.xlu2 %v2350_v60, %s3307_s2  ;;  %v3068_v20 = vmul.f32 -1.442695, %v2330_v0  ;;  %v2154_v0 = vpop.f32.mrf.mxu0 }
0x225d   :  { %3255 = vpow2.f32 %v3068_v20  ;;  %v2155_v20 = vadd.f32 %v4144_v41, %v2154_v0 }
0x2263   :  { %v3256_v10 = vpop.eup %3255 }
0x2264   :  { %v2334_v29 = vadd.f32 1.0, %v3256_v10 }
0x2266   :  { %3257 = vrcp.f32 %v2334_v29  ;;  %v2346_v8 = vand.u32 2147483648, %v2334_v29  ;;  %vm2340_vm2 = vweird.f32 %v2334_v29  ;;  %v2344_v12 = vand.u32 2147483647, %v2334_v29 }
0x2268   :  { %v2347_v62 = vor.u32 1.1754944e-38, %v2346_v8  ;;  %vm2345_vm4 = vcmp.eq.f32.partialorder %v2344_v12, 8.507059e+37 }
0x226c   :  { %v3258_v53 = vpop.eup %3257 }
0x226d   :  { %v2336_v61 = vmul.f32 %v3258_v53, %v2334_v29  ;;  %vm2341_vm1 = vweird.f32 %v3258_v53 }
0x226e   :  { %vm2342_vm3 = vmor %vm2340_vm2, %vm2341_vm1 }
0x226f   :  { %v2337_v9 = vsub.f32 1.0, %v2336_v61 }
0x2271   :  { %v2338_v50 = vmul.f32 %v3258_v53, %v2337_v9 }
0x2273   :  { %v2339_v27 = vadd.f32 %v3258_v53, %v2338_v50 }
0x2275   :  { %v2343_v17 = vsel %vm2342_vm3, %v3258_v53, %v2339_v27 }
0x2276   :  { %v2348_v56 = vsel %vm2345_vm4, %v2347_v62, %v2343_v17 }
0x2277   :  { %v2362_v22 = vsub.f32 1.0, %v2348_v56  ;;  %v2368_v5 = vmul.f32 %v2348_v56, %v2302_v46 }
0x22b5   :  { %v2353_v11 = vpop.permute.xlu2 %2352 }
0x22b6   :  { %v2355_v57 = vmul.f32 %v2353_v11, %v2348_v56 }
0x22b8   :  { %2357 = vrot.lane.b32.xlu0 %v2355_v57, %s3307_s2 }
0x232a   :  { %v2358_v18 = vpop.permute.xlu0 %2357 }
0x232b   :  { %v2360_v21 = vadd.f32 %v2358_v18, %v2149_v63 }
0x232d   :  { %3259 = vtanh.f32 %v2360_v21 }
0x2333   :  { %v3260_v54 = vpop.eup %3259 }
0x2334   :  { %2364 = vrot.lane.b32.xlu1 %v3260_v54, %s3309_s28 }
0x23a6   :  { %v2365_v1 = vpop.permute.xlu1 %2364 }
0x23a7   :  { %v2367_v33 = vmul.f32 %v2365_v1, %v2362_v22 }
0x23a9   :  { %v2369_v7 = vadd.f32 %v2368_v5, %v2367_v33 }
0x23ab   :  { %2371 = vrot.lane.b32.xlu2 %v2369_v7, %s3309_s28 }
0x2405   :  { %v2372_v26 = vpop.permute.xlu2 %2371 }
0x2406   :  { %2374 = vst.msk [vmem:[#allocation5 + $0x10] sm:$0xff] %vm218_vm5, %v2372_v26  ;;  %3069 = vmatmul.msk.f32.vlgmr.msrb.gmra.mxu1 %vm218_vm5, %v2372_v26 }
0x2483   :  { %v2394_v3 = vpop.f32.mrf.mxu1 }
0x2484   :  { %v2417_v25 = vadd.f32 %v2394_v3, %v4122_v23  ;;  %v2397_v16 = vadd.f32 %v2394_v3, %v2152_v28 }
0x2486   :  { %2419 = vrot.lane.b32.xlu0 %v2417_v25, %s3307_s2  ;;  %v3070_v2 = vmul.f32 -1.442695, %v2397_v16  ;;  %v2721_v25 = vld [vmem:[%s4460_s20 + $0x18] sm:$0xff]  ;;  %v2718_v16 = vld [vmem:[%s4460_s20] sm:$0xff] }
0x2487   :  { %3089 = vmatpush.msra.mxu3 %v2721_v25  ;;  %2762 = vmatpush.msrb.mxu1 %v2721_v25 }
0x2488   :  { %3261 = vpow2.f32 %v3070_v2 }
0x2489   :  { %3090 = vmatpush.msra.mxu3 %v2720_v44  ;;  %2763 = vmatpush.msrb.mxu1 %v2720_v44 }
0x248e   :  { %v3262_v14 = vpop.eup %3261 }
0x248f   :  { %v2401_v30 = vadd.f32 1.0, %v3262_v14 }
0x2491   :  { %3263 = vrcp.f32 %v2401_v30  ;;  %v2413_v15 = vand.u32 2147483648, %v2401_v30  ;;  %vm2407_vm7 = vweird.f32 %v2401_v30  ;;  %v2411_v42 = vand.u32 2147483647, %v2401_v30 }
0x2493   :  { %v2414_v19 = vor.u32 1.1754944e-38, %v2413_v15  ;;  %vm2412_vm9 = vcmp.eq.f32.partialorder %v2411_v42, 8.507059e+37 }
0x2497   :  { %v3264_v32 = vpop.eup %3263 }
0x2498   :  { %v2403_v34 = vmul.f32 %v3264_v32, %v2401_v30  ;;  %vm2408_vm6 = vweird.f32 %v3264_v32 }
0x2499   :  { %vm2409_vm8 = vmor %vm2407_vm7, %vm2408_vm6 }
0x249a   :  { %v2404_v35 = vsub.f32 1.0, %v2403_v34  ;;  %v4254_v34 = vld [vmem:[%s4461_s21] ss:$0 sm:$0xff] }
0x249c   :  { %v2405_v36 = vmul.f32 %v3264_v32, %v2404_v35 }
0x249e   :  { %v2406_v55 = vadd.f32 %v3264_v32, %v2405_v36 }
0x24a0   :  { %v2410_v4 = vsel %vm2409_vm8, %v3264_v32, %v2406_v55  ;;  %v2157_v55 = vpop.f32.mrf.mxu0 }
0x24a1   :  { %v2415_v45 = vsel %vm2412_vm9, %v2414_v19, %v2410_v4  ;;  %v2158_v15 = vadd.f32 %v4144_v41, %v2157_v55 }
0x24a2   :  { %v2429_v51 = vsub.f32 1.0, %v2415_v45  ;;  %v2435_v58 = vmul.f32 %v2415_v45, %v2369_v7 }
0x24f8   :  { %v2420_v24 = vpop.permute.xlu0 %2419 }
0x24f9   :  { %v2422_v46 = vmul.f32 %v2420_v24, %v2415_v45 }
0x24fb   :  { %2424 = vrot.lane.b32.xlu1 %v2422_v46, %s3307_s2 }
0x256d   :  { %v2425_v47 = vpop.permute.xlu1 %2424 }
0x256e   :  { %v2427_v48 = vadd.f32 %v2425_v47, %v2152_v28  ;;  %v2719_v28 = vld [vmem:[%s4460_s20 + $0x8] sm:$0xff] }
0x256f   :  { %3091 = vmatpush.msra.mxu3 %v2719_v28  ;;  %2764 = vmatpush.msrb.mxu1 %v2719_v28 }
0x2570   :  { %3265 = vtanh.f32 %v2427_v48 }
0x2571   :  { %3092 = vmatpush.msra.mxu3 %v2718_v16  ;;  %2765 = vmatpush.msrb.mxu1 %v2718_v16 }
0x2576   :  { %v3266_v49 = vpop.eup %3265 }
0x2577   :  { %2431 = vrot.lane.b32.xlu2 %v3266_v49, %s3309_s28 }
0x25d1   :  { %v2432_v37 = vpop.permute.xlu2 %2431 }
0x25d2   :  { %v2434_v39 = vmul.f32 %v2432_v37, %v2429_v51 }
0x25d4   :  { %v2436_v59 = vadd.f32 %v2435_v58, %v2434_v39 }
0x25d6   :  { %2438 = vrot.lane.b32.xlu0 %v2436_v59, %s3309_s28 }
0x2648   :  { %v2439_v60 = vpop.permute.xlu0 %2438 }
0x2649   :  { %2441 = vst.msk [vmem:[#allocation5 + $0x18] sm:$0xff] %vm218_vm5, %v2439_v60  ;;  %3071 = vmatmul.msk.f32.vlgmr.msrb.gmra.mxu2 %vm218_vm5, %v2439_v60 }
0x26cc   :  { %v2461_v43 = vpop.f32.mrf.mxu2 }
0x26cd   :  { %v2484_v63 = vadd.f32 %v2461_v43, %v4122_v23  ;;  %v2464_v10 = vadd.f32 %v2461_v43, %v2155_v20 }
0x26cf   :  { %2486 = vrot.lane.b32.xlu1 %v2484_v63, %s3307_s2  ;;  %v3072_v29 = vmul.f32 -1.442695, %v2464_v10  ;;  %v2060_v10 = vadd.f32 %v4207_v13, %v3958_v38  ;;  %v2711_v38 = vld [vmem:[#allocation5 + $0x8] sm:$0xff] }
0x26d1   :  { %3267 = vpow2.f32 %v3072_v29 }
0x26d7   :  { %v3268_v53 = vpop.eup %3267 }
0x26d8   :  { %v2468_v61 = vadd.f32 1.0, %v3268_v53 }
0x26da   :  { %3269 = vrcp.f32 %v2468_v61  ;;  %v2480_v17 = vand.u32 2147483648, %v2468_v61  ;;  %vm2474_vm11 = vweird.f32 %v2468_v61  ;;  %v2478_v62 = vand.u32 2147483647, %v2468_v61 }
0x26dc   :  { %v2481_v56 = vor.u32 1.1754944e-38, %v2480_v17  ;;  %vm2479_vm13 = vcmp.eq.f32.partialorder %v2478_v62, 8.507059e+37  ;;  %v2712_v17 = vld [vmem:[#allocation5 + $0x10] sm:$0xff]  ;;  %v2713_v62 = vld [vmem:[#allocation5 + $0x18] sm:$0xff] }
0x26e0   :  { %v3270_v9 = vpop.eup %3269 }
0x26e1   :  { %v2470_v50 = vmul.f32 %v3270_v9, %v2468_v61  ;;  %vm2475_vm10 = vweird.f32 %v3270_v9 }
0x26e2   :  { %vm2476_vm12 = vmor %vm2474_vm11, %vm2475_vm10 }
0x26e3   :  { %v2471_v27 = vsub.f32 1.0, %v2470_v50 }
0x26e5   :  { %v2472_v8 = vmul.f32 %v3270_v9, %v2471_v27 }
0x26e7   :  { %v2473_v12 = vadd.f32 %v3270_v9, %v2472_v8  ;;  %v2710_v8 = vld [vmem:[#allocation5] sm:$0xff] }
0x26e9   :  { %v2477_v11 = vsel %vm2476_vm12, %v3270_v9, %v2473_v12 }
0x26ea   :  { %v2482_v18 = vsel %vm2479_vm13, %v2481_v56, %v2477_v11  ;;  %v1442_v11 = vadd.f32 %v4120_v6, %v4139_v40 }
0x26eb   :  { %v2496_v5 = vsub.f32 1.0, %v2482_v18  ;;  %v2502_v7 = vmul.f32 %v2482_v18, %v2436_v59 }
0x26ec   :  { %v1528_v56 = vadd.f32 %v4177_v31, %v1442_v11 }
0x2741   :  { %v2487_v57 = vpop.permute.xlu1 %2486 }
0x2742   :  { %v2489_v21 = vmul.f32 %v2487_v57, %v2482_v18  ;;  %v3306_v57 = vld [vmem:[%s4454_s14] ss:$0 sm:$0xff] }
0x2743   :  { %v4287_v18 = vadd.f32 %v3306_v57, %v1528_v56 }
0x2744   :  { %2491 = vrot.lane.b32.xlu2 %v2489_v21, %s3307_s2 }
0x2745   :  { %v2040_v21 = vadd.f32 %v4207_v13, %v4287_v18 }
0x279e   :  { %v2492_v54 = vpop.permute.xlu2 %2491 }
0x279f   :  { %v2494_v22 = vadd.f32 %v2492_v54, %v2155_v20  ;;  %v3055_v54 = vmul.f32 -1.442695, %v2040_v21 }
0x27a1   :  { %3271 = vtanh.f32 %v2494_v22 }
0x27a7   :  { %v3272_v1 = vpop.eup %3271 }
0x27a8   :  { %2498 = vrot.lane.b32.xlu0 %v3272_v1, %s3309_s28 }
0x281a   :  { %v2499_v33 = vpop.permute.xlu0 %2498 }
0x281b   :  { %v2501_v26 = vmul.f32 %v2499_v33, %v2496_v5 }
0x281d   :  { %v4230_v3 = vadd.f32 %v2502_v7, %v2501_v26 }
0x281f   :  { %2505 = vrot.lane.b32.xlu1 %v4230_v3, %s3309_s28 }
0x2891   :  { %v2506_v2 = vpop.permute.xlu1 %2505 }
0x2892   :  { %2508 = vst.msk [vmem:[#allocation5 + $0x20] sm:$0xff] %vm218_vm5, %v2506_v2  ;;  %3073 = vmatmul.msk.f32.vlgmr.msrb.gmra.mxu3 %vm218_vm5, %v2506_v2 }
0x2899   :  { %v2714_v14 = vld [vmem:[#allocation5 + $0x20] sm:$0xff] }
0x289a   :  { %3083 = vmatmul.msk.f32.vlgmr.msra.gmra.mxu3 %vm218_vm5, %v2714_v14 }
0x2915   :  { %v2528_v30 = vpop.f32.mrf.mxu3 }
0x2916   :  { %v2551_v32 = vadd.f32 %v2528_v30, %v4122_v23  ;;  %v2531_v42 = vadd.f32 %v2528_v30, %v2158_v15 }
0x2918   :  { %2553 = vrot.lane.b32.xlu2 %v2551_v32, %s3307_s2  ;;  %v3074_v4 = vmul.f32 -1.442695, %v2531_v42 }
0x291a   :  { %3273 = vpow2.f32 %v3074_v4 }
0x291d   :  { %v2779_v35 = vpop.f32.mrf.mxu3 }
0x291e   :  { %v4257_v36 = vadd.f32 %v4254_v34, %v2779_v35 }
0x2920   :  { %2795 = vst [vmem:[%s4462_s22 + $0x20] sm:$0xff] %v4257_v36  ;;  %v3274_v19 = vpop.eup %3273 }
0x2921   :  { %v2535_v24 = vadd.f32 1.0, %v3274_v19 }
0x2923   :  { %3275 = vrcp.f32 %v2535_v24  ;;  %v2547_v51 = vand.u32 2147483648, %v2535_v24  ;;  %vm2541_vm15 = vweird.f32 %v2535_v24  ;;  %v2545_v37 = vand.u32 2147483647, %v2535_v24 }
0x2925   :  { %v2548_v39 = vor.u32 1.1754944e-38, %v2547_v51  ;;  %vm2546_vm1 = vcmp.eq.f32.partialorder %v2545_v37, 8.507059e+37 }
0x2929   :  { %v3276_v45 = vpop.eup %3275 }
0x292a   :  { %v2537_v46 = vmul.f32 %v3276_v45, %v2535_v24  ;;  %vm2542_vm14 = vweird.f32 %v3276_v45 }
0x292b   :  { %vm2543_vm0 = vmor %vm2541_vm15, %vm2542_vm14 }
0x292c   :  { %v2538_v47 = vsub.f32 1.0, %v2537_v46 }
0x292e   :  { %v2539_v48 = vmul.f32 %v3276_v45, %v2538_v47 }
0x2930   :  { %v2540_v49 = vadd.f32 %v3276_v45, %v2539_v48 }
0x2932   :  { %v2544_v58 = vsel %vm2543_vm0, %v3276_v45, %v2540_v49  ;;  %v2160_v45 = vpop.f32.mrf.mxu0 }
0x2933   :  { %v2549_v60 = vsel %vm2546_vm1, %v2548_v39, %v2544_v58  ;;  %v2161_v46 = vadd.f32 %v4144_v41, %v2160_v45 }
0x2934   :  { %v2563_v29 = vsub.f32 1.0, %v2549_v60  ;;  %v2569_v61 = vmul.f32 %v2549_v60, %v4230_v3 }
0x2972   :  { %v2554_v59 = vpop.permute.xlu2 %2553 }
0x2973   :  { %v2556_v43 = vmul.f32 %v2554_v59, %v2549_v60 }
0x2975   :  { %2558 = vrot.lane.b32.xlu0 %v2556_v43, %s3307_s2 }
0x29e7   :  { %v2559_v63 = vpop.permute.xlu0 %2558 }
0x29e8   :  { %v2561_v0 = vadd.f32 %v2559_v63, %v2158_v15 }
0x29ea   :  { %3277 = vtanh.f32 %v2561_v0 }
0x29eb   :  { %3279 = vpow2.f32 %v3055_v54 }
0x29f0   :  { %v3278_v20 = vpop.eup %3277 }
0x29f1   :  { %2565 = vrot.lane.b32.xlu1 %v3278_v20, %s3309_s28  ;;  %v3280_v22 = vpop.eup %3279 }
0x29f2   :  { %v2044_v1 = vadd.f32 1.0, %v3280_v22 }
0x29f4   :  { %3281 = vrcp.f32 %v2044_v1  ;;  %v2056_v3 = vand.u32 2147483648, %v2044_v1  ;;  %vm2050_vm3 = vweird.f32 %v2044_v1  ;;  %v2054_v25 = vand.u32 2147483647, %v2044_v1 }
0x29f6   :  { %v2057_v44 = vor.u32 1.1754944e-38, %v2056_v3  ;;  %vm2055_vm6 = vcmp.eq.f32.partialorder %v2054_v25, 8.507059e+37 }
0x29f9   :  { %2062 = vrot.lane.b32.xlu1 %v2060_v10, %s3307_s2 }
0x29fa   :  { %v3282_v5 = vpop.eup %3281 }
0x29fb   :  { %v2046_v33 = vmul.f32 %v3282_v5, %v2044_v1  ;;  %vm2051_vm2 = vweird.f32 %v3282_v5 }
0x29fc   :  { %vm2052_vm4 = vmor %vm2050_vm3, %vm2051_vm2 }
0x29fd   :  { %v2047_v7 = vsub.f32 1.0, %v2046_v33 }
0x29ff   :  { %v2048_v6 = vmul.f32 %v3282_v5, %v2047_v7 }
0x2a01   :  { %v2049_v31 = vadd.f32 %v3282_v5, %v2048_v6 }
0x2a03   :  { %v2053_v13 = vsel %vm2052_vm4, %v3282_v5, %v2049_v31 }
0x2a04   :  { %v2058_v16 = vsel %vm2055_vm6, %v2057_v44, %v2053_v13 }
0x2a05   :  { %v2078_v11 = vmul.f32 %v2058_v16, %v4194_v52 }
0x2a63   :  { %v2566_v53 = vpop.permute.xlu1 %2565 }
0x2a64   :  { %v2568_v9 = vmul.f32 %v2566_v53, %v2563_v29 }
0x2a66   :  { %v4270_v50 = vadd.f32 %v2569_v61, %v2568_v9 }
0x2a68   :  { %2572 = vrot.lane.b32.xlu2 %v4270_v50, %s3309_s28 }
0x2a6b   :  { %v2063_v28 = vpop.permute.xlu1 %2062 }
0x2a6c   :  { %v2065_v14 = vmul.f32 %v2063_v28, %v2058_v16 }
0x2ac2   :  { %v2573_v27 = vpop.permute.xlu2 %2572 }
0x2ac3   :  { %2575 = vst.msk [vmem:[#allocation5 + $0x28] sm:$0xff] %vm218_vm5, %v2573_v27  ;;  %3075 = vmatmul.msk.f32.vlgmr.msra.gmra.mxu1 %vm218_vm5, %v2573_v27 }
0x2aca   :  { %v2715_v12 = vld [vmem:[#allocation5 + $0x28] sm:$0xff] }
0x2acb   :  { %3079 = vmatmul.msk.f32.vlgmr.msrb.gmra.mxu1 %vm218_vm5, %v2710_v8  ;;  %3084 = vmatmul.msk.f32.gmra.mxu3 %vm218_vm5, %v2715_v12 }
0x2ad3   :  { %3080 = vmatmul.msk.f32.gmra.mxu1 %vm218_vm5, %v2711_v38 }
0x2adb   :  { %3081 = vmatmul.msk.f32.gmra.mxu1 %vm218_vm5, %v2712_v17  ;;  %v2072_v17 = vsub.f32 1.0, %v2058_v16 }
0x2ae3   :  { %3082 = vmatmul.msk.f32.gmra.mxu1 %vm218_vm5, %v2713_v62 }
0x2b40   :  { %v2595_v40 = vpop.f32.mrf.mxu1 }
0x2b41   :  { %v2618_v26 = vadd.f32 %v2595_v40, %v4122_v23  ;;  %v2598_v47 = vadd.f32 %v2595_v40, %v2161_v46 }
0x2b43   :  { %2620 = vrot.lane.b32.xlu0 %v2618_v26, %s3307_s2  ;;  %v3076_v48 = vmul.f32 -1.442695, %v2598_v47 }
0x2b45   :  { %3283 = vpow2.f32 %v3076_v48  ;;  %v2799_v48 = vlaneseq }
0x2b48   :  { %v2767_v2 = vpop.f32.mrf.mxu1 }
0x2b49   :  { %v4294_v30 = vadd.f32 %v4254_v34, %v2767_v2 }
0x2b4b   :  { %2791 = vst [vmem:[%s4462_s22] sm:$0xff] %v4294_v30  ;;  %2067 = vrot.lane.b32.xlu0 %v2065_v14, %s3307_s2  ;;  %v3284_v49 = vpop.eup %3283 }
0x2b4c   :  { %v2602_v51 = vadd.f32 1.0, %v3284_v49  ;;  %v4354_v49 = vand.u32 127, %v2799_v48 }
0x2b4e   :  { %v2782_v32 = vpop.f32.mrf.mxu3  ;;  %3285 = vrcp.f32 %v2602_v51  ;;  %v2614_v43 = vand.u32 2147483648, %v2602_v51  ;;  %vm2608_vm8 = vweird.f32 %v2602_v51  ;;  %v2612_v63 = vand.u32 2147483647, %v2602_v51 }
0x2b4f   :  { %v4302_v35 = vadd.f32 %v4254_v34, %v2782_v32  ;;  %vm2801_vm15 = vcmp.lt.s32.totalorder %v4354_v49, 12 }
0x2b50   :  { %v2770_v55 = vpop.f32.mrf.mxu1  ;;  %v2615_v20 = vor.u32 1.1754944e-38, %v2614_v43  ;;  %vm2613_vm10 = vcmp.eq.f32.partialorder %v2612_v63, 8.507059e+37 }
0x2b51   :  { %2796 = vst [vmem:[%s4462_s22 + $0x28] sm:$0xff] %v4302_v35  ;;  %v4309_v15 = vadd.f32 %v4254_v34, %v2770_v55 }
0x2b53   :  { %2792 = vst [vmem:[%s4462_s22 + $0x8] sm:$0xff] %v4309_v15 }
0x2b54   :  { %v3286_v37 = vpop.eup %3285 }
0x2b55   :  { %v2604_v58 = vmul.f32 %v3286_v37, %v2602_v51  ;;  %vm2609_vm7 = vweird.f32 %v3286_v37  ;;  %v2802_v51 = vsel %vm2801_vm15, %v4294_v30, -inf }
0x2b56   :  { %vm2610_vm9 = vmor %vm2608_vm8, %vm2609_vm7 }
0x2b57   :  { %v2605_v39 = vsub.f32 1.0, %v2604_v58 }
0x2b58   :  { %v2773_v42 = vpop.f32.mrf.mxu1 }
0x2b59   :  { %v4316_v4 = vadd.f32 %v4254_v34, %v2773_v42  ;;  %v2606_v59 = vmul.f32 %v3286_v37, %v2605_v39 }
0x2b5b   :  { %2793 = vst [vmem:[%s4462_s22 + $0x10] sm:$0xff] %v4316_v4  ;;  %v2607_v60 = vadd.f32 %v3286_v37, %v2606_v59 }
0x2b5d   :  { %v2611_v0 = vsel %vm2610_vm9, %v3286_v37, %v2607_v60  ;;  %v2806_v37 = vsel %vm2801_vm15, %v4257_v36, -inf  ;;  %v2803_v60 = vsel %vm2801_vm15, %v4309_v15, -inf  ;;  %v4373_v36 = vsel %vm2801_vm15, %v4302_v35, -inf }
0x2b5e   :  { %v2616_v29 = vsel %vm2613_vm10, %v2615_v20, %v2611_v0  ;;  %v2804_v35 = vsel %vm2801_vm15, %v4316_v4, -inf }
0x2b5f   :  { %v2630_v21 = vsub.f32 1.0, %v2616_v29  ;;  %v2636_v54 = vmul.f32 %v2616_v29, %v4270_v50 }
0x2b60   :  { %v2776_v19 = vpop.f32.mrf.mxu1 }
0x2b61   :  { %v4323_v24 = vadd.f32 %v4254_v34, %v2776_v19 }
0x2b63   :  { %2794 = vst [vmem:[%s4462_s22 + $0x18] sm:$0xff] %v4323_v24 }
0x2bb5   :  { %v2621_v10 = vpop.permute.xlu0 %2620 }
0x2bb6   :  { %v2623_v53 = vmul.f32 %v2621_v10, %v2616_v29 }
0x2bb8   :  { %2625 = vrot.lane.b32.xlu2 %v2623_v53, %s3307_s2 }
0x2bbd   :  { %v2068_v61 = vpop.permute.xlu0 %2067 }
0x2bbe   :  { %v2070_v9 = vadd.f32 %v2068_v61, %v4287_v18  ;;  %v2805_v61 = vsel %vm2801_vm15, %v4323_v24, -inf }
0x2bc0   :  { %3287 = vtanh.f32 %v2070_v9 }
0x2bc6   :  { %v3288_v27 = vpop.eup %3287 }
0x2bc7   :  { %2074 = vrot.lane.b32.xlu2 %v3288_v27, %s3309_s28 }
0x2c12   :  { %v2626_v8 = vpop.permute.xlu2 %2625 }
0x2c13   :  { %v2628_v12 = vadd.f32 %v2626_v8, %v2161_v46 }
0x2c15   :  { %3289 = vtanh.f32 %v2628_v12 }
0x2c1b   :  { %v3290_v38 = vpop.eup %3289 }
0x2c1c   :  { %2632 = vrot.lane.b32.xlu1 %v3290_v38, %s3309_s28 }
0x2c21   :  { %v2075_v62 = vpop.permute.xlu2 %2074 }
0x2c22   :  { %v2077_v56 = vmul.f32 %v2075_v62, %v2072_v17 }
0x2c24   :  { %v2079_v57 = vadd.f32 %v2078_v11, %v2077_v56 }
0x2c26   :  { %2081 = vrot.lane.b32.xlu1 %v2079_v57, %s3309_s28 }
0x2c8e   :  { %v2633_v18 = vpop.permute.xlu1 %2632 }
0x2c8f   :  { %v2635_v22 = vmul.f32 %v2633_v18, %v2630_v21 }
0x2c91   :  { %v4337_v1 = vadd.f32 %v2636_v54, %v2635_v22 }
0x2c93   :  { %2639 = vrot.lane.b32.xlu0 %v4337_v1, %s3309_s28 }
0x2c98   :  { %v2082_v5 = vpop.permute.xlu1 %2081 }
0x2c99   :  { %2084 = vst.msk [vmem:[#allocation4 + $0x38] sm:$0xff] %vm218_vm5, %v2082_v5 }
0x2ca0   :  { %v2092_v33 = vld [vmem:[#allocation4 + $0x38] sm:$0xff] }
0x2ca1   :  { %3063 = vmatmul.msk.f32.gmra.mxu0 %vm218_vm5, %v2092_v33 }
0x2d05   :  { %v2640_v52 = vpop.permute.xlu0 %2639 }
0x2d06   :  { %2642 = vst.msk [vmem:[#allocation5 + $0x30] sm:$0xff] %vm218_vm5, %v2640_v52  ;;  %3077 = vmatmul.msk.f32.vlgmr.msra.gmra.mxu2 %vm218_vm5, %v2640_v52 }
0x2d0d   :  { %v2716_v7 = vld [vmem:[#allocation5 + $0x30] sm:$0xff] }
0x2d0e   :  { %3085 = vmatmul.msk.f32.gmra.mxu3 %vm218_vm5, %v2716_v7 }
0x2d1e   :  { %v2163_v26 = vpop.f32.mrf.mxu0 }
0x2d1f   :  { %v2164_v3 = vadd.f32 %v4144_v41, %v2163_v26 }
0x2d89   :  { %v2662_v50 = vpop.f32.mrf.mxu2 }
0x2d8a   :  { %v2685_v6 = vadd.f32 %v2662_v50, %v4122_v23  ;;  %v2665_v25 = vadd.f32 %v2662_v50, %v2164_v3 }
0x2d8c   :  { %2687 = vrot.lane.b32.xlu2 %v2685_v6, %s3307_s2  ;;  %v3078_v13 = vmul.f32 -1.442695, %v2665_v25 }
0x2d8e   :  { %3291 = vpow2.f32 %v3078_v13 }
0x2d91   :  { %v2785_v40 = vpop.f32.mrf.mxu3 }
0x2d92   :  { %v2786_v31 = vadd.f32 %v4254_v34, %v2785_v40 }
0x2d94   :  { %2797 = vst [vmem:[%s4462_s22 + $0x30] sm:$0xff] %v2786_v31  ;;  %v3292_v44 = vpop.eup %3291  ;;  %v2808_v8 = vsel %vm2801_vm15, %v2786_v31, -inf }
0x2d95   :  { %v2669_v28 = vadd.f32 1.0, %v3292_v44 }
0x2d97   :  { %3293 = vrcp.f32 %v2669_v28  ;;  %v2681_v55 = vand.u32 2147483648, %v2669_v28  ;;  %vm2675_vm12 = vweird.f32 %v2669_v28  ;;  %v2679_v42 = vand.u32 2147483647, %v2669_v28 }
0x2d99   :  { %v2682_v45 = vor.u32 1.1754944e-38, %v2681_v55  ;;  %vm2680_vm14 = vcmp.eq.f32.partialorder %v2679_v42, 8.507059e+37 }
0x2d9d   :  { %v3294_v16 = vpop.eup %3293 }
0x2d9e   :  { %v2671_v23 = vmul.f32 %v3294_v16, %v2669_v28  ;;  %vm2676_vm11 = vweird.f32 %v3294_v16 }
0x2d9f   :  { %vm2677_vm13 = vmor %vm2675_vm12, %vm2676_vm11  ;;  %vm2954_vm12 = vcmask 7168  }
0x2da0   :  { %v2672_v2 = vsub.f32 1.0, %v2671_v23 }
0x2da2   :  { %v2673_v14 = vmul.f32 %v3294_v16, %v2672_v2 }
0x2da4   :  { %v2674_v32 = vadd.f32 %v3294_v16, %v2673_v14 }
0x2da6   :  { %v2678_v19 = vsel %vm2677_vm13, %v3294_v16, %v2674_v32 }
0x2da7   :  { %v2683_v46 = vsel %vm2680_vm14, %v2682_v45, %v2678_v19 }
0x2da8   :  { %v2697_v15 = vsub.f32 1.0, %v2683_v46  ;;  %v2703_v10 = vmul.f32 %v2683_v46, %v4337_v1 }
0x2de6   :  { %v2688_v41 = vpop.permute.xlu2 %2687 }
0x2de7   :  { %v2690_v47 = vmul.f32 %v2688_v41, %v2683_v46 }
0x2de9   :  { %2692 = vrot.lane.b32.xlu0 %v2690_v47, %s3307_s2 }
0x2e13   :  { %2810 = vmax.xlane.f32.xlu0 %v2802_v51 }
0x2e1b   :  { %2818 = vmax.xlane.f32.xlu0 %v2806_v37 }
0x2e5b   :  { %v2693_v58 = vpop.permute.xlu0 %2692 }
0x2e5c   :  { %v2695_v39 = vadd.f32 %v2693_v58, %v2164_v3 }
0x2e5e   :  { %3295 = vtanh.f32 %v2695_v39 }
0x2e64   :  { %v3296_v59 = vpop.eup %3295 }
0x2e65   :  { %2699 = vrot.lane.b32.xlu1 %v3296_v59, %s3309_s28 }
0x2e86   :  { %v2811_v43 = vpop.xlane.xlu0 %2810 }
0x2e87   :  { %vm2826_vm0 = vcmp.eq.f32.partialorder %v2802_v51, %v2811_v43 }
0x2e88   :  { %v4368_v30 = vsel %vm2826_vm0, %v4354_v49, 2147483647 }
0x2e89   :  { %v2843_v63 = vshra.s32 %v4368_v30, 16  ;;  %v2842_v42 = vand.u32 65535, %v4368_v30 }
0x2e8b   :  { %v4377_v0 = vcvt.s32.f32 %v2843_v63  ;;  %v2844_v45 = vcvt.s32.f32 %v2842_v42 }
0x2e8e   :  { %v2819_v12 = vpop.xlane.xlu0 %2818 }
0x2e8f   :  { %2812 = vmax.xlane.f32.xlu1 %v2803_v60  ;;  %vm2830_vm2 = vcmp.eq.f32.partialorder %v2806_v37, %v2819_v12 }
0x2e90   :  { %v2838_v4 = vsel %vm2830_vm2, %v4354_v49, 2147483647 }
0x2e91   :  { %v2899_v62 = vshra.s32 %v2838_v4, 16  ;;  %v2898_v31 = vand.u32 65535, %v2838_v4 }
0x2e93   :  { %v2901_v11 = vcvt.s32.f32 %v2899_v62  ;;  %v2900_v3 = vcvt.s32.f32 %v2898_v31 }
0x2e97   :  { %2820 = vmax.xlane.f32.xlu1 %v4373_v36 }
0x2e9f   :  { %2846 = vmin.xlane.f32.xlu1 %v4377_v0 }
0x2ed7   :  { %v2700_v20 = vpop.permute.xlu1 %2699 }
0x2ed8   :  { %v2702_v29 = vmul.f32 %v2700_v20, %v2697_v15 }
0x2eda   :  { %v2704_v53 = vadd.f32 %v2703_v10, %v2702_v29 }
0x2edc   :  { %2706 = vrot.lane.b32.xlu2 %v2704_v53, %s3309_s28 }
0x2f02   :  { %v2813_v9 = vpop.xlane.xlu1 %2812 }
0x2f03   :  { %vm2827_vm1 = vcmp.eq.f32.partialorder %v2803_v60, %v2813_v9 }
0x2f04   :  { %v2835_v27 = vsel %vm2827_vm1, %v4354_v49, 2147483647 }
0x2f05   :  { %2814 = vmax.xlane.f32.xlu2 %v2804_v35  ;;  %v2857_v38 = vshra.s32 %v2835_v27, 16  ;;  %v2856_v7 = vand.u32 65535, %v2835_v27 }
0x2f07   :  { %v2859_v17 = vcvt.s32.f32 %v2857_v38  ;;  %v2858_v6 = vcvt.s32.f32 %v2856_v7 }
0x2f0a   :  { %v2821_v23 = vpop.xlane.xlu1 %2820 }
0x2f0b   :  { %vm2831_vm8 = vcmp.eq.f32.partialorder %v4373_v36, %v2821_v23 }
0x2f0c   :  { %v2839_v32 = vsel %vm2831_vm8, %v4354_v49, 2147483647 }
0x2f0d   :  { %2816 = vmax.xlane.f32.xlu2 %v2805_v61  ;;  %v2913_v55 = vshra.s32 %v2839_v32, 16 }
0x2f12   :  { %v2847_v19 = vpop.xlane.xlu1 %2846 }
0x2f13   :  { %vm2848_vm9 = vcmp.eq.f32.partialorder %v4377_v0, %v2847_v19 }
0x2f14   :  { %v2849_v41 = vsel %vm2848_vm9, %v2844_v45, inf }
0x2f15   :  { %2822 = vmax.xlane.f32.xlu2 %v2808_v8 }
0x2f1d   :  { %2860 = vmin.xlane.f32.xlu2 %v2859_v17 }
0x2f25   :  { %2902 = vmin.xlane.f32.xlu2 %v2901_v11 }
0x2f36   :  { %v2707_v24 = vpop.permute.xlu2 %2706 }
0x2f37   :  { %2709 = vst.msk [vmem:[#allocation5 + $0x38] sm:$0xff] %vm218_vm5, %v2707_v24 }
0x2f3e   :  { %v2717_v56 = vld [vmem:[#allocation5 + $0x38] sm:$0xff] }
0x2f3f   :  { %3086 = vmatmul.msk.f32.gmra.mxu3 %vm218_vm5, %v2717_v56 }
0x2f78   :  { %v2815_v57 = vpop.xlane.xlu2 %2814 }
0x2f79   :  { %vm2828_vm7 = vcmp.eq.f32.partialorder %v2804_v35, %v2815_v57 }
0x2f7a   :  { %v2836_v28 = vsel %vm2828_vm7, %v4354_v49, 2147483647 }
0x2f7b   :  { %v2871_v2 = vshra.s32 %v2836_v28, 16  ;;  %v2870_v27 = vand.u32 65535, %v2836_v28 }
0x2f7d   :  { %v2873_v14 = vcvt.s32.f32 %v2871_v2  ;;  %v2872_v12 = vcvt.s32.f32 %v2870_v27 }
0x2f80   :  { %v2817_v21 = vpop.xlane.xlu2 %2816 }
0x2f81   :  { %vm2829_vm3 = vcmp.eq.f32.partialorder %v2805_v61, %v2817_v21 }
0x2f82   :  { %v2837_v18 = vsel %vm2829_vm3, %v4354_v49, 2147483647 }
0x2f83   :  { %v2885_v54 = vshra.s32 %v2837_v18, 16  ;;  %v2884_v46 = vand.u32 65535, %v2837_v18 }
0x2f85   :  { %v2887_v22 = vcvt.s32.f32 %v2885_v54  ;;  %v2886_v47 = vcvt.s32.f32 %v2884_v46 }
0x2f87   :  { %2888 = vmin.xlane.f32.xlu1 %v2887_v22 }
0x2f88   :  { %v2823_v1 = vpop.xlane.xlu2 %2822 }
0x2f89   :  { %vm2832_vm4 = vcmp.eq.f32.partialorder %v2808_v8, %v2823_v1 }
0x2f8a   :  { %v2840_v5 = vsel %vm2832_vm4, %v4354_v49, 2147483647 }
0x2f8b   :  { %v2927_v33 = vshra.s32 %v2840_v5, 16  ;;  %v2926_v37 = vand.u32 65535, %v2840_v5 }
0x2f8d   :  { %v2929_v52 = vcvt.s32.f32 %v2927_v33  ;;  %v2928_v58 = vcvt.s32.f32 %v2926_v37 }
0x2f8f   :  { %2930 = vmin.xlane.f32.xlu1 %v2929_v52 }
0x2f90   :  { %v2861_v50 = vpop.xlane.xlu2 %2860 }
0x2f91   :  { %vm2862_vm6 = vcmp.eq.f32.partialorder %v2859_v17, %v2861_v50  ;;  %v2867_v60 = vcvt.f32.s32 %v2861_v50  ;;  %v2912_v17 = vand.u32 65535, %v2839_v32 }
0x2f92   :  { %v2863_v40 = vsel %vm2862_vm6, %v2858_v6, inf }
0x2f93   :  { %v2868_v30 = vshll.u32 %v2867_v60, 16  ;;  %v2914_v62 = vcvt.s32.f32 %v2912_v17 }
0x2f97   :  { %2864 = vmin.xlane.f32.xlu1 %v2863_v40 }
0x2f98   :  { %v2903_v26 = vpop.xlane.xlu2 %2902 }
0x2f99   :  { %vm2904_vm5 = vcmp.eq.f32.partialorder %v2901_v11, %v2903_v26  ;;  %v2909_v0 = vcvt.f32.s32 %v2903_v26  ;;  %v2853_v11 = vcvt.f32.s32 %v2847_v19 }
0x2f9a   :  { %v2905_v25 = vsel %vm2904_vm5, %v2900_v3, inf }
0x2f9b   :  { %v2910_v20 = vshll.u32 %v2909_v0, 16  ;;  %v2854_v57 = vshll.u32 %v2853_v11, 16 }
0x2f9f   :  { %2906 = vmin.xlane.f32.xlu1 %v2905_v25 }
0x2fc2   :  { %v2788_v13 = vpop.f32.mrf.mxu3 }
0x2fc3   :  { %v2789_v44 = vadd.f32 %v4254_v34, %v2788_v13  ;;  %v2915_v34 = vcvt.s32.f32 %v2913_v55 }
0x2fc5   :  { %2798 = vst [vmem:[%s4462_s22 + $0x38] sm:$0xff] %v2789_v44  ;;  %v2809_v16 = vsel %vm2801_vm15, %v2789_v44, -inf }
0x2fc6   :  { %2824 = vmax.xlane.f32.xlu0 %v2809_v16 }
0x2fce   :  { %2874 = vmin.xlane.f32.xlu0 %v2873_v14 }
0x2fd6   :  { %2916 = vmin.xlane.f32.xlu0 %v2915_v34 }
0x2fde   :  { %2850 = vmin.xlane.f32.xlu0 %v2849_v41 }
0x2ffa   :  { %v2889_v48 = vpop.xlane.xlu1 %2888 }
0x2ffb   :  { %vm2890_vm10 = vcmp.eq.f32.partialorder %v2887_v22, %v2889_v48  ;;  %v2895_v18 = vcvt.f32.s32 %v2889_v48 }
0x2ffc   :  { %v2891_v51 = vsel %vm2890_vm10, %v2886_v47, inf }
0x2ffd   :  { %2892 = vmin.xlane.f32.xlu0 %v2891_v51  ;;  %v2896_v22 = vshll.u32 %v2895_v18, 16 }
0x3002   :  { %v2931_v39 = vpop.xlane.xlu1 %2930 }
0x3003   :  { %vm2932_vm11 = vcmp.eq.f32.partialorder %v2929_v52, %v2931_v39  ;;  %v2937_v33 = vcvt.f32.s32 %v2931_v39 }
0x3004   :  { %v2933_v59 = vsel %vm2932_vm11, %v2928_v58, inf }
0x3005   :  { %2934 = vmin.xlane.f32.xlu0 %v2933_v59  ;;  %v2938_v7 = vshll.u32 %v2937_v33, 16 }
0x300a   :  { %v2865_v43 = vpop.xlane.xlu1 %2864 }
0x300b   :  { %v2866_v36 = vcvt.f32.s32 %v2865_v43 }
0x300d   :  { %v2869_v63 = vadd.s32 %v2868_v30, %v2866_v36 }
0x300f   :  { %2956 = vst.msk [vmem:[%s4463_s23 + $0x8] sm:$0xff] %vm2954_vm12, %v2869_v63 }
0x3012   :  { %v2907_v15 = vpop.xlane.xlu1 %2906 }
0x3013   :  { %v2908_v10 = vcvt.f32.s32 %v2907_v15 }
0x3015   :  { %v2911_v29 = vadd.s32 %v2910_v20, %v2908_v10 }
0x3017   :  { %2959 = vst.msk [vmem:[%s4463_s23 + $0x20] sm:$0xff] %vm2954_vm12, %v2911_v29 }
0x3039   :  { %v2825_v53 = vpop.xlane.xlu0 %2824 }
0x303a   :  { %vm2833_vm13 = vcmp.eq.f32.partialorder %v2809_v16, %v2825_v53 }
0x303b   :  { %v2841_v35 = vsel %vm2833_vm13, %v4354_v49, 2147483647 }
0x303c   :  { %v2941_v61 = vshra.s32 %v2841_v35, 16  ;;  %v2940_v40 = vand.u32 65535, %v2841_v35 }
0x303e   :  { %v2943_v9 = vcvt.s32.f32 %v2941_v61  ;;  %v2942_v31 = vcvt.s32.f32 %v2940_v40 }
0x3040   :  { %2944 = vmin.xlane.f32.xlu2 %v2943_v9 }
0x3041   :  { %v2875_v8 = vpop.xlane.xlu0 %2874 }
0x3042   :  { %vm2876_vm14 = vcmp.eq.f32.partialorder %v2873_v14, %v2875_v8  ;;  %v2881_v25 = vcvt.f32.s32 %v2875_v8 }
0x3043   :  { %v2877_v38 = vsel %vm2876_vm14, %v2872_v12, inf }
0x3044   :  { %v2882_v44 = vshll.u32 %v2881_v25, 16 }
0x3048   :  { %2878 = vmin.xlane.f32.xlu2 %v2877_v38 }
0x3049   :  { %v2917_v4 = vpop.xlane.xlu0 %2916 }
0x304a   :  { %vm2918_vm15 = vcmp.eq.f32.partialorder %v2915_v34, %v2917_v4  ;;  %v2923_v23 = vcvt.f32.s32 %v2917_v4 }
0x304b   :  { %v2919_v24 = vsel %vm2918_vm15, %v2914_v62, inf }
0x304c   :  { %v2924_v14 = vshll.u32 %v2923_v23, 16 }
0x3050   :  { %2920 = vmin.xlane.f32.xlu2 %v2919_v24 }
0x3051   :  { %v2851_v56 = vpop.xlane.xlu0 %2850 }
0x3052   :  { %v2852_v21 = vcvt.f32.s32 %v2851_v56 }
0x3054   :  { %v2855_v49 = vadd.s32 %v2854_v57, %v2852_v21 }
0x3056   :  { %2955 = vst.msk [vmem:[%s4463_s23] sm:$0xff] %vm2954_vm12, %v2855_v49 }
0x3070   :  { %v2893_v54 = vpop.xlane.xlu0 %2892 }
0x3071   :  { %v2894_v1 = vcvt.f32.s32 %v2893_v54 }
0x3073   :  { %v2897_v5 = vadd.s32 %v2896_v22, %v2894_v1 }
0x3075   :  { %2958 = vst.msk [vmem:[%s4463_s23 + $0x18] sm:$0xff] %vm2954_vm12, %v2897_v5 }
0x3078   :  { %v2935_v52 = vpop.xlane.xlu0 %2934 }
0x3079   :  { %v2936_v50 = vcvt.f32.s32 %v2935_v52 }
0x307b   :  { %v2939_v6 = vadd.s32 %v2938_v7, %v2936_v50 }
0x307d   :  { %2961 = vst.msk [vmem:[%s4463_s23 + $0x30] sm:$0xff] %vm2954_vm12, %v2939_v6 }
0x30b3   :  { %v2945_v26 = vpop.xlane.xlu2 %2944 }
0x30b4   :  { %vm2946_vm0 = vcmp.eq.f32.partialorder %v2943_v9, %v2945_v26  ;;  %v2951_v34 = vcvt.f32.s32 %v2945_v26 }
0x30b5   :  { %v2947_v3 = vsel %vm2946_vm0, %v2942_v31, inf }
0x30b6   :  { %2948 = vmin.xlane.f32.xlu1 %v2947_v3  ;;  %v2952_v19 = vshll.u32 %v2951_v34, 16 }
0x30bb   :  { %v2879_v13 = vpop.xlane.xlu2 %2878 }
0x30bc   :  { %v2880_v28 = vcvt.f32.s32 %v2879_v13 }
0x30be   :  { %v2883_v16 = vadd.s32 %v2882_v44, %v2880_v28 }
0x30c0   :  { %2957 = vst.msk [vmem:[%s4463_s23 + $0x10] sm:$0xff] %vm2954_vm12, %v2883_v16 }
0x30c3   :  { %v2921_v2 = vpop.xlane.xlu2 %2920 }
0x30c4   :  { %v2922_v32 = vcvt.f32.s32 %v2921_v2 }
0x30c6   :  { %v2925_v55 = vadd.s32 %v2924_v14, %v2922_v32 }
0x30c8   :  { %2960 = vst.msk [vmem:[%s4463_s23 + $0x28] sm:$0xff] %vm2954_vm12, %v2925_v55 }
0x3129   :  { %v2949_v42 = vpop.xlane.xlu1 %2948 }
0x312a   :  { %v2950_v45 = vcvt.f32.s32 %v2949_v42 }
0x312c   :  { %v2953_v41 = vadd.s32 %v2952_v19, %v2950_v45 }
0x312e   :  { %2962 = vst.msk [vmem:[%s4463_s23 + $0x38] sm:$0xff] %vm2954_vm12, %v2953_v41 }

</bundles_post_ra>
